<compile_context>
chip_gen: v5e
topology: v5e:2x2
jax: 0.10.0
libtpu: 0.0.40
codegen_flags: <defaults>
</compile_context>

<pallas_src>
import jax
import jax.numpy as jnp
from jax.experimental import pallas as pl
from jax.experimental.pallas import tpu as pltpu

CONT_DIM = 8
DISC_DIMS = (4, 4)
HEAD_OUT = 2 * CONT_DIM + sum(DISC_DIMS)             # 24
ATARI = ((8, 4, 32), (4, 2, 64), (3, 1, 32))         # (kernel, stride, filters) per layer
IMG = 64                                             # state_shape['pov'] = (64, 64, 3)
END_SIZE = 4

H1 = (IMG - 8) // 4 + 1          # 15  (layer-1 output side)
H2 = (H1 - 4) // 2 + 1           # 6   (layer-2 output side)
H3 = (H2 - 3) // 1 + 1           # 4   (layer-3 output side)
assert H3 == END_SIZE

P1_ROWS = H1 * H1                # 225
P1_COLS = 8 * 8 * 3              # 192
L2_ROWS = H2 * H2                # 36
L2_COLS = 4 * 4 * 32             # 512
L3_ROWS = H3 * H3                # 16
L3_COLS = 3 * 3 * 64             # 576
FEAT = END_SIZE * END_SIZE * 32  # 512
NEVEN = (H1 + 1) // 2            # 8 (even-w entries per row in the phase-split order)


# ------------------------------ fused Pallas kernel ------------------------------

def _fused_kernel(p1_ref, w1_ref, b1_ref, w2_ref, b2_ref, w3_ref, b3_ref, wh_ref, bh_ref,
                  out_ref,
                  act1_ref, pat2_ref, act2_ref, pat3_ref, act3_ref, feat_ref):
    # ---- layer 1: full-depth patch-matrix GEMM + bias + swish (exact sigmoid) ----
    z1 = jnp.dot(p1_ref[0], w1_ref[...], preferred_element_type=jnp.float32) + b1_ref[...]
    act1_ref[...] = z1 * (1.0 / (1.0 + jnp.exp(-z1)))         # (225, 32), W-phase-split rows

    # ---- layer 2: in-kernel im2col (K=4, S=2) from VMEM, then one 512-deep GEMM ----
    # act1 rows are ordered (h, w-parity, w//2): row(h, w) = h*15 + (w & 1)*8 + (w >> 1),
    # so the 6 stride-2 source pixels of one output row form 6 *contiguous* rows.
    for kh in range(4):
        for kw in range(4):
            col = (kh * 4 + kw) * 32
            for oh in range(H2):
                src = (2 * oh + kh) * H1 + (kw & 1) * NEVEN + (kw >> 1)
                pat2_ref[oh * H2:oh * H2 + H2, col:col + 32] = act1_ref[src:src + H2, :]
    z2 = jnp.dot(pat2_ref[...], w2_ref[...], preferred_element_type=jnp.float32) + b2_ref[...]
    act2_ref[...] = z2 * (1.0 / (1.0 + jnp.exp(-z2)))         # (36, 64), row = h*6 + w

    # ---- layer 3: in-kernel im2col (K=3, S=1, contiguous), one 576-deep GEMM ----
    for kh in range(3):
        for kw in range(3):
            col = (kh * 3 + kw) * 64
            for oh in range(H3):
                src = (oh + kh) * H2 + kw
                pat3_ref[oh * H3:oh * H3 + H3, col:col + 64] = act2_ref[src:src + H3, :]
    z3 = jnp.dot(pat3_ref[...], w3_ref[...], preferred_element_type=jnp.float32) + b3_ref[...]
    act3_ref[...] = z3 * (1.0 / (1.0 + jnp.exp(-z3)))         # (16, 32), row = h*4 + w

    # ---- head: flatten (h, w, c) -> (1, 512) in VMEM, Linear, per-group log_softmax ----
    for p in range(L3_ROWS):
        feat_ref[:, p * 32:(p + 1) * 32] = act3_ref[p:p + 1, :]
    z = jnp.dot(feat_ref[...], wh_ref[...], preferred_element_type=jnp.float32) + bh_ref[...]

    lane = jax.lax.broadcasted_iota(jnp.int32, (1, HEAD_OUT), 1)
    corr = jnp.zeros((1, HEAD_OUT), jnp.float32)               # mu / log_var pass through
    off = 2 * CONT_DIM
    for d in DISC_DIMS:
        s = z[:, off:off + d]
        m = jnp.max(s, axis=-1, keepdims=True)
        lse = m + jnp.log(jnp.sum(jnp.exp(s - m), axis=-1, keepdims=True))
        corr = jnp.where((lane >= off) & (lane < off + d), lse, corr)
        off += d
    out_ref[...] = (z - corr).reshape(1, 1, HEAD_OUT)


def _fused_call(p1, w1, b1, w2, b2, w3, b3, wh, bh):
    B = p1.shape[0]
    out = pl.pallas_call(
        _fused_kernel,
        out_shape=jax.ShapeDtypeStruct((B, 1, HEAD_OUT), jnp.float32),
        grid_spec=pltpu.PrefetchScalarGridSpec(
            num_scalar_prefetch=0,
            grid=(B,),
            in_specs=[
                pl.BlockSpec((1, P1_ROWS, P1_COLS), lambda b: (b, 0, 0)),   # layer-1 patches
                pl.BlockSpec((P1_COLS, 32), lambda b: (0, 0)),              # w1 (resident)
                pl.BlockSpec((1, 32), lambda b: (0, 0)),                    # b1
                pl.BlockSpec((L2_COLS, 64), lambda b: (0, 0)),              # w2 (resident)
                pl.BlockSpec((1, 64), lambda b: (0, 0)),                    # b2
                pl.BlockSpec((L3_COLS, 32), lambda b: (0, 0)),              # w3 (resident)
                pl.BlockSpec((1, 32), lambda b: (0, 0)),                    # b3
                pl.BlockSpec((FEAT, HEAD_OUT), lambda b: (0, 0)),           # head W (resident)
                pl.BlockSpec((1, HEAD_OUT), lambda b: (0, 0)),              # head b
            ],
            out_specs=pl.BlockSpec((1, 1, HEAD_OUT), lambda b: (b, 0, 0)),
            scratch_shapes=[
                pltpu.VMEM((P1_ROWS, 32), jnp.float32),        # act1 (15*15, 32)
                pltpu.VMEM((L2_ROWS, L2_COLS), jnp.float32),   # layer-2 patch matrix
                pltpu.VMEM((L2_ROWS, 64), jnp.float32),        # act2 (6*6, 64)
                pltpu.VMEM((L3_ROWS, L3_COLS), jnp.float32),   # layer-3 patch matrix
                pltpu.VMEM((L3_ROWS, 32), jnp.float32),        # act3 (4*4, 32)
                pltpu.VMEM((1, FEAT), jnp.float32),            # flattened feature
            ],
        ),
        compiler_params=pltpu.CompilerParams(
            dimension_semantics=("parallel",),                  # megacore / v7x: split batch
            vmem_limit_bytes=32 * 1024 * 1024,                  # explicit, v7x-safe budget
        ),
    )(p1, w1, b1, w2, b2, w3, b3, wh, bh)
    return out[:, 0, :]


# --------------------------------- JAX wrappers ----------------------------------

def _layer1_patches(x_nhwc):
    """(B,64,64,3) -> (B,225,192) layer-1 im2col patches.

    Row order is (h, w-parity, w//2) (even output columns first) so the fused kernel can
    assemble layer-2's stride-2 patches from contiguous VMEM rows.  Feature (lane) order
    is (kh, kw, cin), matching the conv weight matrix built in prepare_params.
    """
    B = x_nhwc.shape[0]
    cols = []
    for kh in range(8):
        for kw in range(8):
            cols.append(x_nhwc[:, kh:kh + 4 * H1:4, kw:kw + 4 * H1:4, :])   # (B,15,15,3)
    p = jnp.stack(cols, axis=3).reshape(B, H1, H1, P1_COLS)                  # (B, h, w, 192)
    p = jnp.concatenate([p[:, :, 0::2, :], p[:, :, 1::2, :]], axis=2)        # phase-split w
    return p.reshape(B, P1_ROWS, P1_COLS)


@jax.jit
def visualnet_forward(state_pov, params):
    """Mirrors VisualNetVariational.forward (cnn_type='atari'); state_pov is NCHW or (B,T,C,H,W)."""
    w1, b1, w2, b2, w3, b3, wh, bh = params
    x = state_pov
    time_tmp = None
    if x.ndim == 5:
        time_tmp = x.shape[1]
        x = x.reshape((-1,) + x.shape[2:])
    x = jnp.transpose(x, (0, 2, 3, 1)).astype(jnp.float32)      # NCHW -> NHWC
    p1 = _layer1_patches(x)                                     # (B, 225, 192)
    z = _fused_call(p1, w1, b1, w2, b2, w3, b3, wh, bh)         # (B, 24)
    mu = z[:, :CONT_DIM]
    log_var = z[:, CONT_DIM:2 * CONT_DIM]
    discs = z[:, 2 * CONT_DIM:]
    if time_tmp is not None:
        mu = mu.reshape(-1, time_tmp, CONT_DIM)
        log_var = log_var.reshape(-1, time_tmp, CONT_DIM)
        discs = discs.reshape(-1, time_tmp, sum(DISC_DIMS))
    return mu, log_var, discs
    # TODO(synk): the stochastic `sample` method (reparameterization + gumbel_softmax)
    # is not part of forward() and is not implemented here.


def prepare_params(conv_ws, conv_bs, head_w_torch, head_b):
    """One-time conversion from torch layouts to the kernel's GEMM layouts (keep outside jit)."""
    mats = []
    for w, b in zip(conv_ws, conv_bs):
        cout, cin, k, _ = w.shape
        # torch conv weight (Cout, Cin, K, K) -> (K, K, Cin, Cout) -> (K*K*Cin, Cout)
        wm = jnp.transpose(w, (2, 3, 1, 0)).reshape(k * k * cin, cout).astype(jnp.float32)
        mats += [wm, b.reshape(1, cout).astype(jnp.float32)]
    cf = ATARI[-1][2]
    # torch Linear acts on an NCHW flatten (C,H,W); the kernel flattens NHWC (H,W,C).
    w_chw = head_w_torch.reshape(HEAD_OUT, cf, END_SIZE, END_SIZE)
    w_hwc = jnp.transpose(w_chw, (0, 2, 3, 1)).reshape(HEAD_OUT, FEAT)
    wh = jnp.transpose(w_hwc).astype(jnp.float32)                # (512, 24)
    bh = head_b.reshape(1, HEAD_OUT).astype(jnp.float32)
    return tuple(mats) + (wh, bh)


def init_params(key):
    """Deterministic synthetic parameters matching the torch module's shapes."""
    conv_ws, conv_bs = [], []
    cin = 3
    k = key
    for (ksz, _s, cout) in ATARI:
        k, kw_, kb_ = jax.random.split(k, 3)
        fan_in = cin * ksz * ksz
        conv_ws.append(jax.random.normal(kw_, (cout, cin, ksz, ksz), jnp.float32)
                       / jnp.sqrt(float(fan_in)))
        conv_bs.append(0.01 * jax.random.normal(kb_, (cout,), jnp.float32))
        cin = cout
    k, kw_, kb_ = jax.random.split(k, 3)
    in_feat = cin * END_SIZE ** 2                                # 32 * 4 * 4 = 512
    head_w = jax.random.normal(kw_, (HEAD_OUT, in_feat), jnp.float32) / jnp.sqrt(float(in_feat))
    head_b = 0.01 * jax.random.normal(kb_, (HEAD_OUT,), jnp.float32)
    return tuple(conv_ws), tuple(conv_bs), head_w, head_b


def reference_forward(state_pov, conv_ws, conv_bs, head_w_torch, head_b):
    """Pure-JAX (no Pallas) replica of the torch module, used only for parity checking."""
    x = jnp.transpose(state_pov, (0, 2, 3, 1))
    for (k, s, cout), w, b in zip(ATARI, conv_ws, conv_bs):
        B, h, wd, c = x.shape
        ho = (h - k) // s + 1
        wo = (wd - k) // s + 1
        cols = []
        for kh in range(k):
            for kw in range(k):
                cols.append(x[:, kh:kh + s * ho:s, kw:kw + s * wo:s, :])
        p = jnp.stack(cols, axis=3).reshape(B, ho, wo, k * k * c)
        wm = jnp.transpose(w, (2, 3, 1, 0)).reshape(k * k * c, cout)
        z = jnp.einsum('bhwf,fo->bhwo', p, wm) + b
        x = z * jax.nn.sigmoid(z)
    B = x.shape[0]
    feat = jnp.transpose(x, (0, 3, 1, 2)).reshape(B, -1)         # torch Flatten of NCHW
    z = feat @ head_w_torch.T + head_b
    mu = z[:, :CONT_DIM]
    log_var = z[:, CONT_DIM:2 * CONT_DIM]
    parts = []
    off = 2 * CONT_DIM
    for d in DISC_DIMS:
        parts.append(jax.nn.log_softmax(z[:, off:off + d], axis=-1))
        off += d
    return mu, log_var, jnp.concatenate(parts, axis=-1)


if __name__ == "__main__":
    key = jax.random.PRNGKey(0)
    k_in, k_par = jax.random.split(key)
    # state_shape['pov'] = (64, 64, 3): the atari stack needs a 64x64 input to reach 4x4x32.
    x = jax.random.normal(k_in, (2, 3, 64, 64), jnp.float32)     # NCHW, batch=2
    conv_ws, conv_bs, head_w_torch, head_b = init_params(k_par)
    params = prepare_params(conv_ws, conv_bs, head_w_torch, head_b)   # one-time weight prep

    mu, log_var, discs = visualnet_forward(x, params)
    jax.block_until_ready((mu, log_var, discs))

    assert mu.shape == (2, CONT_DIM) and log_var.shape == (2, CONT_DIM)
    assert discs.shape == (2, sum(DISC_DIMS))
    # each log_softmax group must normalize to 1 in probability space
    pr1 = jnp.exp(discs[:, :DISC_DIMS[0]]).sum(-1)
    pr2 = jnp.exp(discs[:, DISC_DIMS[0]:]).sum(-1)
    assert bool(jnp.allclose(pr1, 1.0, atol=1e-3)) and bool(jnp.allclose(pr2, 1.0, atol=1e-3))
    # parity against a pure-JAX reference (f32; differences are MXU rounding only)
    rmu, rlv, rdiscs = reference_forward(x, conv_ws, conv_bs, head_w_torch, head_b)
    assert bool(jnp.allclose(mu, rmu, atol=5e-2, rtol=5e-2))
    assert bool(jnp.allclose(log_var, rlv, atol=5e-2, rtol=5e-2))
    assert bool(jnp.allclose(discs, rdiscs, atol=5e-2, rtol=5e-2))
    print("KERNEL_OK")
</pallas_src>

<mosaic_0001>
module attributes {stable_mosaic.version = 11 : i64} {
  func.func @_fused_kernel(%arg0: i32, %arg1: memref<1x225x192xf32, #tpu.memory_space<vmem>>, %arg2: memref<192x32xf32, #tpu.memory_space<vmem>>, %arg3: memref<1x32xf32, #tpu.memory_space<vmem>>, %arg4: memref<512x64xf32, #tpu.memory_space<vmem>>, %arg5: memref<1x64xf32, #tpu.memory_space<vmem>>, %arg6: memref<576x32xf32, #tpu.memory_space<vmem>>, %arg7: memref<1x32xf32, #tpu.memory_space<vmem>>, %arg8: memref<512x24xf32, #tpu.memory_space<vmem>>, %arg9: memref<1x24xf32, #tpu.memory_space<vmem>>, %arg10: memref<1x1x24xf32, #tpu.memory_space<vmem>>, %arg11: memref<225x32xf32, #tpu.memory_space<vmem>>, %arg12: memref<36x512xf32, #tpu.memory_space<vmem>>, %arg13: memref<36x64xf32, #tpu.memory_space<vmem>>, %arg14: memref<16x576xf32, #tpu.memory_space<vmem>>, %arg15: memref<16x32xf32, #tpu.memory_space<vmem>>, %arg16: memref<1x512xf32, #tpu.memory_space<vmem>>) attributes {dimension_semantics = [#tpu.dimension_semantics<parallel>], iteration_bounds = array<i64: 2>, scalar_prefetch = 0 : i64, scratch_operands = 6 : i64, tpu.core_type = #tpu.core_type<tc>, window_params = [{transform_indices = @transform_0, window_bounds = array<i64: 1, 225, 192>}, {pipeline_mode = #tpu.pipeline_mode<synchronous>, transform_indices = @transform_1, window_bounds = array<i64: 192, 32>}, {pipeline_mode = #tpu.pipeline_mode<synchronous>, transform_indices = @transform_2, window_bounds = array<i64: 1, 32>}, {pipeline_mode = #tpu.pipeline_mode<synchronous>, transform_indices = @transform_3, window_bounds = array<i64: 512, 64>}, {pipeline_mode = #tpu.pipeline_mode<synchronous>, transform_indices = @transform_4, window_bounds = array<i64: 1, 64>}, {pipeline_mode = #tpu.pipeline_mode<synchronous>, transform_indices = @transform_5, window_bounds = array<i64: 576, 32>}, {pipeline_mode = #tpu.pipeline_mode<synchronous>, transform_indices = @transform_6, window_bounds = array<i64: 1, 32>}, {pipeline_mode = #tpu.pipeline_mode<synchronous>, transform_indices = @transform_7, window_bounds = array<i64: 512, 24>}, {pipeline_mode = #tpu.pipeline_mode<synchronous>, transform_indices = @transform_8, window_bounds = array<i64: 1, 24>}, {transform_indices = @transform_9, window_bounds = array<i64: 1, 1, 24>}]} {
    %c0 = arith.constant 0 : index
    %c0_0 = arith.constant 0 : index
    %c0_1 = arith.constant 0 : index
    %0 = vector.load %arg1[%c0, %c0_0, %c0_1] : memref<1x225x192xf32, #tpu.memory_space<vmem>>, vector<1x225x192xf32>
    %1 = vector.shape_cast %0 : vector<1x225x192xf32> to vector<225x192xf32>
    %c0_2 = arith.constant 0 : index
    %c0_3 = arith.constant 0 : index
    %2 = vector.load %arg2[%c0_2, %c0_3] : memref<192x32xf32, #tpu.memory_space<vmem>>, vector<192x32xf32>
    %cst = arith.constant dense<0.000000e+00> : vector<225x32xf32>
    %3 = tpu.matmul %1, %2, %cst {dimension_numbers = #tpu.dot_dimension_numbers<[1], [0], [0], [1], [0, 0, 1, 1], [], []>} : vector<225x192xf32>, vector<192x32xf32>, vector<225x32xf32> -> vector<225x32xf32>
    %c0_4 = arith.constant 0 : index
    %c0_5 = arith.constant 0 : index
    %4 = vector.load %arg3[%c0_4, %c0_5] : memref<1x32xf32, #tpu.memory_space<vmem>>, vector<1x32xf32>
    %5 = vector.broadcast %4 : vector<1x32xf32> to vector<225x32xf32>
    %6 = arith.addf %3, %5 : vector<225x32xf32>
    %cst_6 = arith.constant 0.000000e+00 : f32
    %7 = vector.broadcast %cst_6 : f32 to vector<225x32xf32>
    %8 = arith.subf %7, %6 : vector<225x32xf32>
    %9 = math.exp %8 : vector<225x32xf32>
    %cst_7 = arith.constant 1.000000e+00 : f32
    %10 = vector.broadcast %cst_7 : f32 to vector<225x32xf32>
    %11 = arith.addf %10, %9 : vector<225x32xf32>
    %cst_8 = arith.constant 1.000000e+00 : f32
    %12 = vector.broadcast %cst_8 : f32 to vector<225x32xf32>
    %13 = arith.divf %12, %11 : vector<225x32xf32>
    %14 = arith.mulf %6, %13 : vector<225x32xf32>
    %c0_9 = arith.constant 0 : index
    %c0_10 = arith.constant 0 : index
    %15 = vector.load %arg11[%c0_9, %c0_10] : memref<225x32xf32, #tpu.memory_space<vmem>>, vector<225x32xf32>
    tpu.vector_store %arg11[%c0_9, %c0_10], %14 {strides = array<i32>} : memref<225x32xf32, #tpu.memory_space<vmem>>, vector<225x32xf32>,
    %c0_11 = arith.constant 0 : index
    %c0_12 = arith.constant 0 : index
    %16 = vector.load %arg11[%c0_11, %c0_12] : memref<225x32xf32, #tpu.memory_space<vmem>>, vector<6x32xf32>
    %c0_13 = arith.constant 0 : index
    %c0_14 = arith.constant 0 : index
    %17 = vector.load %arg12[%c0_13, %c0_14] : memref<36x512xf32, #tpu.memory_space<vmem>>, vector<6x32xf32>
    tpu.vector_store %arg12[%c0_13, %c0_14], %16 {strides = array<i32>} : memref<36x512xf32, #tpu.memory_space<vmem>>, vector<6x32xf32>,
    %c30 = arith.constant 30 : index
    %c0_15 = arith.constant 0 : index
    %18 = vector.load %arg11[%c30, %c0_15] : memref<225x32xf32, #tpu.memory_space<vmem>>, vector<6x32xf32>
    %c6 = arith.constant 6 : index
    %c0_16 = arith.constant 0 : index
    %19 = vector.load %arg12[%c6, %c0_16] : memref<36x512xf32, #tpu.memory_space<vmem>>, vector<6x32xf32>
    tpu.vector_store %arg12[%c6, %c0_16], %18 {strides = array<i32>} : memref<36x512xf32, #tpu.memory_space<vmem>>, vector<6x32xf32>,
    %c60 = arith.constant 60 : index
    %c0_17 = arith.constant 0 : index
    %20 = vector.load %arg11[%c60, %c0_17] : memref<225x32xf32, #tpu.memory_space<vmem>>, vector<6x32xf32>
    %c12 = arith.constant 12 : index
    %c0_18 = arith.constant 0 : index
    %21 = vector.load %arg12[%c12, %c0_18] : memref<36x512xf32, #tpu.memory_space<vmem>>, vector<6x32xf32>
    tpu.vector_store %arg12[%c12, %c0_18], %20 {strides = array<i32>} : memref<36x512xf32, #tpu.memory_space<vmem>>, vector<6x32xf32>,
    %c90 = arith.constant 90 : index
    %c0_19 = arith.constant 0 : index
    %22 = vector.load %arg11[%c90, %c0_19] : memref<225x32xf32, #tpu.memory_space<vmem>>, vector<6x32xf32>
    %c18 = arith.constant 18 : index
    %c0_20 = arith.constant 0 : index
    %23 = vector.load %arg12[%c18, %c0_20] : memref<36x512xf32, #tpu.memory_space<vmem>>, vector<6x32xf32>
    tpu.vector_store %arg12[%c18, %c0_20], %22 {strides = array<i32>} : memref<36x512xf32, #tpu.memory_space<vmem>>, vector<6x32xf32>,
    %c120 = arith.constant 120 : index
    %c0_21 = arith.constant 0 : index
    %24 = vector.load %arg11[%c120, %c0_21] : memref<225x32xf32, #tpu.memory_space<vmem>>, vector<6x32xf32>
    %c24 = arith.constant 24 : index
    %c0_22 = arith.constant 0 : index
    %25 = vector.load %arg12[%c24, %c0_22] : memref<36x512xf32, #tpu.memory_space<vmem>>, vector<6x32xf32>
    tpu.vector_store %arg12[%c24, %c0_22], %24 {strides = array<i32>} : memref<36x512xf32, #tpu.memory_space<vmem>>, vector<6x32xf32>,
    %c150 = arith.constant 150 : index
    %c0_23 = arith.constant 0 : index
    %26 = vector.load %arg11[%c150, %c0_23] : memref<225x32xf32, #tpu.memory_space<vmem>>, vector<6x32xf32>
    %c30_24 = arith.constant 30 : index
    %c0_25 = arith.constant 0 : index
    %27 = vector.load %arg12[%c30_24, %c0_25] : memref<36x512xf32, #tpu.memory_space<vmem>>, vector<6x32xf32>
    tpu.vector_store %arg12[%c30_24, %c0_25], %26 {strides = array<i32>} : memref<36x512xf32, #tpu.memory_space<vmem>>, vector<6x32xf32>,
    %c8 = arith.constant 8 : index
    %c0_26 = arith.constant 0 : index
    %28 = vector.load %arg11[%c8, %c0_26] : memref<225x32xf32, #tpu.memory_space<vmem>>, vector<6x32xf32>
    %c0_27 = arith.constant 0 : index
    %c32 = arith.constant 32 : index
    %29 = vector.load %arg12[%c0_27, %c32] : memref<36x512xf32, #tpu.memory_space<vmem>>, vector<6x32xf32>
    tpu.vector_store %arg12[%c0_27, %c32], %28 {strides = array<i32>} : memref<36x512xf32, #tpu.memory_space<vmem>>, vector<6x32xf32>,
    %c38 = arith.constant 38 : index
    %c0_28 = arith.constant 0 : index
    %30 = vector.load %arg11[%c38, %c0_28] : memref<225x32xf32, #tpu.memory_space<vmem>>, vector<6x32xf32>
    %c6_29 = arith.constant 6 : index
    %c32_30 = arith.constant 32 : index
    %31 = vector.load %arg12[%c6_29, %c32_30] : memref<36x512xf32, #tpu.memory_space<vmem>>, vector<6x32xf32>
    tpu.vector_store %arg12[%c6_29, %c32_30], %30 {strides = array<i32>} : memref<36x512xf32, #tpu.memory_space<vmem>>, vector<6x32xf32>,
    %c68 = arith.constant 68 : index
    %c0_31 = arith.constant 0 : index
    %32 = vector.load %arg11[%c68, %c0_31] : memref<225x32xf32, #tpu.memory_space<vmem>>, vector<6x32xf32>
    %c12_32 = arith.constant 12 : index
    %c32_33 = arith.constant 32 : index
    %33 = vector.load %arg12[%c12_32, %c32_33] : memref<36x512xf32, #tpu.memory_space<vmem>>, vector<6x32xf32>
    tpu.vector_store %arg12[%c12_32, %c32_33], %32 {strides = array<i32>} : memref<36x512xf32, #tpu.memory_space<vmem>>, vector<6x32xf32>,
    %c98 = arith.constant 98 : index
    %c0_34 = arith.constant 0 : index
    %34 = vector.load %arg11[%c98, %c0_34] : memref<225x32xf32, #tpu.memory_space<vmem>>, vector<6x32xf32>
    %c18_35 = arith.constant 18 : index
    %c32_36 = arith.constant 32 : index
    %35 = vector.load %arg12[%c18_35, %c32_36] : memref<36x512xf32, #tpu.memory_space<vmem>>, vector<6x32xf32>
    tpu.vector_store %arg12[%c18_35, %c32_36], %34 {strides = array<i32>} : memref<36x512xf32, #tpu.memory_space<vmem>>, vector<6x32xf32>,
    %c128 = arith.constant 128 : index
    %c0_37 = arith.constant 0 : index
    %36 = vector.load %arg11[%c128, %c0_37] : memref<225x32xf32, #tpu.memory_space<vmem>>, vector<6x32xf32>
    %c24_38 = arith.constant 24 : index
    %c32_39 = arith.constant 32 : index
    %37 = vector.load %arg12[%c24_38, %c32_39] : memref<36x512xf32, #tpu.memory_space<vmem>>, vector<6x32xf32>
    tpu.vector_store %arg12[%c24_38, %c32_39], %36 {strides = array<i32>} : memref<36x512xf32, #tpu.memory_space<vmem>>, vector<6x32xf32>,
    %c158 = arith.constant 158 : index
    %c0_40 = arith.constant 0 : index
    %38 = vector.load %arg11[%c158, %c0_40] : memref<225x32xf32, #tpu.memory_space<vmem>>, vector<6x32xf32>
    %c30_41 = arith.constant 30 : index
    %c32_42 = arith.constant 32 : index
    %39 = vector.load %arg12[%c30_41, %c32_42] : memref<36x512xf32, #tpu.memory_space<vmem>>, vector<6x32xf32>
    tpu.vector_store %arg12[%c30_41, %c32_42], %38 {strides = array<i32>} : memref<36x512xf32, #tpu.memory_space<vmem>>, vector<6x32xf32>,
    %c1 = arith.constant 1 : index
    %c0_43 = arith.constant 0 : index
    %40 = vector.load %arg11[%c1, %c0_43] : memref<225x32xf32, #tpu.memory_space<vmem>>, vector<6x32xf32>
    %c0_44 = arith.constant 0 : index
    %c64 = arith.constant 64 : index
    %41 = vector.load %arg12[%c0_44, %c64] : memref<36x512xf32, #tpu.memory_space<vmem>>, vector<6x32xf32>
    tpu.vector_store %arg12[%c0_44, %c64], %40 {strides = array<i32>} : memref<36x512xf32, #tpu.memory_space<vmem>>, vector<6x32xf32>,
    %c31 = arith.constant 31 : index
    %c0_45 = arith.constant 0 : index
    %42 = vector.load %arg11[%c31, %c0_45] : memref<225x32xf32, #tpu.memory_space<vmem>>, vector<6x32xf32>
    %c6_46 = arith.constant 6 : index
    %c64_47 = arith.constant 64 : index
    %43 = vector.load %arg12[%c6_46, %c64_47] : memref<36x512xf32, #tpu.memory_space<vmem>>, vector<6x32xf32>
    tpu.vector_store %arg12[%c6_46, %c64_47], %42 {strides = array<i32>} : memref<36x512xf32, #tpu.memory_space<vmem>>, vector<6x32xf32>,
    %c61 = arith.constant 61 : index
    %c0_48 = arith.constant 0 : index
    %44 = vector.load %arg11[%c61, %c0_48] : memref<225x32xf32, #tpu.memory_space<vmem>>, vector<6x32xf32>
    %c12_49 = arith.constant 12 : index
    %c64_50 = arith.constant 64 : index
    %45 = vector.load %arg12[%c12_49, %c64_50] : memref<36x512xf32, #tpu.memory_space<vmem>>, vector<6x32xf32>
    tpu.vector_store %arg12[%c12_49, %c64_50], %44 {strides = array<i32>} : memref<36x512xf32, #tpu.memory_space<vmem>>, vector<6x32xf32>,
    %c91 = arith.constant 91 : index
    %c0_51 = arith.constant 0 : index
    %46 = vector.load %arg11[%c91, %c0_51] : memref<225x32xf32, #tpu.memory_space<vmem>>, vector<6x32xf32>
    %c18_52 = arith.constant 18 : index
    %c64_53 = arith.constant 64 : index
    %47 = vector.load %arg12[%c18_52, %c64_53] : memref<36x512xf32, #tpu.memory_space<vmem>>, vector<6x32xf32>
    tpu.vector_store %arg12[%c18_52, %c64_53], %46 {strides = array<i32>} : memref<36x512xf32, #tpu.memory_space<vmem>>, vector<6x32xf32>,
    %c121 = arith.constant 121 : index
    %c0_54 = arith.constant 0 : index
    %48 = vector.load %arg11[%c121, %c0_54] : memref<225x32xf32, #tpu.memory_space<vmem>>, vector<6x32xf32>
    %c24_55 = arith.constant 24 : index
    %c64_56 = arith.constant 64 : index
    %49 = vector.load %arg12[%c24_55, %c64_56] : memref<36x512xf32, #tpu.memory_space<vmem>>, vector<6x32xf32>
    tpu.vector_store %arg12[%c24_55, %c64_56], %48 {strides = array<i32>} : memref<36x512xf32, #tpu.memory_space<vmem>>, vector<6x32xf32>,
    %c151 = arith.constant 151 : index
    %c0_57 = arith.constant 0 : index
    %50 = vector.load %arg11[%c151, %c0_57] : memref<225x32xf32, #tpu.memory_space<vmem>>, vector<6x32xf32>
    %c30_58 = arith.constant 30 : index
    %c64_59 = arith.constant 64 : index
    %51 = vector.load %arg12[%c30_58, %c64_59] : memref<36x512xf32, #tpu.memory_space<vmem>>, vector<6x32xf32>
    tpu.vector_store %arg12[%c30_58, %c64_59], %50 {strides = array<i32>} : memref<36x512xf32, #tpu.memory_space<vmem>>, vector<6x32xf32>,
    %c9 = arith.constant 9 : index
    %c0_60 = arith.constant 0 : index
    %52 = vector.load %arg11[%c9, %c0_60] : memref<225x32xf32, #tpu.memory_space<vmem>>, vector<6x32xf32>
    %c0_61 = arith.constant 0 : index
    %c96 = arith.constant 96 : index
    %53 = vector.load %arg12[%c0_61, %c96] : memref<36x512xf32, #tpu.memory_space<vmem>>, vector<6x32xf32>
    tpu.vector_store %arg12[%c0_61, %c96], %52 {strides = array<i32>} : memref<36x512xf32, #tpu.memory_space<vmem>>, vector<6x32xf32>,
    %c39 = arith.constant 39 : index
    %c0_62 = arith.constant 0 : index
    %54 = vector.load %arg11[%c39, %c0_62] : memref<225x32xf32, #tpu.memory_space<vmem>>, vector<6x32xf32>
    %c6_63 = arith.constant 6 : index
    %c96_64 = arith.constant 96 : index
    %55 = vector.load %arg12[%c6_63, %c96_64] : memref<36x512xf32, #tpu.memory_space<vmem>>, vector<6x32xf32>
    tpu.vector_store %arg12[%c6_63, %c96_64], %54 {strides = array<i32>} : memref<36x512xf32, #tpu.memory_space<vmem>>, vector<6x32xf32>,
    %c69 = arith.constant 69 : index
    %c0_65 = arith.constant 0 : index
    %56 = vector.load %arg11[%c69, %c0_65] : memref<225x32xf32, #tpu.memory_space<vmem>>, vector<6x32xf32>
    %c12_66 = arith.constant 12 : index
    %c96_67 = arith.constant 96 : index
    %57 = vector.load %arg12[%c12_66, %c96_67] : memref<36x512xf32, #tpu.memory_space<vmem>>, vector<6x32xf32>
    tpu.vector_store %arg12[%c12_66, %c96_67], %56 {strides = array<i32>} : memref<36x512xf32, #tpu.memory_space<vmem>>, vector<6x32xf32>,
    %c99 = arith.constant 99 : index
    %c0_68 = arith.constant 0 : index
    %58 = vector.load %arg11[%c99, %c0_68] : memref<225x32xf32, #tpu.memory_space<vmem>>, vector<6x32xf32>
    %c18_69 = arith.constant 18 : index
    %c96_70 = arith.constant 96 : index
    %59 = vector.load %arg12[%c18_69, %c96_70] : memref<36x512xf32, #tpu.memory_space<vmem>>, vector<6x32xf32>
    tpu.vector_store %arg12[%c18_69, %c96_70], %58 {strides = array<i32>} : memref<36x512xf32, #tpu.memory_space<vmem>>, vector<6x32xf32>,
    %c129 = arith.constant 129 : index
    %c0_71 = arith.constant 0 : index
    %60 = vector.load %arg11[%c129, %c0_71] : memref<225x32xf32, #tpu.memory_space<vmem>>, vector<6x32xf32>
    %c24_72 = arith.constant 24 : index
    %c96_73 = arith.constant 96 : index
    %61 = vector.load %arg12[%c24_72, %c96_73] : memref<36x512xf32, #tpu.memory_space<vmem>>, vector<6x32xf32>
    tpu.vector_store %arg12[%c24_72, %c96_73], %60 {strides = array<i32>} : memref<36x512xf32, #tpu.memory_space<vmem>>, vector<6x32xf32>,
    %c159 = arith.constant 159 : index
    %c0_74 = arith.constant 0 : index
    %62 = vector.load %arg11[%c159, %c0_74] : memref<225x32xf32, #tpu.memory_space<vmem>>, vector<6x32xf32>
    %c30_75 = arith.constant 30 : index
    %c96_76 = arith.constant 96 : index
    %63 = vector.load %arg12[%c30_75, %c96_76] : memref<36x512xf32, #tpu.memory_space<vmem>>, vector<6x32xf32>
    tpu.vector_store %arg12[%c30_75, %c96_76], %62 {strides = array<i32>} : memref<36x512xf32, #tpu.memory_space<vmem>>, vector<6x32xf32>,
    %c15 = arith.constant 15 : index
    %c0_77 = arith.constant 0 : index
    %64 = vector.load %arg11[%c15, %c0_77] : memref<225x32xf32, #tpu.memory_space<vmem>>, vector<6x32xf32>
    %c0_78 = arith.constant 0 : index
    %c128_79 = arith.constant 128 : index
    %65 = vector.load %arg12[%c0_78, %c128_79] : memref<36x512xf32, #tpu.memory_space<vmem>>, vector<6x32xf32>
    tpu.vector_store %arg12[%c0_78, %c128_79], %64 {strides = array<i32>} : memref<36x512xf32, #tpu.memory_space<vmem>>, vector<6x32xf32>,
    %c45 = arith.constant 45 : index
    %c0_80 = arith.constant 0 : index
    %66 = vector.load %arg11[%c45, %c0_80] : memref<225x32xf32, #tpu.memory_space<vmem>>, vector<6x32xf32>
    %c6_81 = arith.constant 6 : index
    %c128_82 = arith.constant 128 : index
    %67 = vector.load %arg12[%c6_81, %c128_82] : memref<36x512xf32, #tpu.memory_space<vmem>>, vector<6x32xf32>
    tpu.vector_store %arg12[%c6_81, %c128_82], %66 {strides = array<i32>} : memref<36x512xf32, #tpu.memory_space<vmem>>, vector<6x32xf32>,
    %c75 = arith.constant 75 : index
    %c0_83 = arith.constant 0 : index
    %68 = vector.load %arg11[%c75, %c0_83] : memref<225x32xf32, #tpu.memory_space<vmem>>, vector<6x32xf32>
    %c12_84 = arith.constant 12 : index
    %c128_85 = arith.constant 128 : index
    %69 = vector.load %arg12[%c12_84, %c128_85] : memref<36x512xf32, #tpu.memory_space<vmem>>, vector<6x32xf32>
    tpu.vector_store %arg12[%c12_84, %c128_85], %68 {strides = array<i32>} : memref<36x512xf32, #tpu.memory_space<vmem>>, vector<6x32xf32>,
    %c105 = arith.constant 105 : index
    %c0_86 = arith.constant 0 : index
    %70 = vector.load %arg11[%c105, %c0_86] : memref<225x32xf32, #tpu.memory_space<vmem>>, vector<6x32xf32>
    %c18_87 = arith.constant 18 : index
    %c128_88 = arith.constant 128 : index
    %71 = vector.load %arg12[%c18_87, %c128_88] : memref<36x512xf32, #tpu.memory_space<vmem>>, vector<6x32xf32>
    tpu.vector_store %arg12[%c18_87, %c128_88], %70 {strides = array<i32>} : memref<36x512xf32, #tpu.memory_space<vmem>>, vector<6x32xf32>,
    %c135 = arith.constant 135 : index
    %c0_89 = arith.constant 0 : index
    %72 = vector.load %arg11[%c135, %c0_89] : memref<225x32xf32, #tpu.memory_space<vmem>>, vector<6x32xf32>
    %c24_90 = arith.constant 24 : index
    %c128_91 = arith.constant 128 : index
    %73 = vector.load %arg12[%c24_90, %c128_91] : memref<36x512xf32, #tpu.memory_space<vmem>>, vector<6x32xf32>
    tpu.vector_store %arg12[%c24_90, %c128_91], %72 {strides = array<i32>} : memref<36x512xf32, #tpu.memory_space<vmem>>, vector<6x32xf32>,
    %c165 = arith.constant 165 : index
    %c0_92 = arith.constant 0 : index
    %74 = vector.load %arg11[%c165, %c0_92] : memref<225x32xf32, #tpu.memory_space<vmem>>, vector<6x32xf32>
    %c30_93 = arith.constant 30 : index
    %c128_94 = arith.constant 128 : index
    %75 = vector.load %arg12[%c30_93, %c128_94] : memref<36x512xf32, #tpu.memory_space<vmem>>, vector<6x32xf32>
    tpu.vector_store %arg12[%c30_93, %c128_94], %74 {strides = array<i32>} : memref<36x512xf32, #tpu.memory_space<vmem>>, vector<6x32xf32>,
    %c23 = arith.constant 23 : index
    %c0_95 = arith.constant 0 : index
    %76 = vector.load %arg11[%c23, %c0_95] : memref<225x32xf32, #tpu.memory_space<vmem>>, vector<6x32xf32>
    %c0_96 = arith.constant 0 : index
    %c160 = arith.constant 160 : index
    %77 = vector.load %arg12[%c0_96, %c160] : memref<36x512xf32, #tpu.memory_space<vmem>>, vector<6x32xf32>
    tpu.vector_store %arg12[%c0_96, %c160], %76 {strides = array<i32>} : memref<36x512xf32, #tpu.memory_space<vmem>>, vector<6x32xf32>,
    %c53 = arith.constant 53 : index
    %c0_97 = arith.constant 0 : index
    %78 = vector.load %arg11[%c53, %c0_97] : memref<225x32xf32, #tpu.memory_space<vmem>>, vector<6x32xf32>
    %c6_98 = arith.constant 6 : index
    %c160_99 = arith.constant 160 : index
    %79 = vector.load %arg12[%c6_98, %c160_99] : memref<36x512xf32, #tpu.memory_space<vmem>>, vector<6x32xf32>
    tpu.vector_store %arg12[%c6_98, %c160_99], %78 {strides = array<i32>} : memref<36x512xf32, #tpu.memory_space<vmem>>, vector<6x32xf32>,
    %c83 = arith.constant 83 : index
    %c0_100 = arith.constant 0 : index
    %80 = vector.load %arg11[%c83, %c0_100] : memref<225x32xf32, #tpu.memory_space<vmem>>, vector<6x32xf32>
    %c12_101 = arith.constant 12 : index
    %c160_102 = arith.constant 160 : index
    %81 = vector.load %arg12[%c12_101, %c160_102] : memref<36x512xf32, #tpu.memory_space<vmem>>, vector<6x32xf32>
    tpu.vector_store %arg12[%c12_101, %c160_102], %80 {strides = array<i32>} : memref<36x512xf32, #tpu.memory_space<vmem>>, vector<6x32xf32>,
    %c113 = arith.constant 113 : index
    %c0_103 = arith.constant 0 : index
    %82 = vector.load %arg11[%c113, %c0_103] : memref<225x32xf32, #tpu.memory_space<vmem>>, vector<6x32xf32>
    %c18_104 = arith.constant 18 : index
    %c160_105 = arith.constant 160 : index
    %83 = vector.load %arg12[%c18_104, %c160_105] : memref<36x512xf32, #tpu.memory_space<vmem>>, vector<6x32xf32>
    tpu.vector_store %arg12[%c18_104, %c160_105], %82 {strides = array<i32>} : memref<36x512xf32, #tpu.memory_space<vmem>>, vector<6x32xf32>,
    %c143 = arith.constant 143 : index
    %c0_106 = arith.constant 0 : index
    %84 = vector.load %arg11[%c143, %c0_106] : memref<225x32xf32, #tpu.memory_space<vmem>>, vector<6x32xf32>
    %c24_107 = arith.constant 24 : index
    %c160_108 = arith.constant 160 : index
    %85 = vector.load %arg12[%c24_107, %c160_108] : memref<36x512xf32, #tpu.memory_space<vmem>>, vector<6x32xf32>
    tpu.vector_store %arg12[%c24_107, %c160_108], %84 {strides = array<i32>} : memref<36x512xf32, #tpu.memory_space<vmem>>, vector<6x32xf32>,
    %c173 = arith.constant 173 : index
    %c0_109 = arith.constant 0 : index
    %86 = vector.load %arg11[%c173, %c0_109] : memref<225x32xf32, #tpu.memory_space<vmem>>, vector<6x32xf32>
    %c30_110 = arith.constant 30 : index
    %c160_111 = arith.constant 160 : index
    %87 = vector.load %arg12[%c30_110, %c160_111] : memref<36x512xf32, #tpu.memory_space<vmem>>, vector<6x32xf32>
    tpu.vector_store %arg12[%c30_110, %c160_111], %86 {strides = array<i32>} : memref<36x512xf32, #tpu.memory_space<vmem>>, vector<6x32xf32>,
    %c16 = arith.constant 16 : index
    %c0_112 = arith.constant 0 : index
    %88 = vector.load %arg11[%c16, %c0_112] : memref<225x32xf32, #tpu.memory_space<vmem>>, vector<6x32xf32>
    %c0_113 = arith.constant 0 : index
    %c192 = arith.constant 192 : index
    %89 = vector.load %arg12[%c0_113, %c192] : memref<36x512xf32, #tpu.memory_space<vmem>>, vector<6x32xf32>
    tpu.vector_store %arg12[%c0_113, %c192], %88 {strides = array<i32>} : memref<36x512xf32, #tpu.memory_space<vmem>>, vector<6x32xf32>,
    %c46 = arith.constant 46 : index
    %c0_114 = arith.constant 0 : index
    %90 = vector.load %arg11[%c46, %c0_114] : memref<225x32xf32, #tpu.memory_space<vmem>>, vector<6x32xf32>
    %c6_115 = arith.constant 6 : index
    %c192_116 = arith.constant 192 : index
    %91 = vector.load %arg12[%c6_115, %c192_116] : memref<36x512xf32, #tpu.memory_space<vmem>>, vector<6x32xf32>
    tpu.vector_store %arg12[%c6_115, %c192_116], %90 {strides = array<i32>} : memref<36x512xf32, #tpu.memory_space<vmem>>, vector<6x32xf32>,
    %c76 = arith.constant 76 : index
    %c0_117 = arith.constant 0 : index
    %92 = vector.load %arg11[%c76, %c0_117] : memref<225x32xf32, #tpu.memory_space<vmem>>, vector<6x32xf32>
    %c12_118 = arith.constant 12 : index
    %c192_119 = arith.constant 192 : index
    %93 = vector.load %arg12[%c12_118, %c192_119] : memref<36x512xf32, #tpu.memory_space<vmem>>, vector<6x32xf32>
    tpu.vector_store %arg12[%c12_118, %c192_119], %92 {strides = array<i32>} : memref<36x512xf32, #tpu.memory_space<vmem>>, vector<6x32xf32>,
    %c106 = arith.constant 106 : index
    %c0_120 = arith.constant 0 : index
    %94 = vector.load %arg11[%c106, %c0_120] : memref<225x32xf32, #tpu.memory_space<vmem>>, vector<6x32xf32>
    %c18_121 = arith.constant 18 : index
    %c192_122 = arith.constant 192 : index
    %95 = vector.load %arg12[%c18_121, %c192_122] : memref<36x512xf32, #tpu.memory_space<vmem>>, vector<6x32xf32>
    tpu.vector_store %arg12[%c18_121, %c192_122], %94 {strides = array<i32>} : memref<36x512xf32, #tpu.memory_space<vmem>>, vector<6x32xf32>,
    %c136 = arith.constant 136 : index
    %c0_123 = arith.constant 0 : index
    %96 = vector.load %arg11[%c136, %c0_123] : memref<225x32xf32, #tpu.memory_space<vmem>>, vector<6x32xf32>
    %c24_124 = arith.constant 24 : index
    %c192_125 = arith.constant 192 : index
    %97 = vector.load %arg12[%c24_124, %c192_125] : memref<36x512xf32, #tpu.memory_space<vmem>>, vector<6x32xf32>
    tpu.vector_store %arg12[%c24_124, %c192_125], %96 {strides = array<i32>} : memref<36x512xf32, #tpu.memory_space<vmem>>, vector<6x32xf32>,
    %c166 = arith.constant 166 : index
    %c0_126 = arith.constant 0 : index
    %98 = vector.load %arg11[%c166, %c0_126] : memref<225x32xf32, #tpu.memory_space<vmem>>, vector<6x32xf32>
    %c30_127 = arith.constant 30 : index
    %c192_128 = arith.constant 192 : index
    %99 = vector.load %arg12[%c30_127, %c192_128] : memref<36x512xf32, #tpu.memory_space<vmem>>, vector<6x32xf32>
    tpu.vector_store %arg12[%c30_127, %c192_128], %98 {strides = array<i32>} : memref<36x512xf32, #tpu.memory_space<vmem>>, vector<6x32xf32>,
    %c24_129 = arith.constant 24 : index
    %c0_130 = arith.constant 0 : index
    %100 = vector.load %arg11[%c24_129, %c0_130] : memref<225x32xf32, #tpu.memory_space<vmem>>, vector<6x32xf32>
    %c0_131 = arith.constant 0 : index
    %c224 = arith.constant 224 : index
    %101 = vector.load %arg12[%c0_131, %c224] : memref<36x512xf32, #tpu.memory_space<vmem>>, vector<6x32xf32>
    tpu.vector_store %arg12[%c0_131, %c224], %100 {strides = array<i32>} : memref<36x512xf32, #tpu.memory_space<vmem>>, vector<6x32xf32>,
    %c54 = arith.constant 54 : index
    %c0_132 = arith.constant 0 : index
    %102 = vector.load %arg11[%c54, %c0_132] : memref<225x32xf32, #tpu.memory_space<vmem>>, vector<6x32xf32>
    %c6_133 = arith.constant 6 : index
    %c224_134 = arith.constant 224 : index
    %103 = vector.load %arg12[%c6_133, %c224_134] : memref<36x512xf32, #tpu.memory_space<vmem>>, vector<6x32xf32>
    tpu.vector_store %arg12[%c6_133, %c224_134], %102 {strides = array<i32>} : memref<36x512xf32, #tpu.memory_space<vmem>>, vector<6x32xf32>,
    %c84 = arith.constant 84 : index
    %c0_135 = arith.constant 0 : index
    %104 = vector.load %arg11[%c84, %c0_135] : memref<225x32xf32, #tpu.memory_space<vmem>>, vector<6x32xf32>
    %c12_136 = arith.constant 12 : index
    %c224_137 = arith.constant 224 : index
    %105 = vector.load %arg12[%c12_136, %c224_137] : memref<36x512xf32, #tpu.memory_space<vmem>>, vector<6x32xf32>
    tpu.vector_store %arg12[%c12_136, %c224_137], %104 {strides = array<i32>} : memref<36x512xf32, #tpu.memory_space<vmem>>, vector<6x32xf32>,
    %c114 = arith.constant 114 : index
    %c0_138 = arith.constant 0 : index
    %106 = vector.load %arg11[%c114, %c0_138] : memref<225x32xf32, #tpu.memory_space<vmem>>, vector<6x32xf32>
    %c18_139 = arith.constant 18 : index
    %c224_140 = arith.constant 224 : index
    %107 = vector.load %arg12[%c18_139, %c224_140] : memref<36x512xf32, #tpu.memory_space<vmem>>, vector<6x32xf32>
    tpu.vector_store %arg12[%c18_139, %c224_140], %106 {strides = array<i32>} : memref<36x512xf32, #tpu.memory_space<vmem>>, vector<6x32xf32>,
    %c144 = arith.constant 144 : index
    %c0_141 = arith.constant 0 : index
    %108 = vector.load %arg11[%c144, %c0_141] : memref<225x32xf32, #tpu.memory_space<vmem>>, vector<6x32xf32>
    %c24_142 = arith.constant 24 : index
    %c224_143 = arith.constant 224 : index
    %109 = vector.load %arg12[%c24_142, %c224_143] : memref<36x512xf32, #tpu.memory_space<vmem>>, vector<6x32xf32>
    tpu.vector_store %arg12[%c24_142, %c224_143], %108 {strides = array<i32>} : memref<36x512xf32, #tpu.memory_space<vmem>>, vector<6x32xf32>,
    %c174 = arith.constant 174 : index
    %c0_144 = arith.constant 0 : index
    %110 = vector.load %arg11[%c174, %c0_144] : memref<225x32xf32, #tpu.memory_space<vmem>>, vector<6x32xf32>
    %c30_145 = arith.constant 30 : index
    %c224_146 = arith.constant 224 : index
    %111 = vector.load %arg12[%c30_145, %c224_146] : memref<36x512xf32, #tpu.memory_space<vmem>>, vector<6x32xf32>
    tpu.vector_store %arg12[%c30_145, %c224_146], %110 {strides = array<i32>} : memref<36x512xf32, #tpu.memory_space<vmem>>, vector<6x32xf32>,
    %c30_147 = arith.constant 30 : index
    %c0_148 = arith.constant 0 : index
    %112 = vector.load %arg11[%c30_147, %c0_148] : memref<225x32xf32, #tpu.memory_space<vmem>>, vector<6x32xf32>
    %c0_149 = arith.constant 0 : index
    %c256 = arith.constant 256 : index
    %113 = vector.load %arg12[%c0_149, %c256] : memref<36x512xf32, #tpu.memory_space<vmem>>, vector<6x32xf32>
    tpu.vector_store %arg12[%c0_149, %c256], %112 {strides = array<i32>} : memref<36x512xf32, #tpu.memory_space<vmem>>, vector<6x32xf32>,
    %c60_150 = arith.constant 60 : index
    %c0_151 = arith.constant 0 : index
    %114 = vector.load %arg11[%c60_150, %c0_151] : memref<225x32xf32, #tpu.memory_space<vmem>>, vector<6x32xf32>
    %c6_152 = arith.constant 6 : index
    %c256_153 = arith.constant 256 : index
    %115 = vector.load %arg12[%c6_152, %c256_153] : memref<36x512xf32, #tpu.memory_space<vmem>>, vector<6x32xf32>
    tpu.vector_store %arg12[%c6_152, %c256_153], %114 {strides = array<i32>} : memref<36x512xf32, #tpu.memory_space<vmem>>, vector<6x32xf32>,
    %c90_154 = arith.constant 90 : index
    %c0_155 = arith.constant 0 : index
    %116 = vector.load %arg11[%c90_154, %c0_155] : memref<225x32xf32, #tpu.memory_space<vmem>>, vector<6x32xf32>
    %c12_156 = arith.constant 12 : index
    %c256_157 = arith.constant 256 : index
    %117 = vector.load %arg12[%c12_156, %c256_157] : memref<36x512xf32, #tpu.memory_space<vmem>>, vector<6x32xf32>
    tpu.vector_store %arg12[%c12_156, %c256_157], %116 {strides = array<i32>} : memref<36x512xf32, #tpu.memory_space<vmem>>, vector<6x32xf32>,
    %c120_158 = arith.constant 120 : index
    %c0_159 = arith.constant 0 : index
    %118 = vector.load %arg11[%c120_158, %c0_159] : memref<225x32xf32, #tpu.memory_space<vmem>>, vector<6x32xf32>
    %c18_160 = arith.constant 18 : index
    %c256_161 = arith.constant 256 : index
    %119 = vector.load %arg12[%c18_160, %c256_161] : memref<36x512xf32, #tpu.memory_space<vmem>>, vector<6x32xf32>
    tpu.vector_store %arg12[%c18_160, %c256_161], %118 {strides = array<i32>} : memref<36x512xf32, #tpu.memory_space<vmem>>, vector<6x32xf32>,
    %c150_162 = arith.constant 150 : index
    %c0_163 = arith.constant 0 : index
    %120 = vector.load %arg11[%c150_162, %c0_163] : memref<225x32xf32, #tpu.memory_space<vmem>>, vector<6x32xf32>
    %c24_164 = arith.constant 24 : index
    %c256_165 = arith.constant 256 : index
    %121 = vector.load %arg12[%c24_164, %c256_165] : memref<36x512xf32, #tpu.memory_space<vmem>>, vector<6x32xf32>
    tpu.vector_store %arg12[%c24_164, %c256_165], %120 {strides = array<i32>} : memref<36x512xf32, #tpu.memory_space<vmem>>, vector<6x32xf32>,
    %c180 = arith.constant 180 : index
    %c0_166 = arith.constant 0 : index
    %122 = vector.load %arg11[%c180, %c0_166] : memref<225x32xf32, #tpu.memory_space<vmem>>, vector<6x32xf32>
    %c30_167 = arith.constant 30 : index
    %c256_168 = arith.constant 256 : index
    %123 = vector.load %arg12[%c30_167, %c256_168] : memref<36x512xf32, #tpu.memory_space<vmem>>, vector<6x32xf32>
    tpu.vector_store %arg12[%c30_167, %c256_168], %122 {strides = array<i32>} : memref<36x512xf32, #tpu.memory_space<vmem>>, vector<6x32xf32>,
    %c38_169 = arith.constant 38 : index
    %c0_170 = arith.constant 0 : index
    %124 = vector.load %arg11[%c38_169, %c0_170] : memref<225x32xf32, #tpu.memory_space<vmem>>, vector<6x32xf32>
    %c0_171 = arith.constant 0 : index
    %c288 = arith.constant 288 : index
    %125 = vector.load %arg12[%c0_171, %c288] : memref<36x512xf32, #tpu.memory_space<vmem>>, vector<6x32xf32>
    tpu.vector_store %arg12[%c0_171, %c288], %124 {strides = array<i32>} : memref<36x512xf32, #tpu.memory_space<vmem>>, vector<6x32xf32>,
    %c68_172 = arith.constant 68 : index
    %c0_173 = arith.constant 0 : index
    %126 = vector.load %arg11[%c68_172, %c0_173] : memref<225x32xf32, #tpu.memory_space<vmem>>, vector<6x32xf32>
    %c6_174 = arith.constant 6 : index
    %c288_175 = arith.constant 288 : index
    %127 = vector.load %arg12[%c6_174, %c288_175] : memref<36x512xf32, #tpu.memory_space<vmem>>, vector<6x32xf32>
    tpu.vector_store %arg12[%c6_174, %c288_175], %126 {strides = array<i32>} : memref<36x512xf32, #tpu.memory_space<vmem>>, vector<6x32xf32>,
    %c98_176 = arith.constant 98 : index
    %c0_177 = arith.constant 0 : index
    %128 = vector.load %arg11[%c98_176, %c0_177] : memref<225x32xf32, #tpu.memory_space<vmem>>, vector<6x32xf32>
    %c12_178 = arith.constant 12 : index
    %c288_179 = arith.constant 288 : index
    %129 = vector.load %arg12[%c12_178, %c288_179] : memref<36x512xf32, #tpu.memory_space<vmem>>, vector<6x32xf32>
    tpu.vector_store %arg12[%c12_178, %c288_179], %128 {strides = array<i32>} : memref<36x512xf32, #tpu.memory_space<vmem>>, vector<6x32xf32>,
    %c128_180 = arith.constant 128 : index
    %c0_181 = arith.constant 0 : index
    %130 = vector.load %arg11[%c128_180, %c0_181] : memref<225x32xf32, #tpu.memory_space<vmem>>, vector<6x32xf32>
    %c18_182 = arith.constant 18 : index
    %c288_183 = arith.constant 288 : index
    %131 = vector.load %arg12[%c18_182, %c288_183] : memref<36x512xf32, #tpu.memory_space<vmem>>, vector<6x32xf32>
    tpu.vector_store %arg12[%c18_182, %c288_183], %130 {strides = array<i32>} : memref<36x512xf32, #tpu.memory_space<vmem>>, vector<6x32xf32>,
    %c158_184 = arith.constant 158 : index
    %c0_185 = arith.constant 0 : index
    %132 = vector.load %arg11[%c158_184, %c0_185] : memref<225x32xf32, #tpu.memory_space<vmem>>, vector<6x32xf32>
    %c24_186 = arith.constant 24 : index
    %c288_187 = arith.constant 288 : index
    %133 = vector.load %arg12[%c24_186, %c288_187] : memref<36x512xf32, #tpu.memory_space<vmem>>, vector<6x32xf32>
    tpu.vector_store %arg12[%c24_186, %c288_187], %132 {strides = array<i32>} : memref<36x512xf32, #tpu.memory_space<vmem>>, vector<6x32xf32>,
    %c188 = arith.constant 188 : index
    %c0_188 = arith.constant 0 : index
    %134 = vector.load %arg11[%c188, %c0_188] : memref<225x32xf32, #tpu.memory_space<vmem>>, vector<6x32xf32>
    %c30_189 = arith.constant 30 : index
    %c288_190 = arith.constant 288 : index
    %135 = vector.load %arg12[%c30_189, %c288_190] : memref<36x512xf32, #tpu.memory_space<vmem>>, vector<6x32xf32>
    tpu.vector_store %arg12[%c30_189, %c288_190], %134 {strides = array<i32>} : memref<36x512xf32, #tpu.memory_space<vmem>>, vector<6x32xf32>,
    %c31_191 = arith.constant 31 : index
    %c0_192 = arith.constant 0 : index
    %136 = vector.load %arg11[%c31_191, %c0_192] : memref<225x32xf32, #tpu.memory_space<vmem>>, vector<6x32xf32>
    %c0_193 = arith.constant 0 : index
    %c320 = arith.constant 320 : index
    %137 = vector.load %arg12[%c0_193, %c320] : memref<36x512xf32, #tpu.memory_space<vmem>>, vector<6x32xf32>
    tpu.vector_store %arg12[%c0_193, %c320], %136 {strides = array<i32>} : memref<36x512xf32, #tpu.memory_space<vmem>>, vector<6x32xf32>,
    %c61_194 = arith.constant 61 : index
    %c0_195 = arith.constant 0 : index
    %138 = vector.load %arg11[%c61_194, %c0_195] : memref<225x32xf32, #tpu.memory_space<vmem>>, vector<6x32xf32>
    %c6_196 = arith.constant 6 : index
    %c320_197 = arith.constant 320 : index
    %139 = vector.load %arg12[%c6_196, %c320_197] : memref<36x512xf32, #tpu.memory_space<vmem>>, vector<6x32xf32>
    tpu.vector_store %arg12[%c6_196, %c320_197], %138 {strides = array<i32>} : memref<36x512xf32, #tpu.memory_space<vmem>>, vector<6x32xf32>,
    %c91_198 = arith.constant 91 : index
    %c0_199 = arith.constant 0 : index
    %140 = vector.load %arg11[%c91_198, %c0_199] : memref<225x32xf32, #tpu.memory_space<vmem>>, vector<6x32xf32>
    %c12_200 = arith.constant 12 : index
    %c320_201 = arith.constant 320 : index
    %141 = vector.load %arg12[%c12_200, %c320_201] : memref<36x512xf32, #tpu.memory_space<vmem>>, vector<6x32xf32>
    tpu.vector_store %arg12[%c12_200, %c320_201], %140 {strides = array<i32>} : memref<36x512xf32, #tpu.memory_space<vmem>>, vector<6x32xf32>,
    %c121_202 = arith.constant 121 : index
    %c0_203 = arith.constant 0 : index
    %142 = vector.load %arg11[%c121_202, %c0_203] : memref<225x32xf32, #tpu.memory_space<vmem>>, vector<6x32xf32>
    %c18_204 = arith.constant 18 : index
    %c320_205 = arith.constant 320 : index
    %143 = vector.load %arg12[%c18_204, %c320_205] : memref<36x512xf32, #tpu.memory_space<vmem>>, vector<6x32xf32>
    tpu.vector_store %arg12[%c18_204, %c320_205], %142 {strides = array<i32>} : memref<36x512xf32, #tpu.memory_space<vmem>>, vector<6x32xf32>,
    %c151_206 = arith.constant 151 : index
    %c0_207 = arith.constant 0 : index
    %144 = vector.load %arg11[%c151_206, %c0_207] : memref<225x32xf32, #tpu.memory_space<vmem>>, vector<6x32xf32>
    %c24_208 = arith.constant 24 : index
    %c320_209 = arith.constant 320 : index
    %145 = vector.load %arg12[%c24_208, %c320_209] : memref<36x512xf32, #tpu.memory_space<vmem>>, vector<6x32xf32>
    tpu.vector_store %arg12[%c24_208, %c320_209], %144 {strides = array<i32>} : memref<36x512xf32, #tpu.memory_space<vmem>>, vector<6x32xf32>,
    %c181 = arith.constant 181 : index
    %c0_210 = arith.constant 0 : index
    %146 = vector.load %arg11[%c181, %c0_210] : memref<225x32xf32, #tpu.memory_space<vmem>>, vector<6x32xf32>
    %c30_211 = arith.constant 30 : index
    %c320_212 = arith.constant 320 : index
    %147 = vector.load %arg12[%c30_211, %c320_212] : memref<36x512xf32, #tpu.memory_space<vmem>>, vector<6x32xf32>
    tpu.vector_store %arg12[%c30_211, %c320_212], %146 {strides = array<i32>} : memref<36x512xf32, #tpu.memory_space<vmem>>, vector<6x32xf32>,
    %c39_213 = arith.constant 39 : index
    %c0_214 = arith.constant 0 : index
    %148 = vector.load %arg11[%c39_213, %c0_214] : memref<225x32xf32, #tpu.memory_space<vmem>>, vector<6x32xf32>
    %c0_215 = arith.constant 0 : index
    %c352 = arith.constant 352 : index
    %149 = vector.load %arg12[%c0_215, %c352] : memref<36x512xf32, #tpu.memory_space<vmem>>, vector<6x32xf32>
    tpu.vector_store %arg12[%c0_215, %c352], %148 {strides = array<i32>} : memref<36x512xf32, #tpu.memory_space<vmem>>, vector<6x32xf32>,
    %c69_216 = arith.constant 69 : index
    %c0_217 = arith.constant 0 : index
    %150 = vector.load %arg11[%c69_216, %c0_217] : memref<225x32xf32, #tpu.memory_space<vmem>>, vector<6x32xf32>
    %c6_218 = arith.constant 6 : index
    %c352_219 = arith.constant 352 : index
    %151 = vector.load %arg12[%c6_218, %c352_219] : memref<36x512xf32, #tpu.memory_space<vmem>>, vector<6x32xf32>
    tpu.vector_store %arg12[%c6_218, %c352_219], %150 {strides = array<i32>} : memref<36x512xf32, #tpu.memory_space<vmem>>, vector<6x32xf32>,
    %c99_220 = arith.constant 99 : index
    %c0_221 = arith.constant 0 : index
    %152 = vector.load %arg11[%c99_220, %c0_221] : memref<225x32xf32, #tpu.memory_space<vmem>>, vector<6x32xf32>
    %c12_222 = arith.constant 12 : index
    %c352_223 = arith.constant 352 : index
    %153 = vector.load %arg12[%c12_222, %c352_223] : memref<36x512xf32, #tpu.memory_space<vmem>>, vector<6x32xf32>
    tpu.vector_store %arg12[%c12_222, %c352_223], %152 {strides = array<i32>} : memref<36x512xf32, #tpu.memory_space<vmem>>, vector<6x32xf32>,
    %c129_224 = arith.constant 129 : index
    %c0_225 = arith.constant 0 : index
    %154 = vector.load %arg11[%c129_224, %c0_225] : memref<225x32xf32, #tpu.memory_space<vmem>>, vector<6x32xf32>
    %c18_226 = arith.constant 18 : index
    %c352_227 = arith.constant 352 : index
    %155 = vector.load %arg12[%c18_226, %c352_227] : memref<36x512xf32, #tpu.memory_space<vmem>>, vector<6x32xf32>
    tpu.vector_store %arg12[%c18_226, %c352_227], %154 {strides = array<i32>} : memref<36x512xf32, #tpu.memory_space<vmem>>, vector<6x32xf32>,
    %c159_228 = arith.constant 159 : index
    %c0_229 = arith.constant 0 : index
    %156 = vector.load %arg11[%c159_228, %c0_229] : memref<225x32xf32, #tpu.memory_space<vmem>>, vector<6x32xf32>
    %c24_230 = arith.constant 24 : index
    %c352_231 = arith.constant 352 : index
    %157 = vector.load %arg12[%c24_230, %c352_231] : memref<36x512xf32, #tpu.memory_space<vmem>>, vector<6x32xf32>
    tpu.vector_store %arg12[%c24_230, %c352_231], %156 {strides = array<i32>} : memref<36x512xf32, #tpu.memory_space<vmem>>, vector<6x32xf32>,
    %c189 = arith.constant 189 : index
    %c0_232 = arith.constant 0 : index
    %158 = vector.load %arg11[%c189, %c0_232] : memref<225x32xf32, #tpu.memory_space<vmem>>, vector<6x32xf32>
    %c30_233 = arith.constant 30 : index
    %c352_234 = arith.constant 352 : index
    %159 = vector.load %arg12[%c30_233, %c352_234] : memref<36x512xf32, #tpu.memory_space<vmem>>, vector<6x32xf32>
    tpu.vector_store %arg12[%c30_233, %c352_234], %158 {strides = array<i32>} : memref<36x512xf32, #tpu.memory_space<vmem>>, vector<6x32xf32>,
    %c45_235 = arith.constant 45 : index
    %c0_236 = arith.constant 0 : index
    %160 = vector.load %arg11[%c45_235, %c0_236] : memref<225x32xf32, #tpu.memory_space<vmem>>, vector<6x32xf32>
    %c0_237 = arith.constant 0 : index
    %c384 = arith.constant 384 : index
    %161 = vector.load %arg12[%c0_237, %c384] : memref<36x512xf32, #tpu.memory_space<vmem>>, vector<6x32xf32>
    tpu.vector_store %arg12[%c0_237, %c384], %160 {strides = array<i32>} : memref<36x512xf32, #tpu.memory_space<vmem>>, vector<6x32xf32>,
    %c75_238 = arith.constant 75 : index
    %c0_239 = arith.constant 0 : index
    %162 = vector.load %arg11[%c75_238, %c0_239] : memref<225x32xf32, #tpu.memory_space<vmem>>, vector<6x32xf32>
    %c6_240 = arith.constant 6 : index
    %c384_241 = arith.constant 384 : index
    %163 = vector.load %arg12[%c6_240, %c384_241] : memref<36x512xf32, #tpu.memory_space<vmem>>, vector<6x32xf32>
    tpu.vector_store %arg12[%c6_240, %c384_241], %162 {strides = array<i32>} : memref<36x512xf32, #tpu.memory_space<vmem>>, vector<6x32xf32>,
    %c105_242 = arith.constant 105 : index
    %c0_243 = arith.constant 0 : index
    %164 = vector.load %arg11[%c105_242, %c0_243] : memref<225x32xf32, #tpu.memory_space<vmem>>, vector<6x32xf32>
    %c12_244 = arith.constant 12 : index
    %c384_245 = arith.constant 384 : index
    %165 = vector.load %arg12[%c12_244, %c384_245] : memref<36x512xf32, #tpu.memory_space<vmem>>, vector<6x32xf32>
    tpu.vector_store %arg12[%c12_244, %c384_245], %164 {strides = array<i32>} : memref<36x512xf32, #tpu.memory_space<vmem>>, vector<6x32xf32>,
    %c135_246 = arith.constant 135 : index
    %c0_247 = arith.constant 0 : index
    %166 = vector.load %arg11[%c135_246, %c0_247] : memref<225x32xf32, #tpu.memory_space<vmem>>, vector<6x32xf32>
    %c18_248 = arith.constant 18 : index
    %c384_249 = arith.constant 384 : index
    %167 = vector.load %arg12[%c18_248, %c384_249] : memref<36x512xf32, #tpu.memory_space<vmem>>, vector<6x32xf32>
    tpu.vector_store %arg12[%c18_248, %c384_249], %166 {strides = array<i32>} : memref<36x512xf32, #tpu.memory_space<vmem>>, vector<6x32xf32>,
    %c165_250 = arith.constant 165 : index
    %c0_251 = arith.constant 0 : index
    %168 = vector.load %arg11[%c165_250, %c0_251] : memref<225x32xf32, #tpu.memory_space<vmem>>, vector<6x32xf32>
    %c24_252 = arith.constant 24 : index
    %c384_253 = arith.constant 384 : index
    %169 = vector.load %arg12[%c24_252, %c384_253] : memref<36x512xf32, #tpu.memory_space<vmem>>, vector<6x32xf32>
    tpu.vector_store %arg12[%c24_252, %c384_253], %168 {strides = array<i32>} : memref<36x512xf32, #tpu.memory_space<vmem>>, vector<6x32xf32>,
    %c195 = arith.constant 195 : index
    %c0_254 = arith.constant 0 : index
    %170 = vector.load %arg11[%c195, %c0_254] : memref<225x32xf32, #tpu.memory_space<vmem>>, vector<6x32xf32>
    %c30_255 = arith.constant 30 : index
    %c384_256 = arith.constant 384 : index
    %171 = vector.load %arg12[%c30_255, %c384_256] : memref<36x512xf32, #tpu.memory_space<vmem>>, vector<6x32xf32>
    tpu.vector_store %arg12[%c30_255, %c384_256], %170 {strides = array<i32>} : memref<36x512xf32, #tpu.memory_space<vmem>>, vector<6x32xf32>,
    %c53_257 = arith.constant 53 : index
    %c0_258 = arith.constant 0 : index
    %172 = vector.load %arg11[%c53_257, %c0_258] : memref<225x32xf32, #tpu.memory_space<vmem>>, vector<6x32xf32>
    %c0_259 = arith.constant 0 : index
    %c416 = arith.constant 416 : index
    %173 = vector.load %arg12[%c0_259, %c416] : memref<36x512xf32, #tpu.memory_space<vmem>>, vector<6x32xf32>
    tpu.vector_store %arg12[%c0_259, %c416], %172 {strides = array<i32>} : memref<36x512xf32, #tpu.memory_space<vmem>>, vector<6x32xf32>,
    %c83_260 = arith.constant 83 : index
    %c0_261 = arith.constant 0 : index
    %174 = vector.load %arg11[%c83_260, %c0_261] : memref<225x32xf32, #tpu.memory_space<vmem>>, vector<6x32xf32>
    %c6_262 = arith.constant 6 : index
    %c416_263 = arith.constant 416 : index
    %175 = vector.load %arg12[%c6_262, %c416_263] : memref<36x512xf32, #tpu.memory_space<vmem>>, vector<6x32xf32>
    tpu.vector_store %arg12[%c6_262, %c416_263], %174 {strides = array<i32>} : memref<36x512xf32, #tpu.memory_space<vmem>>, vector<6x32xf32>,
    %c113_264 = arith.constant 113 : index
    %c0_265 = arith.constant 0 : index
    %176 = vector.load %arg11[%c113_264, %c0_265] : memref<225x32xf32, #tpu.memory_space<vmem>>, vector<6x32xf32>
    %c12_266 = arith.constant 12 : index
    %c416_267 = arith.constant 416 : index
    %177 = vector.load %arg12[%c12_266, %c416_267] : memref<36x512xf32, #tpu.memory_space<vmem>>, vector<6x32xf32>
    tpu.vector_store %arg12[%c12_266, %c416_267], %176 {strides = array<i32>} : memref<36x512xf32, #tpu.memory_space<vmem>>, vector<6x32xf32>,
    %c143_268 = arith.constant 143 : index
    %c0_269 = arith.constant 0 : index
    %178 = vector.load %arg11[%c143_268, %c0_269] : memref<225x32xf32, #tpu.memory_space<vmem>>, vector<6x32xf32>
    %c18_270 = arith.constant 18 : index
    %c416_271 = arith.constant 416 : index
    %179 = vector.load %arg12[%c18_270, %c416_271] : memref<36x512xf32, #tpu.memory_space<vmem>>, vector<6x32xf32>
    tpu.vector_store %arg12[%c18_270, %c416_271], %178 {strides = array<i32>} : memref<36x512xf32, #tpu.memory_space<vmem>>, vector<6x32xf32>,
    %c173_272 = arith.constant 173 : index
    %c0_273 = arith.constant 0 : index
    %180 = vector.load %arg11[%c173_272, %c0_273] : memref<225x32xf32, #tpu.memory_space<vmem>>, vector<6x32xf32>
    %c24_274 = arith.constant 24 : index
    %c416_275 = arith.constant 416 : index
    %181 = vector.load %arg12[%c24_274, %c416_275] : memref<36x512xf32, #tpu.memory_space<vmem>>, vector<6x32xf32>
    tpu.vector_store %arg12[%c24_274, %c416_275], %180 {strides = array<i32>} : memref<36x512xf32, #tpu.memory_space<vmem>>, vector<6x32xf32>,
    %c203 = arith.constant 203 : index
    %c0_276 = arith.constant 0 : index
    %182 = vector.load %arg11[%c203, %c0_276] : memref<225x32xf32, #tpu.memory_space<vmem>>, vector<6x32xf32>
    %c30_277 = arith.constant 30 : index
    %c416_278 = arith.constant 416 : index
    %183 = vector.load %arg12[%c30_277, %c416_278] : memref<36x512xf32, #tpu.memory_space<vmem>>, vector<6x32xf32>
    tpu.vector_store %arg12[%c30_277, %c416_278], %182 {strides = array<i32>} : memref<36x512xf32, #tpu.memory_space<vmem>>, vector<6x32xf32>,
    %c46_279 = arith.constant 46 : index
    %c0_280 = arith.constant 0 : index
    %184 = vector.load %arg11[%c46_279, %c0_280] : memref<225x32xf32, #tpu.memory_space<vmem>>, vector<6x32xf32>
    %c0_281 = arith.constant 0 : index
    %c448 = arith.constant 448 : index
    %185 = vector.load %arg12[%c0_281, %c448] : memref<36x512xf32, #tpu.memory_space<vmem>>, vector<6x32xf32>
    tpu.vector_store %arg12[%c0_281, %c448], %184 {strides = array<i32>} : memref<36x512xf32, #tpu.memory_space<vmem>>, vector<6x32xf32>,
    %c76_282 = arith.constant 76 : index
    %c0_283 = arith.constant 0 : index
    %186 = vector.load %arg11[%c76_282, %c0_283] : memref<225x32xf32, #tpu.memory_space<vmem>>, vector<6x32xf32>
    %c6_284 = arith.constant 6 : index
    %c448_285 = arith.constant 448 : index
    %187 = vector.load %arg12[%c6_284, %c448_285] : memref<36x512xf32, #tpu.memory_space<vmem>>, vector<6x32xf32>
    tpu.vector_store %arg12[%c6_284, %c448_285], %186 {strides = array<i32>} : memref<36x512xf32, #tpu.memory_space<vmem>>, vector<6x32xf32>,
    %c106_286 = arith.constant 106 : index
    %c0_287 = arith.constant 0 : index
    %188 = vector.load %arg11[%c106_286, %c0_287] : memref<225x32xf32, #tpu.memory_space<vmem>>, vector<6x32xf32>
    %c12_288 = arith.constant 12 : index
    %c448_289 = arith.constant 448 : index
    %189 = vector.load %arg12[%c12_288, %c448_289] : memref<36x512xf32, #tpu.memory_space<vmem>>, vector<6x32xf32>
    tpu.vector_store %arg12[%c12_288, %c448_289], %188 {strides = array<i32>} : memref<36x512xf32, #tpu.memory_space<vmem>>, vector<6x32xf32>,
    %c136_290 = arith.constant 136 : index
    %c0_291 = arith.constant 0 : index
    %190 = vector.load %arg11[%c136_290, %c0_291] : memref<225x32xf32, #tpu.memory_space<vmem>>, vector<6x32xf32>
    %c18_292 = arith.constant 18 : index
    %c448_293 = arith.constant 448 : index
    %191 = vector.load %arg12[%c18_292, %c448_293] : memref<36x512xf32, #tpu.memory_space<vmem>>, vector<6x32xf32>
    tpu.vector_store %arg12[%c18_292, %c448_293], %190 {strides = array<i32>} : memref<36x512xf32, #tpu.memory_space<vmem>>, vector<6x32xf32>,
    %c166_294 = arith.constant 166 : index
    %c0_295 = arith.constant 0 : index
    %192 = vector.load %arg11[%c166_294, %c0_295] : memref<225x32xf32, #tpu.memory_space<vmem>>, vector<6x32xf32>
    %c24_296 = arith.constant 24 : index
    %c448_297 = arith.constant 448 : index
    %193 = vector.load %arg12[%c24_296, %c448_297] : memref<36x512xf32, #tpu.memory_space<vmem>>, vector<6x32xf32>
    tpu.vector_store %arg12[%c24_296, %c448_297], %192 {strides = array<i32>} : memref<36x512xf32, #tpu.memory_space<vmem>>, vector<6x32xf32>,
    %c196 = arith.constant 196 : index
    %c0_298 = arith.constant 0 : index
    %194 = vector.load %arg11[%c196, %c0_298] : memref<225x32xf32, #tpu.memory_space<vmem>>, vector<6x32xf32>
    %c30_299 = arith.constant 30 : index
    %c448_300 = arith.constant 448 : index
    %195 = vector.load %arg12[%c30_299, %c448_300] : memref<36x512xf32, #tpu.memory_space<vmem>>, vector<6x32xf32>
    tpu.vector_store %arg12[%c30_299, %c448_300], %194 {strides = array<i32>} : memref<36x512xf32, #tpu.memory_space<vmem>>, vector<6x32xf32>,
    %c54_301 = arith.constant 54 : index
    %c0_302 = arith.constant 0 : index
    %196 = vector.load %arg11[%c54_301, %c0_302] : memref<225x32xf32, #tpu.memory_space<vmem>>, vector<6x32xf32>
    %c0_303 = arith.constant 0 : index
    %c480 = arith.constant 480 : index
    %197 = vector.load %arg12[%c0_303, %c480] : memref<36x512xf32, #tpu.memory_space<vmem>>, vector<6x32xf32>
    tpu.vector_store %arg12[%c0_303, %c480], %196 {strides = array<i32>} : memref<36x512xf32, #tpu.memory_space<vmem>>, vector<6x32xf32>,
    %c84_304 = arith.constant 84 : index
    %c0_305 = arith.constant 0 : index
    %198 = vector.load %arg11[%c84_304, %c0_305] : memref<225x32xf32, #tpu.memory_space<vmem>>, vector<6x32xf32>
    %c6_306 = arith.constant 6 : index
    %c480_307 = arith.constant 480 : index
    %199 = vector.load %arg12[%c6_306, %c480_307] : memref<36x512xf32, #tpu.memory_space<vmem>>, vector<6x32xf32>
    tpu.vector_store %arg12[%c6_306, %c480_307], %198 {strides = array<i32>} : memref<36x512xf32, #tpu.memory_space<vmem>>, vector<6x32xf32>,
    %c114_308 = arith.constant 114 : index
    %c0_309 = arith.constant 0 : index
    %200 = vector.load %arg11[%c114_308, %c0_309] : memref<225x32xf32, #tpu.memory_space<vmem>>, vector<6x32xf32>
    %c12_310 = arith.constant 12 : index
    %c480_311 = arith.constant 480 : index
    %201 = vector.load %arg12[%c12_310, %c480_311] : memref<36x512xf32, #tpu.memory_space<vmem>>, vector<6x32xf32>
    tpu.vector_store %arg12[%c12_310, %c480_311], %200 {strides = array<i32>} : memref<36x512xf32, #tpu.memory_space<vmem>>, vector<6x32xf32>,
    %c144_312 = arith.constant 144 : index
    %c0_313 = arith.constant 0 : index
    %202 = vector.load %arg11[%c144_312, %c0_313] : memref<225x32xf32, #tpu.memory_space<vmem>>, vector<6x32xf32>
    %c18_314 = arith.constant 18 : index
    %c480_315 = arith.constant 480 : index
    %203 = vector.load %arg12[%c18_314, %c480_315] : memref<36x512xf32, #tpu.memory_space<vmem>>, vector<6x32xf32>
    tpu.vector_store %arg12[%c18_314, %c480_315], %202 {strides = array<i32>} : memref<36x512xf32, #tpu.memory_space<vmem>>, vector<6x32xf32>,
    %c174_316 = arith.constant 174 : index
    %c0_317 = arith.constant 0 : index
    %204 = vector.load %arg11[%c174_316, %c0_317] : memref<225x32xf32, #tpu.memory_space<vmem>>, vector<6x32xf32>
    %c24_318 = arith.constant 24 : index
    %c480_319 = arith.constant 480 : index
    %205 = vector.load %arg12[%c24_318, %c480_319] : memref<36x512xf32, #tpu.memory_space<vmem>>, vector<6x32xf32>
    tpu.vector_store %arg12[%c24_318, %c480_319], %204 {strides = array<i32>} : memref<36x512xf32, #tpu.memory_space<vmem>>, vector<6x32xf32>,
    %c204 = arith.constant 204 : index
    %c0_320 = arith.constant 0 : index
    %206 = vector.load %arg11[%c204, %c0_320] : memref<225x32xf32, #tpu.memory_space<vmem>>, vector<6x32xf32>
    %c30_321 = arith.constant 30 : index
    %c480_322 = arith.constant 480 : index
    %207 = vector.load %arg12[%c30_321, %c480_322] : memref<36x512xf32, #tpu.memory_space<vmem>>, vector<6x32xf32>
    tpu.vector_store %arg12[%c30_321, %c480_322], %206 {strides = array<i32>} : memref<36x512xf32, #tpu.memory_space<vmem>>, vector<6x32xf32>,
    %c0_323 = arith.constant 0 : index
    %c0_324 = arith.constant 0 : index
    %208 = vector.load %arg12[%c0_323, %c0_324] : memref<36x512xf32, #tpu.memory_space<vmem>>, vector<36x512xf32>
    %c0_325 = arith.constant 0 : index
    %c0_326 = arith.constant 0 : index
    %209 = vector.load %arg4[%c0_325, %c0_326] : memref<512x64xf32, #tpu.memory_space<vmem>>, vector<512x64xf32>
    %cst_327 = arith.constant dense<0.000000e+00> : vector<36x64xf32>
    %210 = tpu.matmul %208, %209, %cst_327 {dimension_numbers = #tpu.dot_dimension_numbers<[1], [0], [0], [1], [0, 0, 1, 1], [], []>} : vector<36x512xf32>, vector<512x64xf32>, vector<36x64xf32> -> vector<36x64xf32>
    %c0_328 = arith.constant 0 : index
    %c0_329 = arith.constant 0 : index
    %211 = vector.load %arg5[%c0_328, %c0_329] : memref<1x64xf32, #tpu.memory_space<vmem>>, vector<1x64xf32>
    %212 = vector.broadcast %211 : vector<1x64xf32> to vector<36x64xf32>
    %213 = arith.addf %210, %212 : vector<36x64xf32>
    %cst_330 = arith.constant 0.000000e+00 : f32
    %214 = vector.broadcast %cst_330 : f32 to vector<36x64xf32>
    %215 = arith.subf %214, %213 : vector<36x64xf32>
    %216 = math.exp %215 : vector<36x64xf32>
    %cst_331 = arith.constant 1.000000e+00 : f32
    %217 = vector.broadcast %cst_331 : f32 to vector<36x64xf32>
    %218 = arith.addf %217, %216 : vector<36x64xf32>
    %cst_332 = arith.constant 1.000000e+00 : f32
    %219 = vector.broadcast %cst_332 : f32 to vector<36x64xf32>
    %220 = arith.divf %219, %218 : vector<36x64xf32>
    %221 = arith.mulf %213, %220 : vector<36x64xf32>
    %c0_333 = arith.constant 0 : index
    %c0_334 = arith.constant 0 : index
    %222 = vector.load %arg13[%c0_333, %c0_334] : memref<36x64xf32, #tpu.memory_space<vmem>>, vector<36x64xf32>
    tpu.vector_store %arg13[%c0_333, %c0_334], %221 {strides = array<i32>} : memref<36x64xf32, #tpu.memory_space<vmem>>, vector<36x64xf32>,
    %c0_335 = arith.constant 0 : index
    %c0_336 = arith.constant 0 : index
    %223 = vector.load %arg13[%c0_335, %c0_336] : memref<36x64xf32, #tpu.memory_space<vmem>>, vector<4x64xf32>
    %c0_337 = arith.constant 0 : index
    %c0_338 = arith.constant 0 : index
    %224 = vector.load %arg14[%c0_337, %c0_338] : memref<16x576xf32, #tpu.memory_space<vmem>>, vector<4x64xf32>
    tpu.vector_store %arg14[%c0_337, %c0_338], %223 {strides = array<i32>} : memref<16x576xf32, #tpu.memory_space<vmem>>, vector<4x64xf32>,
    %c6_339 = arith.constant 6 : index
    %c0_340 = arith.constant 0 : index
    %225 = vector.load %arg13[%c6_339, %c0_340] : memref<36x64xf32, #tpu.memory_space<vmem>>, vector<4x64xf32>
    %c4 = arith.constant 4 : index
    %c0_341 = arith.constant 0 : index
    %226 = vector.load %arg14[%c4, %c0_341] : memref<16x576xf32, #tpu.memory_space<vmem>>, vector<4x64xf32>
    tpu.vector_store %arg14[%c4, %c0_341], %225 {strides = array<i32>} : memref<16x576xf32, #tpu.memory_space<vmem>>, vector<4x64xf32>,
    %c12_342 = arith.constant 12 : index
    %c0_343 = arith.constant 0 : index
    %227 = vector.load %arg13[%c12_342, %c0_343] : memref<36x64xf32, #tpu.memory_space<vmem>>, vector<4x64xf32>
    %c8_344 = arith.constant 8 : index
    %c0_345 = arith.constant 0 : index
    %228 = vector.load %arg14[%c8_344, %c0_345] : memref<16x576xf32, #tpu.memory_space<vmem>>, vector<4x64xf32>
    tpu.vector_store %arg14[%c8_344, %c0_345], %227 {strides = array<i32>} : memref<16x576xf32, #tpu.memory_space<vmem>>, vector<4x64xf32>,
    %c18_346 = arith.constant 18 : index
    %c0_347 = arith.constant 0 : index
    %229 = vector.load %arg13[%c18_346, %c0_347] : memref<36x64xf32, #tpu.memory_space<vmem>>, vector<4x64xf32>
    %c12_348 = arith.constant 12 : index
    %c0_349 = arith.constant 0 : index
    %230 = vector.load %arg14[%c12_348, %c0_349] : memref<16x576xf32, #tpu.memory_space<vmem>>, vector<4x64xf32>
    tpu.vector_store %arg14[%c12_348, %c0_349], %229 {strides = array<i32>} : memref<16x576xf32, #tpu.memory_space<vmem>>, vector<4x64xf32>,
    %c1_350 = arith.constant 1 : index
    %c0_351 = arith.constant 0 : index
    %231 = vector.load %arg13[%c1_350, %c0_351] : memref<36x64xf32, #tpu.memory_space<vmem>>, vector<4x64xf32>
    %c0_352 = arith.constant 0 : index
    %c64_353 = arith.constant 64 : index
    %232 = vector.load %arg14[%c0_352, %c64_353] : memref<16x576xf32, #tpu.memory_space<vmem>>, vector<4x64xf32>
    tpu.vector_store %arg14[%c0_352, %c64_353], %231 {strides = array<i32>} : memref<16x576xf32, #tpu.memory_space<vmem>>, vector<4x64xf32>,
    %c7 = arith.constant 7 : index
    %c0_354 = arith.constant 0 : index
    %233 = vector.load %arg13[%c7, %c0_354] : memref<36x64xf32, #tpu.memory_space<vmem>>, vector<4x64xf32>
    %c4_355 = arith.constant 4 : index
    %c64_356 = arith.constant 64 : index
    %234 = vector.load %arg14[%c4_355, %c64_356] : memref<16x576xf32, #tpu.memory_space<vmem>>, vector<4x64xf32>
    tpu.vector_store %arg14[%c4_355, %c64_356], %233 {strides = array<i32>} : memref<16x576xf32, #tpu.memory_space<vmem>>, vector<4x64xf32>,
    %c13 = arith.constant 13 : index
    %c0_357 = arith.constant 0 : index
    %235 = vector.load %arg13[%c13, %c0_357] : memref<36x64xf32, #tpu.memory_space<vmem>>, vector<4x64xf32>
    %c8_358 = arith.constant 8 : index
    %c64_359 = arith.constant 64 : index
    %236 = vector.load %arg14[%c8_358, %c64_359] : memref<16x576xf32, #tpu.memory_space<vmem>>, vector<4x64xf32>
    tpu.vector_store %arg14[%c8_358, %c64_359], %235 {strides = array<i32>} : memref<16x576xf32, #tpu.memory_space<vmem>>, vector<4x64xf32>,
    %c19 = arith.constant 19 : index
    %c0_360 = arith.constant 0 : index
    %237 = vector.load %arg13[%c19, %c0_360] : memref<36x64xf32, #tpu.memory_space<vmem>>, vector<4x64xf32>
    %c12_361 = arith.constant 12 : index
    %c64_362 = arith.constant 64 : index
    %238 = vector.load %arg14[%c12_361, %c64_362] : memref<16x576xf32, #tpu.memory_space<vmem>>, vector<4x64xf32>
    tpu.vector_store %arg14[%c12_361, %c64_362], %237 {strides = array<i32>} : memref<16x576xf32, #tpu.memory_space<vmem>>, vector<4x64xf32>,
    %c2 = arith.constant 2 : index
    %c0_363 = arith.constant 0 : index
    %239 = vector.load %arg13[%c2, %c0_363] : memref<36x64xf32, #tpu.memory_space<vmem>>, vector<4x64xf32>
    %c0_364 = arith.constant 0 : index
    %c128_365 = arith.constant 128 : index
    %240 = vector.load %arg14[%c0_364, %c128_365] : memref<16x576xf32, #tpu.memory_space<vmem>>, vector<4x64xf32>
    tpu.vector_store %arg14[%c0_364, %c128_365], %239 {strides = array<i32>} : memref<16x576xf32, #tpu.memory_space<vmem>>, vector<4x64xf32>,
    %c8_366 = arith.constant 8 : index
    %c0_367 = arith.constant 0 : index
    %241 = vector.load %arg13[%c8_366, %c0_367] : memref<36x64xf32, #tpu.memory_space<vmem>>, vector<4x64xf32>
    %c4_368 = arith.constant 4 : index
    %c128_369 = arith.constant 128 : index
    %242 = vector.load %arg14[%c4_368, %c128_369] : memref<16x576xf32, #tpu.memory_space<vmem>>, vector<4x64xf32>
    tpu.vector_store %arg14[%c4_368, %c128_369], %241 {strides = array<i32>} : memref<16x576xf32, #tpu.memory_space<vmem>>, vector<4x64xf32>,
    %c14 = arith.constant 14 : index
    %c0_370 = arith.constant 0 : index
    %243 = vector.load %arg13[%c14, %c0_370] : memref<36x64xf32, #tpu.memory_space<vmem>>, vector<4x64xf32>
    %c8_371 = arith.constant 8 : index
    %c128_372 = arith.constant 128 : index
    %244 = vector.load %arg14[%c8_371, %c128_372] : memref<16x576xf32, #tpu.memory_space<vmem>>, vector<4x64xf32>
    tpu.vector_store %arg14[%c8_371, %c128_372], %243 {strides = array<i32>} : memref<16x576xf32, #tpu.memory_space<vmem>>, vector<4x64xf32>,
    %c20 = arith.constant 20 : index
    %c0_373 = arith.constant 0 : index
    %245 = vector.load %arg13[%c20, %c0_373] : memref<36x64xf32, #tpu.memory_space<vmem>>, vector<4x64xf32>
    %c12_374 = arith.constant 12 : index
    %c128_375 = arith.constant 128 : index
    %246 = vector.load %arg14[%c12_374, %c128_375] : memref<16x576xf32, #tpu.memory_space<vmem>>, vector<4x64xf32>
    tpu.vector_store %arg14[%c12_374, %c128_375], %245 {strides = array<i32>} : memref<16x576xf32, #tpu.memory_space<vmem>>, vector<4x64xf32>,
    %c6_376 = arith.constant 6 : index
    %c0_377 = arith.constant 0 : index
    %247 = vector.load %arg13[%c6_376, %c0_377] : memref<36x64xf32, #tpu.memory_space<vmem>>, vector<4x64xf32>
    %c0_378 = arith.constant 0 : index
    %c192_379 = arith.constant 192 : index
    %248 = vector.load %arg14[%c0_378, %c192_379] : memref<16x576xf32, #tpu.memory_space<vmem>>, vector<4x64xf32>
    tpu.vector_store %arg14[%c0_378, %c192_379], %247 {strides = array<i32>} : memref<16x576xf32, #tpu.memory_space<vmem>>, vector<4x64xf32>,
    %c12_380 = arith.constant 12 : index
    %c0_381 = arith.constant 0 : index
    %249 = vector.load %arg13[%c12_380, %c0_381] : memref<36x64xf32, #tpu.memory_space<vmem>>, vector<4x64xf32>
    %c4_382 = arith.constant 4 : index
    %c192_383 = arith.constant 192 : index
    %250 = vector.load %arg14[%c4_382, %c192_383] : memref<16x576xf32, #tpu.memory_space<vmem>>, vector<4x64xf32>
    tpu.vector_store %arg14[%c4_382, %c192_383], %249 {strides = array<i32>} : memref<16x576xf32, #tpu.memory_space<vmem>>, vector<4x64xf32>,
    %c18_384 = arith.constant 18 : index
    %c0_385 = arith.constant 0 : index
    %251 = vector.load %arg13[%c18_384, %c0_385] : memref<36x64xf32, #tpu.memory_space<vmem>>, vector<4x64xf32>
    %c8_386 = arith.constant 8 : index
    %c192_387 = arith.constant 192 : index
    %252 = vector.load %arg14[%c8_386, %c192_387] : memref<16x576xf32, #tpu.memory_space<vmem>>, vector<4x64xf32>
    tpu.vector_store %arg14[%c8_386, %c192_387], %251 {strides = array<i32>} : memref<16x576xf32, #tpu.memory_space<vmem>>, vector<4x64xf32>,
    %c24_388 = arith.constant 24 : index
    %c0_389 = arith.constant 0 : index
    %253 = vector.load %arg13[%c24_388, %c0_389] : memref<36x64xf32, #tpu.memory_space<vmem>>, vector<4x64xf32>
    %c12_390 = arith.constant 12 : index
    %c192_391 = arith.constant 192 : index
    %254 = vector.load %arg14[%c12_390, %c192_391] : memref<16x576xf32, #tpu.memory_space<vmem>>, vector<4x64xf32>
    tpu.vector_store %arg14[%c12_390, %c192_391], %253 {strides = array<i32>} : memref<16x576xf32, #tpu.memory_space<vmem>>, vector<4x64xf32>,
    %c7_392 = arith.constant 7 : index
    %c0_393 = arith.constant 0 : index
    %255 = vector.load %arg13[%c7_392, %c0_393] : memref<36x64xf32, #tpu.memory_space<vmem>>, vector<4x64xf32>
    %c0_394 = arith.constant 0 : index
    %c256_395 = arith.constant 256 : index
    %256 = vector.load %arg14[%c0_394, %c256_395] : memref<16x576xf32, #tpu.memory_space<vmem>>, vector<4x64xf32>
    tpu.vector_store %arg14[%c0_394, %c256_395], %255 {strides = array<i32>} : memref<16x576xf32, #tpu.memory_space<vmem>>, vector<4x64xf32>,
    %c13_396 = arith.constant 13 : index
    %c0_397 = arith.constant 0 : index
    %257 = vector.load %arg13[%c13_396, %c0_397] : memref<36x64xf32, #tpu.memory_space<vmem>>, vector<4x64xf32>
    %c4_398 = arith.constant 4 : index
    %c256_399 = arith.constant 256 : index
    %258 = vector.load %arg14[%c4_398, %c256_399] : memref<16x576xf32, #tpu.memory_space<vmem>>, vector<4x64xf32>
    tpu.vector_store %arg14[%c4_398, %c256_399], %257 {strides = array<i32>} : memref<16x576xf32, #tpu.memory_space<vmem>>, vector<4x64xf32>,
    %c19_400 = arith.constant 19 : index
    %c0_401 = arith.constant 0 : index
    %259 = vector.load %arg13[%c19_400, %c0_401] : memref<36x64xf32, #tpu.memory_space<vmem>>, vector<4x64xf32>
    %c8_402 = arith.constant 8 : index
    %c256_403 = arith.constant 256 : index
    %260 = vector.load %arg14[%c8_402, %c256_403] : memref<16x576xf32, #tpu.memory_space<vmem>>, vector<4x64xf32>
    tpu.vector_store %arg14[%c8_402, %c256_403], %259 {strides = array<i32>} : memref<16x576xf32, #tpu.memory_space<vmem>>, vector<4x64xf32>,
    %c25 = arith.constant 25 : index
    %c0_404 = arith.constant 0 : index
    %261 = vector.load %arg13[%c25, %c0_404] : memref<36x64xf32, #tpu.memory_space<vmem>>, vector<4x64xf32>
    %c12_405 = arith.constant 12 : index
    %c256_406 = arith.constant 256 : index
    %262 = vector.load %arg14[%c12_405, %c256_406] : memref<16x576xf32, #tpu.memory_space<vmem>>, vector<4x64xf32>
    tpu.vector_store %arg14[%c12_405, %c256_406], %261 {strides = array<i32>} : memref<16x576xf32, #tpu.memory_space<vmem>>, vector<4x64xf32>,
    %c8_407 = arith.constant 8 : index
    %c0_408 = arith.constant 0 : index
    %263 = vector.load %arg13[%c8_407, %c0_408] : memref<36x64xf32, #tpu.memory_space<vmem>>, vector<4x64xf32>
    %c0_409 = arith.constant 0 : index
    %c320_410 = arith.constant 320 : index
    %264 = vector.load %arg14[%c0_409, %c320_410] : memref<16x576xf32, #tpu.memory_space<vmem>>, vector<4x64xf32>
    tpu.vector_store %arg14[%c0_409, %c320_410], %263 {strides = array<i32>} : memref<16x576xf32, #tpu.memory_space<vmem>>, vector<4x64xf32>,
    %c14_411 = arith.constant 14 : index
    %c0_412 = arith.constant 0 : index
    %265 = vector.load %arg13[%c14_411, %c0_412] : memref<36x64xf32, #tpu.memory_space<vmem>>, vector<4x64xf32>
    %c4_413 = arith.constant 4 : index
    %c320_414 = arith.constant 320 : index
    %266 = vector.load %arg14[%c4_413, %c320_414] : memref<16x576xf32, #tpu.memory_space<vmem>>, vector<4x64xf32>
    tpu.vector_store %arg14[%c4_413, %c320_414], %265 {strides = array<i32>} : memref<16x576xf32, #tpu.memory_space<vmem>>, vector<4x64xf32>,
    %c20_415 = arith.constant 20 : index
    %c0_416 = arith.constant 0 : index
    %267 = vector.load %arg13[%c20_415, %c0_416] : memref<36x64xf32, #tpu.memory_space<vmem>>, vector<4x64xf32>
    %c8_417 = arith.constant 8 : index
    %c320_418 = arith.constant 320 : index
    %268 = vector.load %arg14[%c8_417, %c320_418] : memref<16x576xf32, #tpu.memory_space<vmem>>, vector<4x64xf32>
    tpu.vector_store %arg14[%c8_417, %c320_418], %267 {strides = array<i32>} : memref<16x576xf32, #tpu.memory_space<vmem>>, vector<4x64xf32>,
    %c26 = arith.constant 26 : index
    %c0_419 = arith.constant 0 : index
    %269 = vector.load %arg13[%c26, %c0_419] : memref<36x64xf32, #tpu.memory_space<vmem>>, vector<4x64xf32>
    %c12_420 = arith.constant 12 : index
    %c320_421 = arith.constant 320 : index
    %270 = vector.load %arg14[%c12_420, %c320_421] : memref<16x576xf32, #tpu.memory_space<vmem>>, vector<4x64xf32>
    tpu.vector_store %arg14[%c12_420, %c320_421], %269 {strides = array<i32>} : memref<16x576xf32, #tpu.memory_space<vmem>>, vector<4x64xf32>,
    %c12_422 = arith.constant 12 : index
    %c0_423 = arith.constant 0 : index
    %271 = vector.load %arg13[%c12_422, %c0_423] : memref<36x64xf32, #tpu.memory_space<vmem>>, vector<4x64xf32>
    %c0_424 = arith.constant 0 : index
    %c384_425 = arith.constant 384 : index
    %272 = vector.load %arg14[%c0_424, %c384_425] : memref<16x576xf32, #tpu.memory_space<vmem>>, vector<4x64xf32>
    tpu.vector_store %arg14[%c0_424, %c384_425], %271 {strides = array<i32>} : memref<16x576xf32, #tpu.memory_space<vmem>>, vector<4x64xf32>,
    %c18_426 = arith.constant 18 : index
    %c0_427 = arith.constant 0 : index
    %273 = vector.load %arg13[%c18_426, %c0_427] : memref<36x64xf32, #tpu.memory_space<vmem>>, vector<4x64xf32>
    %c4_428 = arith.constant 4 : index
    %c384_429 = arith.constant 384 : index
    %274 = vector.load %arg14[%c4_428, %c384_429] : memref<16x576xf32, #tpu.memory_space<vmem>>, vector<4x64xf32>
    tpu.vector_store %arg14[%c4_428, %c384_429], %273 {strides = array<i32>} : memref<16x576xf32, #tpu.memory_space<vmem>>, vector<4x64xf32>,
    %c24_430 = arith.constant 24 : index
    %c0_431 = arith.constant 0 : index
    %275 = vector.load %arg13[%c24_430, %c0_431] : memref<36x64xf32, #tpu.memory_space<vmem>>, vector<4x64xf32>
    %c8_432 = arith.constant 8 : index
    %c384_433 = arith.constant 384 : index
    %276 = vector.load %arg14[%c8_432, %c384_433] : memref<16x576xf32, #tpu.memory_space<vmem>>, vector<4x64xf32>
    tpu.vector_store %arg14[%c8_432, %c384_433], %275 {strides = array<i32>} : memref<16x576xf32, #tpu.memory_space<vmem>>, vector<4x64xf32>,
    %c30_434 = arith.constant 30 : index
    %c0_435 = arith.constant 0 : index
    %277 = vector.load %arg13[%c30_434, %c0_435] : memref<36x64xf32, #tpu.memory_space<vmem>>, vector<4x64xf32>
    %c12_436 = arith.constant 12 : index
    %c384_437 = arith.constant 384 : index
    %278 = vector.load %arg14[%c12_436, %c384_437] : memref<16x576xf32, #tpu.memory_space<vmem>>, vector<4x64xf32>
    tpu.vector_store %arg14[%c12_436, %c384_437], %277 {strides = array<i32>} : memref<16x576xf32, #tpu.memory_space<vmem>>, vector<4x64xf32>,
    %c13_438 = arith.constant 13 : index
    %c0_439 = arith.constant 0 : index
    %279 = vector.load %arg13[%c13_438, %c0_439] : memref<36x64xf32, #tpu.memory_space<vmem>>, vector<4x64xf32>
    %c0_440 = arith.constant 0 : index
    %c448_441 = arith.constant 448 : index
    %280 = vector.load %arg14[%c0_440, %c448_441] : memref<16x576xf32, #tpu.memory_space<vmem>>, vector<4x64xf32>
    tpu.vector_store %arg14[%c0_440, %c448_441], %279 {strides = array<i32>} : memref<16x576xf32, #tpu.memory_space<vmem>>, vector<4x64xf32>,
    %c19_442 = arith.constant 19 : index
    %c0_443 = arith.constant 0 : index
    %281 = vector.load %arg13[%c19_442, %c0_443] : memref<36x64xf32, #tpu.memory_space<vmem>>, vector<4x64xf32>
    %c4_444 = arith.constant 4 : index
    %c448_445 = arith.constant 448 : index
    %282 = vector.load %arg14[%c4_444, %c448_445] : memref<16x576xf32, #tpu.memory_space<vmem>>, vector<4x64xf32>
    tpu.vector_store %arg14[%c4_444, %c448_445], %281 {strides = array<i32>} : memref<16x576xf32, #tpu.memory_space<vmem>>, vector<4x64xf32>,
    %c25_446 = arith.constant 25 : index
    %c0_447 = arith.constant 0 : index
    %283 = vector.load %arg13[%c25_446, %c0_447] : memref<36x64xf32, #tpu.memory_space<vmem>>, vector<4x64xf32>
    %c8_448 = arith.constant 8 : index
    %c448_449 = arith.constant 448 : index
    %284 = vector.load %arg14[%c8_448, %c448_449] : memref<16x576xf32, #tpu.memory_space<vmem>>, vector<4x64xf32>
    tpu.vector_store %arg14[%c8_448, %c448_449], %283 {strides = array<i32>} : memref<16x576xf32, #tpu.memory_space<vmem>>, vector<4x64xf32>,
    %c31_450 = arith.constant 31 : index
    %c0_451 = arith.constant 0 : index
    %285 = vector.load %arg13[%c31_450, %c0_451] : memref<36x64xf32, #tpu.memory_space<vmem>>, vector<4x64xf32>
    %c12_452 = arith.constant 12 : index
    %c448_453 = arith.constant 448 : index
    %286 = vector.load %arg14[%c12_452, %c448_453] : memref<16x576xf32, #tpu.memory_space<vmem>>, vector<4x64xf32>
    tpu.vector_store %arg14[%c12_452, %c448_453], %285 {strides = array<i32>} : memref<16x576xf32, #tpu.memory_space<vmem>>, vector<4x64xf32>,
    %c14_454 = arith.constant 14 : index
    %c0_455 = arith.constant 0 : index
    %287 = vector.load %arg13[%c14_454, %c0_455] : memref<36x64xf32, #tpu.memory_space<vmem>>, vector<4x64xf32>
    %c0_456 = arith.constant 0 : index
    %c512 = arith.constant 512 : index
    %288 = vector.load %arg14[%c0_456, %c512] : memref<16x576xf32, #tpu.memory_space<vmem>>, vector<4x64xf32>
    tpu.vector_store %arg14[%c0_456, %c512], %287 {strides = array<i32>} : memref<16x576xf32, #tpu.memory_space<vmem>>, vector<4x64xf32>,
    %c20_457 = arith.constant 20 : index
    %c0_458 = arith.constant 0 : index
    %289 = vector.load %arg13[%c20_457, %c0_458] : memref<36x64xf32, #tpu.memory_space<vmem>>, vector<4x64xf32>
    %c4_459 = arith.constant 4 : index
    %c512_460 = arith.constant 512 : index
    %290 = vector.load %arg14[%c4_459, %c512_460] : memref<16x576xf32, #tpu.memory_space<vmem>>, vector<4x64xf32>
    tpu.vector_store %arg14[%c4_459, %c512_460], %289 {strides = array<i32>} : memref<16x576xf32, #tpu.memory_space<vmem>>, vector<4x64xf32>,
    %c26_461 = arith.constant 26 : index
    %c0_462 = arith.constant 0 : index
    %291 = vector.load %arg13[%c26_461, %c0_462] : memref<36x64xf32, #tpu.memory_space<vmem>>, vector<4x64xf32>
    %c8_463 = arith.constant 8 : index
    %c512_464 = arith.constant 512 : index
    %292 = vector.load %arg14[%c8_463, %c512_464] : memref<16x576xf32, #tpu.memory_space<vmem>>, vector<4x64xf32>
    tpu.vector_store %arg14[%c8_463, %c512_464], %291 {strides = array<i32>} : memref<16x576xf32, #tpu.memory_space<vmem>>, vector<4x64xf32>,
    %c32_465 = arith.constant 32 : index
    %c0_466 = arith.constant 0 : index
    %293 = vector.load %arg13[%c32_465, %c0_466] : memref<36x64xf32, #tpu.memory_space<vmem>>, vector<4x64xf32>
    %c12_467 = arith.constant 12 : index
    %c512_468 = arith.constant 512 : index
    %294 = vector.load %arg14[%c12_467, %c512_468] : memref<16x576xf32, #tpu.memory_space<vmem>>, vector<4x64xf32>
    tpu.vector_store %arg14[%c12_467, %c512_468], %293 {strides = array<i32>} : memref<16x576xf32, #tpu.memory_space<vmem>>, vector<4x64xf32>,
    %c0_469 = arith.constant 0 : index
    %c0_470 = arith.constant 0 : index
    %295 = vector.load %arg14[%c0_469, %c0_470] : memref<16x576xf32, #tpu.memory_space<vmem>>, vector<16x576xf32>
    %c0_471 = arith.constant 0 : index
    %c0_472 = arith.constant 0 : index
    %296 = vector.load %arg6[%c0_471, %c0_472] : memref<576x32xf32, #tpu.memory_space<vmem>>, vector<576x32xf32>
    %cst_473 = arith.constant dense<0.000000e+00> : vector<16x32xf32>
    %297 = tpu.matmul %295, %296, %cst_473 {dimension_numbers = #tpu.dot_dimension_numbers<[1], [0], [0], [1], [0, 0, 1, 1], [], []>} : vector<16x576xf32>, vector<576x32xf32>, vector<16x32xf32> -> vector<16x32xf32>
    %c0_474 = arith.constant 0 : index
    %c0_475 = arith.constant 0 : index
    %298 = vector.load %arg7[%c0_474, %c0_475] : memref<1x32xf32, #tpu.memory_space<vmem>>, vector<1x32xf32>
    %299 = vector.broadcast %298 : vector<1x32xf32> to vector<16x32xf32>
    %300 = arith.addf %297, %299 : vector<16x32xf32>
    %cst_476 = arith.constant 0.000000e+00 : f32
    %301 = vector.broadcast %cst_476 : f32 to vector<16x32xf32>
    %302 = arith.subf %301, %300 : vector<16x32xf32>
    %303 = math.exp %302 : vector<16x32xf32>
    %cst_477 = arith.constant 1.000000e+00 : f32
    %304 = vector.broadcast %cst_477 : f32 to vector<16x32xf32>
    %305 = arith.addf %304, %303 : vector<16x32xf32>
    %cst_478 = arith.constant 1.000000e+00 : f32
    %306 = vector.broadcast %cst_478 : f32 to vector<16x32xf32>
    %307 = arith.divf %306, %305 : vector<16x32xf32>
    %308 = arith.mulf %300, %307 : vector<16x32xf32>
    %c0_479 = arith.constant 0 : index
    %c0_480 = arith.constant 0 : index
    %309 = vector.load %arg15[%c0_479, %c0_480] : memref<16x32xf32, #tpu.memory_space<vmem>>, vector<16x32xf32>
    tpu.vector_store %arg15[%c0_479, %c0_480], %308 {strides = array<i32>} : memref<16x32xf32, #tpu.memory_space<vmem>>, vector<16x32xf32>,
    %c0_481 = arith.constant 0 : index
    %c0_482 = arith.constant 0 : index
    %310 = vector.load %arg15[%c0_481, %c0_482] : memref<16x32xf32, #tpu.memory_space<vmem>>, vector<1x32xf32>
    %c0_483 = arith.constant 0 : index
    %c0_484 = arith.constant 0 : index
    %311 = vector.load %arg16[%c0_483, %c0_484] : memref<1x512xf32, #tpu.memory_space<vmem>>, vector<1x32xf32>
    tpu.vector_store %arg16[%c0_483, %c0_484], %310 {strides = array<i32>} : memref<1x512xf32, #tpu.memory_space<vmem>>, vector<1x32xf32>,
    %c1_485 = arith.constant 1 : index
    %c0_486 = arith.constant 0 : index
    %312 = vector.load %arg15[%c1_485, %c0_486] : memref<16x32xf32, #tpu.memory_space<vmem>>, vector<1x32xf32>
    %c0_487 = arith.constant 0 : index
    %c32_488 = arith.constant 32 : index
    %313 = vector.load %arg16[%c0_487, %c32_488] : memref<1x512xf32, #tpu.memory_space<vmem>>, vector<1x32xf32>
    tpu.vector_store %arg16[%c0_487, %c32_488], %312 {strides = array<i32>} : memref<1x512xf32, #tpu.memory_space<vmem>>, vector<1x32xf32>,
    %c2_489 = arith.constant 2 : index
    %c0_490 = arith.constant 0 : index
    %314 = vector.load %arg15[%c2_489, %c0_490] : memref<16x32xf32, #tpu.memory_space<vmem>>, vector<1x32xf32>
    %c0_491 = arith.constant 0 : index
    %c64_492 = arith.constant 64 : index
    %315 = vector.load %arg16[%c0_491, %c64_492] : memref<1x512xf32, #tpu.memory_space<vmem>>, vector<1x32xf32>
    tpu.vector_store %arg16[%c0_491, %c64_492], %314 {strides = array<i32>} : memref<1x512xf32, #tpu.memory_space<vmem>>, vector<1x32xf32>,
    %c3 = arith.constant 3 : index
    %c0_493 = arith.constant 0 : index
    %316 = vector.load %arg15[%c3, %c0_493] : memref<16x32xf32, #tpu.memory_space<vmem>>, vector<1x32xf32>
    %c0_494 = arith.constant 0 : index
    %c96_495 = arith.constant 96 : index
    %317 = vector.load %arg16[%c0_494, %c96_495] : memref<1x512xf32, #tpu.memory_space<vmem>>, vector<1x32xf32>
    tpu.vector_store %arg16[%c0_494, %c96_495], %316 {strides = array<i32>} : memref<1x512xf32, #tpu.memory_space<vmem>>, vector<1x32xf32>,
    %c4_496 = arith.constant 4 : index
    %c0_497 = arith.constant 0 : index
    %318 = vector.load %arg15[%c4_496, %c0_497] : memref<16x32xf32, #tpu.memory_space<vmem>>, vector<1x32xf32>
    %c0_498 = arith.constant 0 : index
    %c128_499 = arith.constant 128 : index
    %319 = vector.load %arg16[%c0_498, %c128_499] : memref<1x512xf32, #tpu.memory_space<vmem>>, vector<1x32xf32>
    tpu.vector_store %arg16[%c0_498, %c128_499], %318 {strides = array<i32>} : memref<1x512xf32, #tpu.memory_space<vmem>>, vector<1x32xf32>,
    %c5 = arith.constant 5 : index
    %c0_500 = arith.constant 0 : index
    %320 = vector.load %arg15[%c5, %c0_500] : memref<16x32xf32, #tpu.memory_space<vmem>>, vector<1x32xf32>
    %c0_501 = arith.constant 0 : index
    %c160_502 = arith.constant 160 : index
    %321 = vector.load %arg16[%c0_501, %c160_502] : memref<1x512xf32, #tpu.memory_space<vmem>>, vector<1x32xf32>
    tpu.vector_store %arg16[%c0_501, %c160_502], %320 {strides = array<i32>} : memref<1x512xf32, #tpu.memory_space<vmem>>, vector<1x32xf32>,
    %c6_503 = arith.constant 6 : index
    %c0_504 = arith.constant 0 : index
    %322 = vector.load %arg15[%c6_503, %c0_504] : memref<16x32xf32, #tpu.memory_space<vmem>>, vector<1x32xf32>
    %c0_505 = arith.constant 0 : index
    %c192_506 = arith.constant 192 : index
    %323 = vector.load %arg16[%c0_505, %c192_506] : memref<1x512xf32, #tpu.memory_space<vmem>>, vector<1x32xf32>
    tpu.vector_store %arg16[%c0_505, %c192_506], %322 {strides = array<i32>} : memref<1x512xf32, #tpu.memory_space<vmem>>, vector<1x32xf32>,
    %c7_507 = arith.constant 7 : index
    %c0_508 = arith.constant 0 : index
    %324 = vector.load %arg15[%c7_507, %c0_508] : memref<16x32xf32, #tpu.memory_space<vmem>>, vector<1x32xf32>
    %c0_509 = arith.constant 0 : index
    %c224_510 = arith.constant 224 : index
    %325 = vector.load %arg16[%c0_509, %c224_510] : memref<1x512xf32, #tpu.memory_space<vmem>>, vector<1x32xf32>
    tpu.vector_store %arg16[%c0_509, %c224_510], %324 {strides = array<i32>} : memref<1x512xf32, #tpu.memory_space<vmem>>, vector<1x32xf32>,
    %c8_511 = arith.constant 8 : index
    %c0_512 = arith.constant 0 : index
    %326 = vector.load %arg15[%c8_511, %c0_512] : memref<16x32xf32, #tpu.memory_space<vmem>>, vector<1x32xf32>
    %c0_513 = arith.constant 0 : index
    %c256_514 = arith.constant 256 : index
    %327 = vector.load %arg16[%c0_513, %c256_514] : memref<1x512xf32, #tpu.memory_space<vmem>>, vector<1x32xf32>
    tpu.vector_store %arg16[%c0_513, %c256_514], %326 {strides = array<i32>} : memref<1x512xf32, #tpu.memory_space<vmem>>, vector<1x32xf32>,
    %c9_515 = arith.constant 9 : index
    %c0_516 = arith.constant 0 : index
    %328 = vector.load %arg15[%c9_515, %c0_516] : memref<16x32xf32, #tpu.memory_space<vmem>>, vector<1x32xf32>
    %c0_517 = arith.constant 0 : index
    %c288_518 = arith.constant 288 : index
    %329 = vector.load %arg16[%c0_517, %c288_518] : memref<1x512xf32, #tpu.memory_space<vmem>>, vector<1x32xf32>
    tpu.vector_store %arg16[%c0_517, %c288_518], %328 {strides = array<i32>} : memref<1x512xf32, #tpu.memory_space<vmem>>, vector<1x32xf32>,
    %c10 = arith.constant 10 : index
    %c0_519 = arith.constant 0 : index
    %330 = vector.load %arg15[%c10, %c0_519] : memref<16x32xf32, #tpu.memory_space<vmem>>, vector<1x32xf32>
    %c0_520 = arith.constant 0 : index
    %c320_521 = arith.constant 320 : index
    %331 = vector.load %arg16[%c0_520, %c320_521] : memref<1x512xf32, #tpu.memory_space<vmem>>, vector<1x32xf32>
    tpu.vector_store %arg16[%c0_520, %c320_521], %330 {strides = array<i32>} : memref<1x512xf32, #tpu.memory_space<vmem>>, vector<1x32xf32>,
    %c11 = arith.constant 11 : index
    %c0_522 = arith.constant 0 : index
    %332 = vector.load %arg15[%c11, %c0_522] : memref<16x32xf32, #tpu.memory_space<vmem>>, vector<1x32xf32>
    %c0_523 = arith.constant 0 : index
    %c352_524 = arith.constant 352 : index
    %333 = vector.load %arg16[%c0_523, %c352_524] : memref<1x512xf32, #tpu.memory_space<vmem>>, vector<1x32xf32>
    tpu.vector_store %arg16[%c0_523, %c352_524], %332 {strides = array<i32>} : memref<1x512xf32, #tpu.memory_space<vmem>>, vector<1x32xf32>,
    %c12_525 = arith.constant 12 : index
    %c0_526 = arith.constant 0 : index
    %334 = vector.load %arg15[%c12_525, %c0_526] : memref<16x32xf32, #tpu.memory_space<vmem>>, vector<1x32xf32>
    %c0_527 = arith.constant 0 : index
    %c384_528 = arith.constant 384 : index
    %335 = vector.load %arg16[%c0_527, %c384_528] : memref<1x512xf32, #tpu.memory_space<vmem>>, vector<1x32xf32>
    tpu.vector_store %arg16[%c0_527, %c384_528], %334 {strides = array<i32>} : memref<1x512xf32, #tpu.memory_space<vmem>>, vector<1x32xf32>,
    %c13_529 = arith.constant 13 : index
    %c0_530 = arith.constant 0 : index
    %336 = vector.load %arg15[%c13_529, %c0_530] : memref<16x32xf32, #tpu.memory_space<vmem>>, vector<1x32xf32>
    %c0_531 = arith.constant 0 : index
    %c416_532 = arith.constant 416 : index
    %337 = vector.load %arg16[%c0_531, %c416_532] : memref<1x512xf32, #tpu.memory_space<vmem>>, vector<1x32xf32>
    tpu.vector_store %arg16[%c0_531, %c416_532], %336 {strides = array<i32>} : memref<1x512xf32, #tpu.memory_space<vmem>>, vector<1x32xf32>,
    %c14_533 = arith.constant 14 : index
    %c0_534 = arith.constant 0 : index
    %338 = vector.load %arg15[%c14_533, %c0_534] : memref<16x32xf32, #tpu.memory_space<vmem>>, vector<1x32xf32>
    %c0_535 = arith.constant 0 : index
    %c448_536 = arith.constant 448 : index
    %339 = vector.load %arg16[%c0_535, %c448_536] : memref<1x512xf32, #tpu.memory_space<vmem>>, vector<1x32xf32>
    tpu.vector_store %arg16[%c0_535, %c448_536], %338 {strides = array<i32>} : memref<1x512xf32, #tpu.memory_space<vmem>>, vector<1x32xf32>,
    %c15_537 = arith.constant 15 : index
    %c0_538 = arith.constant 0 : index
    %340 = vector.load %arg15[%c15_537, %c0_538] : memref<16x32xf32, #tpu.memory_space<vmem>>, vector<1x32xf32>
    %c0_539 = arith.constant 0 : index
    %c480_540 = arith.constant 480 : index
    %341 = vector.load %arg16[%c0_539, %c480_540] : memref<1x512xf32, #tpu.memory_space<vmem>>, vector<1x32xf32>
    tpu.vector_store %arg16[%c0_539, %c480_540], %340 {strides = array<i32>} : memref<1x512xf32, #tpu.memory_space<vmem>>, vector<1x32xf32>,
    %c0_541 = arith.constant 0 : index
    %c0_542 = arith.constant 0 : index
    %342 = vector.load %arg16[%c0_541, %c0_542] : memref<1x512xf32, #tpu.memory_space<vmem>>, vector<1x512xf32>
    %c0_543 = arith.constant 0 : index
    %c0_544 = arith.constant 0 : index
    %343 = vector.load %arg8[%c0_543, %c0_544] : memref<512x24xf32, #tpu.memory_space<vmem>>, vector<512x24xf32>
    %cst_545 = arith.constant dense<0.000000e+00> : vector<1x24xf32>
    %344 = tpu.matmul %342, %343, %cst_545 {dimension_numbers = #tpu.dot_dimension_numbers<[1], [0], [0], [1], [0, 0, 1, 1], [], []>} : vector<1x512xf32>, vector<512x24xf32>, vector<1x24xf32> -> vector<1x24xf32>
    %c0_546 = arith.constant 0 : index
    %c0_547 = arith.constant 0 : index
    %345 = vector.load %arg9[%c0_546, %c0_547] : memref<1x24xf32, #tpu.memory_space<vmem>>, vector<1x24xf32>
    %346 = arith.addf %344, %345 : vector<1x24xf32>
    %347 = tpu.iota {dimensions = array<i32: 1>} : vector<1x24xi32>
    %cst_548 = arith.constant 0.000000e+00 : f32
    %348 = vector.broadcast %cst_548 : f32 to vector<1x24xf32>
    %349 = vector.extract_strided_slice %346 {offsets = [0, 16], sizes = [1, 4], strides = [1, 1]} : vector<1x24xf32> to vector<1x4xf32>
    %cst_549 = arith.constant dense<0xFF800000> : vector<1xf32>
    %350 = vector.multi_reduction <maximumf>, %349, %cst_549 [1] : vector<1x4xf32> to vector<1xf32>
    %351 = vector.shape_cast %350 : vector<1xf32> to vector<1x1xf32>
    %352 = vector.broadcast %351 : vector<1x1xf32> to vector<1x4xf32>
    %353 = arith.subf %349, %352 : vector<1x4xf32>
    %354 = math.exp %353 : vector<1x4xf32>
    %cst_550 = arith.constant dense<0.000000e+00> : vector<1xf32>
    %355 = vector.multi_reduction <add>, %354, %cst_550 [1] : vector<1x4xf32> to vector<1xf32>
    %356 = vector.shape_cast %355 : vector<1xf32> to vector<1x1xf32>
    %357 = math.log %356 : vector<1x1xf32>
    %358 = arith.addf %351, %357 : vector<1x1xf32>
    %c16_i32 = arith.constant 16 : i32
    %359 = vector.broadcast %c16_i32 : i32 to vector<1x24xi32>
    %360 = arith.cmpi sge, %347, %359 : vector<1x24xi32>
    %c20_i32 = arith.constant 20 : i32
    %361 = vector.broadcast %c20_i32 : i32 to vector<1x24xi32>
    %362 = arith.cmpi slt, %347, %361 : vector<1x24xi32>
    %363 = arith.andi %360, %362 : vector<1x24xi1>
    %364 = vector.shape_cast %358 : vector<1x1xf32> to vector<1x1xf32>
    %365 = vector.broadcast %364 : vector<1x1xf32> to vector<1x24xf32>
    %366 = arith.select %363, %365, %348 : vector<1x24xi1>, vector<1x24xf32>
    %367 = vector.extract_strided_slice %346 {offsets = [0, 20], sizes = [1, 4], strides = [1, 1]} : vector<1x24xf32> to vector<1x4xf32>
    %cst_551 = arith.constant dense<0xFF800000> : vector<1xf32>
    %368 = vector.multi_reduction <maximumf>, %367, %cst_551 [1] : vector<1x4xf32> to vector<1xf32>
    %369 = vector.shape_cast %368 : vector<1xf32> to vector<1x1xf32>
    %370 = vector.broadcast %369 : vector<1x1xf32> to vector<1x4xf32>
    %371 = arith.subf %367, %370 : vector<1x4xf32>
    %372 = math.exp %371 : vector<1x4xf32>
    %cst_552 = arith.constant dense<0.000000e+00> : vector<1xf32>
    %373 = vector.multi_reduction <add>, %372, %cst_552 [1] : vector<1x4xf32> to vector<1xf32>
    %374 = vector.shape_cast %373 : vector<1xf32> to vector<1x1xf32>
    %375 = math.log %374 : vector<1x1xf32>
    %376 = arith.addf %369, %375 : vector<1x1xf32>
    %c20_i32_553 = arith.constant 20 : i32
    %377 = vector.broadcast %c20_i32_553 : i32 to vector<1x24xi32>
    %378 = arith.cmpi sge, %347, %377 : vector<1x24xi32>
    %c24_i32 = arith.constant 24 : i32
    %379 = vector.broadcast %c24_i32 : i32 to vector<1x24xi32>
    %380 = arith.cmpi slt, %347, %379 : vector<1x24xi32>
    %381 = arith.andi %378, %380 : vector<1x24xi1>
    %382 = vector.shape_cast %376 : vector<1x1xf32> to vector<1x1xf32>
    %383 = vector.broadcast %382 : vector<1x1xf32> to vector<1x24xf32>
    %384 = arith.select %381, %383, %366 : vector<1x24xi1>, vector<1x24xf32>
    %385 = arith.subf %346, %384 : vector<1x24xf32>
    %386 = vector.shape_cast %385 : vector<1x24xf32> to vector<1x1x24xf32>
    %c0_554 = arith.constant 0 : index
    %c0_555 = arith.constant 0 : index
    %c0_556 = arith.constant 0 : index
    %387 = vector.load %arg10[%c0_554, %c0_555, %c0_556] : memref<1x1x24xf32, #tpu.memory_space<vmem>>, vector<1x1x24xf32>
    tpu.vector_store %arg10[%c0_554, %c0_555, %c0_556], %386 {strides = array<i32>} : memref<1x1x24xf32, #tpu.memory_space<vmem>>, vector<1x1x24xf32>,
    return
  }
  func.func @transform_0(%arg0: i32) -> (i32, i32, i32) {
    %c0_i32 = arith.constant 0 : i32
    %c0_i32_0 = arith.constant 0 : i32
    %c0_i32_1 = arith.constant 0 : i32
    return %arg0, %c0_i32, %c0_i32_0 : i32, i32, i32
  }
  func.func @transform_1(%arg0: i32) -> (i32, i32) {
    %c0_i32 = arith.constant 0 : i32
    %c0_i32_0 = arith.constant 0 : i32
    %c0_i32_1 = arith.constant 0 : i32
    return %c0_i32, %c0_i32_0 : i32, i32
  }
  func.func @transform_2(%arg0: i32) -> (i32, i32) {
    %c0_i32 = arith.constant 0 : i32
    %c0_i32_0 = arith.constant 0 : i32
    %c0_i32_1 = arith.constant 0 : i32
    return %c0_i32, %c0_i32_0 : i32, i32
  }
  func.func @transform_3(%arg0: i32) -> (i32, i32) {
    %c0_i32 = arith.constant 0 : i32
    %c0_i32_0 = arith.constant 0 : i32
    %c0_i32_1 = arith.constant 0 : i32
    return %c0_i32, %c0_i32_0 : i32, i32
  }
  func.func @transform_4(%arg0: i32) -> (i32, i32) {
    %c0_i32 = arith.constant 0 : i32
    %c0_i32_0 = arith.constant 0 : i32
    %c0_i32_1 = arith.constant 0 : i32
    return %c0_i32, %c0_i32_0 : i32, i32
  }
  func.func @transform_5(%arg0: i32) -> (i32, i32) {
    %c0_i32 = arith.constant 0 : i32
    %c0_i32_0 = arith.constant 0 : i32
    %c0_i32_1 = arith.constant 0 : i32
    return %c0_i32, %c0_i32_0 : i32, i32
  }
  func.func @transform_6(%arg0: i32) -> (i32, i32) {
    %c0_i32 = arith.constant 0 : i32
    %c0_i32_0 = arith.constant 0 : i32
    %c0_i32_1 = arith.constant 0 : i32
    return %c0_i32, %c0_i32_0 : i32, i32
  }
  func.func @transform_7(%arg0: i32) -> (i32, i32) {
    %c0_i32 = arith.constant 0 : i32
    %c0_i32_0 = arith.constant 0 : i32
    %c0_i32_1 = arith.constant 0 : i32
    return %c0_i32, %c0_i32_0 : i32, i32
  }
  func.func @transform_8(%arg0: i32) -> (i32, i32) {
    %c0_i32 = arith.constant 0 : i32
    %c0_i32_0 = arith.constant 0 : i32
    %c0_i32_1 = arith.constant 0 : i32
    return %c0_i32, %c0_i32_0 : i32, i32
  }
  func.func @transform_9(%arg0: i32) -> (i32, i32, i32) {
    %c0_i32 = arith.constant 0 : i32
    %c0_i32_0 = arith.constant 0 : i32
    %c0_i32_1 = arith.constant 0 : i32
    return %arg0, %c0_i32, %c0_i32_0 : i32, i32, i32
  }
}

</mosaic_0001>

<bundles_post_ra>
// kernel: visualnet_forward.1
= control target key start
LH: loop header
LB: loop body
LE: loop exit
PB: predicated region body
PF: predicated region fallthrough
CT: control target
= control target key end

     0   :  { %s3334_s30 = smov 0   ;;  %s5058_s0 = inlined_call_operand.vmem [shape: f32[2,225,192], index: 0, kind: input, shape index: {}]   ;;  %s5059_s1 = inlined_call_operand.vmem [shape: f32[192,32], index: 1, kind: input, shape index: {}]   ;;  %s5060_s2 = inlined_call_operand.vmem [shape: f32[1,32], index: 2, kind: input, shape index: {}]   ;;  %s5061_s3 = inlined_call_operand.vmem [shape: f32[512,64], index: 3, kind: input, shape index: {}]   ;;  %s5062_s4 = inlined_call_operand.vmem [shape: f32[1,64], index: 4, kind: input, shape index: {}]   ;;  %s5063_s5 = inlined_call_operand.vmem [shape: f32[576,32], index: 5, kind: input, shape index: {}]   ;;  %s5064_s6 = inlined_call_operand.vmem [shape: f32[1,32], index: 6, kind: input, shape index: {}]   ;;  %s5065_s7 = inlined_call_operand.vmem [shape: f32[512,24], index: 7, kind: input, shape index: {}]   ;;  %s5066_s8 = inlined_call_operand.vmem [shape: f32[1,24], index: 8, kind: input, shape index: {}]   ;;  %s5067_s9 = inlined_call_operand.vmem [shape: f32[2,1,24], index: 9, kind: output, shape index: {}]  }
   0x1 LB: > { %s3061_s10 = sadd.s32 4294967295, %s3277_s30   ;;  %p3065_p0 = scmp.ge.s32.totalorder %s3277_s30, 1  ;;  %s3277_s30 = sphi %s3334_s30, %s19_s30  }
   0x2   : > { %p287_p1 = scmp.lt.s32.totalorder %s3277_s30, 3 }
   0x4   : > { %p288_p2 = pnand %p3065_p0, %p287_p1 }
   0x5   : > { %p321_p3 = scmp.lt.s32.totalorder (!%p288_p2), %s3061_s10, 1  ;;  %s3279_s28 = smov (!%p288_p2), 64  }
   0x6   : > { %291 = sbr.rel (%p288_p2) target bundleno = 1731 (0x6c3), region = 56  ;;  %s3280_s29 = smov (!%p288_p2), 96  }
   0x7   : > { %s3281_s11 = smov (!%p288_p2), 32   ;;  %s3282_s23 = smov (!%p288_p2), 112  }
   0x8   : > { %s3283_s24 = smov (!%p288_p2), 108  }
   0xb   : > { %v402_v0 = vld [vmem:[%s5059_s1 + $0x78] sm:$0xff]  ;;  %v401_v1 = vld [vmem:[%s5059_s1 + $0x70] sm:$0xff]  ;;  %v400_v2 = vld [vmem:[%s5059_s1 + $0x68] sm:$0xff]  ;;  %s5117_s10 = smov (!%p321_p3, %s3061_s10), 1  ;;  %vm5068_vm0 = vcmask 523264   ;;  %vm5072_vm5 = vcmask 261120  }
   0xc   : > { %503 = vmatpush.msra.mxu0 %v402_v0  ;;  %v410_v3 = vld [vmem:[%s5059_s1 + $0xb8] sm:$0xff]  ;;  %v399_v4 = vld [vmem:[%s5059_s1 + $0x60] sm:$0xff]  ;;  %v409_v5 = vld [vmem:[%s5059_s1 + $0xb0] sm:$0xff]  ;;  %s3100_s18 = smul.u32 464, %s5117_s10  ;;  %vm1323_vm10 = vcmask 259072   ;;  %s328_s26 = scalar_lea.vmem %s5067_s9, %s5117_s10 }
   0xd   : > { %615 = vmatpush.msra.mxu1 %v410_v3  ;;  %v408_v6 = vld [vmem:[%s5059_s1 + $0xa8] sm:$0xff]  ;;  %v398_v7 = vld [vmem:[%s5059_s1 + $0x58] sm:$0xff]  ;;  %v407_v8 = vld [vmem:[%s5059_s1 + $0xa0] sm:$0xff] }
   0xe   : > { %504 = vmatpush.msra.mxu0 %v401_v1  ;;  %v397_v9 = vld [vmem:[%s5059_s1 + $0x50] sm:$0xff]  ;;  %v406_v10 = vld [vmem:[%s5059_s1 + $0x98] sm:$0xff]  ;;  %v396_v11 = vld [vmem:[%s5059_s1 + $0x48] sm:$0xff]  ;;  %s3396_s27 = scalar_lea.vmem %s5058_s0, %s3100_s18 }
   0xf   : > { %616 = vmatpush.msra.mxu1 %v409_v5  ;;  %v405_v12 = vld [vmem:[%s5059_s1 + $0x90] sm:$0xff]  ;;  %v395_v13 = vld [vmem:[%s5059_s1 + $0x40] sm:$0xff]  ;;  %v404_v14 = vld [vmem:[%s5059_s1 + $0x88] sm:$0xff] }
  0x10   : > { %505 = vmatpush.msra.mxu0 %v400_v2  ;;  %v394_v15 = vld [vmem:[%s5059_s1 + $0x38] sm:$0xff]  ;;  %v403_v16 = vld [vmem:[%s5059_s1 + $0x80] sm:$0xff]  ;;  %v393_v17 = vld [vmem:[%s5059_s1 + $0x30] sm:$0xff] }
  0x11   : > { %617 = vmatpush.msra.mxu1 %v408_v6  ;;  %v330_v18 = vld [vmem:[%s3396_s27 + $0x8] sm:$0xff]  ;;  %v391_v20 = vld [vmem:[%s5059_s1 + $0x20] sm:$0xff]  ;;  %v390_v21 = vld [vmem:[%s5059_s1 + $0x18] sm:$0xff] }
  0x12   : > { %506 = vmatpush.msra.mxu0 %v399_v4  ;;  %v392_v19 = vld [vmem:[%s5059_s1 + $0x28] sm:$0xff]  ;;  %v389_v22 = vld [vmem:[%s5059_s1 + $0x10] sm:$0xff]  ;;  %v332_v23 = vld [vmem:[%s3396_s27 + $0x18] sm:$0xff] }
  0x13   : > { %618 = vmatpush.msra.mxu1 %v407_v8  ;;  %v388_v24 = vld [vmem:[%s5059_s1 + $0x8] sm:$0xff]  ;;  %v387_v25 = vld [vmem:[%s5059_s1] sm:$0xff]  ;;  %v331_v28 = vld [vmem:[%s3396_s27 + $0x10] sm:$0xff] }
  0x14   : > { %507 = vmatpush.msra.mxu0 %v398_v7  ;;  %v329_v26 = vld [vmem:[%s3396_s27] sm:$0xff]  ;;  %v334_v27 = vld [vmem:[%s3396_s27 + $0x28] sm:$0xff]  ;;  %v336_v29 = vld [vmem:[%s3396_s27 + $0x38] sm:$0xff] }
  0x15   : > { %619 = vmatpush.msra.mxu1 %v406_v10  ;;  %v333_v30 = vld [vmem:[%s3396_s27 + $0x20] sm:$0xff]  ;;  %v338_v31 = vld [vmem:[%s3396_s27 + $0x48] sm:$0xff]  ;;  %v335_v32 = vld [vmem:[%s3396_s27 + $0x30] sm:$0xff] }
  0x16   : > { %508 = vmatpush.msra.mxu0 %v397_v9  ;;  %v340_v33 = vld [vmem:[%s3396_s27 + $0x58] sm:$0xff]  ;;  %v337_v34 = vld [vmem:[%s3396_s27 + $0x40] sm:$0xff]  ;;  %v342_v35 = vld [vmem:[%s3396_s27 + $0x68] sm:$0xff] }
  0x17   : > { %620 = vmatpush.msra.mxu1 %v405_v12  ;;  %v339_v36 = vld [vmem:[%s3396_s27 + $0x50] sm:$0xff]  ;;  %v344_v37 = vld [vmem:[%s3396_s27 + $0x78] sm:$0xff]  ;;  %v341_v38 = vld [vmem:[%s3396_s27 + $0x60] sm:$0xff] }
  0x18   : > { %509 = vmatpush.msra.mxu0 %v396_v11  ;;  %v346_v39 = vld [vmem:[%s3396_s27 + $0x88] sm:$0xff]  ;;  %v343_v40 = vld [vmem:[%s3396_s27 + $0x70] sm:$0xff]  ;;  %v348_v41 = vld [vmem:[%s3396_s27 + $0x98] sm:$0xff] }
  0x19   : > { %621 = vmatpush.msra.mxu1 %v404_v14  ;;  %v345_v42 = vld [vmem:[%s3396_s27 + $0x80] sm:$0xff]  ;;  %v350_v43 = vld [vmem:[%s3396_s27 + $0xa8] sm:$0xff]  ;;  %v347_v44 = vld [vmem:[%s3396_s27 + $0x90] sm:$0xff] }
  0x1a   : > { %510 = vmatpush.msra.mxu0 %v395_v13  ;;  %v352_v45 = vld [vmem:[%s3396_s27 + $0xb8] sm:$0xff]  ;;  %v349_v46 = vld [vmem:[%s3396_s27 + $0xa0] sm:$0xff]  ;;  %v354_v47 = vld [vmem:[%s3396_s27 + $0xc8] sm:$0xff] }
  0x1b   : > { %622 = vmatpush.msra.mxu1 %v403_v16  ;;  %v351_v48 = vld [vmem:[%s3396_s27 + $0xb0] sm:$0xff]  ;;  %v356_v49 = vld [vmem:[%s3396_s27 + $0xd8] sm:$0xff]  ;;  %v353_v50 = vld [vmem:[%s3396_s27 + $0xc0] sm:$0xff] }
  0x1c   : > { %511 = vmatpush.msra.mxu0 %v394_v15  ;;  %3067 = vmatmul.msk.f32.vlgmr.msra.gmra.mxu1 %vm5068_vm0, %v330_v18  ;;  %v358_v51 = vld [vmem:[%s3396_s27 + $0xe8] sm:$0xff]  ;;  %v355_v52 = vld [vmem:[%s3396_s27 + $0xd0] sm:$0xff]  ;;  %v360_v53 = vld [vmem:[%s3396_s27 + $0xf8] sm:$0xff] }
  0x1d   : > { %v357_v54 = vld [vmem:[%s3396_s27 + $0xe0] sm:$0xff]  ;;  %v362_v56 = vld [vmem:[%s3396_s27 + $0x108] sm:$0xff]  ;;  %v359_v57 = vld [vmem:[%s3396_s27 + $0xf0] sm:$0xff] }
  0x1e   : > { %512 = vmatpush.msra.mxu0 %v393_v17  ;;  %v364_v59 = vld [vmem:[%s3396_s27 + $0x118] sm:$0xff]  ;;  %v3476_v60 = vld [vmem:[%s5060_s2] ss:$0 sm:$0xff]  ;;  %v366_v2 = vld [vmem:[%s3396_s27 + $0x128] sm:$0xff] }
  0x1f   : > { %v361_v62 = vld [vmem:[%s3396_s27 + $0x100] sm:$0xff]  ;;  %v363_v6 = vld [vmem:[%s3396_s27 + $0x110] sm:$0xff]  ;;  %v368_v10 = vld [vmem:[%s3396_s27 + $0x138] sm:$0xff] }
  0x20   : > { %513 = vmatpush.msra.mxu0 %v392_v19  ;;  %v365_v16 = vld [vmem:[%s3396_s27 + $0x120] sm:$0xff] }
  0x22   : > { %514 = vmatpush.msra.mxu0 %v391_v20  ;;  %v370_v20 = vld [vmem:[%s3396_s27 + $0x148] sm:$0xff] }
  0x24   : > { %515 = vmatpush.msra.mxu0 %v390_v21  ;;  %3068 = vmatmul.msk.f32.gmra.mxu1 %vm5068_vm0, %v332_v23 }
  0x26   : > { %516 = vmatpush.msra.mxu0 %v389_v22 }
  0x28   : > { %517 = vmatpush.msra.mxu0 %v388_v24 }
  0x2a   : > { %518 = vmatpush.msra.mxu0 %v387_v25 }
  0x2b   : > { %519 = vmatmul.f32.vlgmr.msra.gmra.mxu0 %v329_v26 }
  0x2c   : > { %3069 = vmatmul.msk.f32.gmra.mxu1 %vm5068_vm0, %v334_v27  ;;  %v367_v27 = vld [vmem:[%s3396_s27 + $0x130] sm:$0xff] }
  0x33   : > { %522 = vmatmul.f32.gmra.mxu0 %v331_v28 }
  0x34   : > { %3070 = vmatmul.msk.f32.gmra.mxu1 %vm5068_vm0, %v336_v29 }
  0x3b   : > { %525 = vmatmul.f32.gmra.mxu0 %v333_v30 }
  0x3c   : > { %3071 = vmatmul.msk.f32.gmra.mxu1 %vm5068_vm0, %v338_v31 }
  0x43   : > { %528 = vmatmul.f32.gmra.mxu0 %v335_v32 }
  0x44   : > { %3072 = vmatmul.msk.f32.gmra.mxu1 %vm5068_vm0, %v340_v33  ;;  %v372_v33 = vld [vmem:[%s3396_s27 + $0x158] sm:$0xff] }
  0x4b   : > { %531 = vmatmul.f32.gmra.mxu0 %v337_v34 }
  0x4c   : > { %3073 = vmatmul.msk.f32.gmra.mxu1 %vm5068_vm0, %v342_v35 }
  0x53   : > { %534 = vmatmul.f32.gmra.mxu0 %v339_v36 }
  0x54   : > { %3074 = vmatmul.msk.f32.gmra.mxu1 %vm5068_vm0, %v344_v37 }
  0x5b   : > { %537 = vmatmul.f32.gmra.mxu0 %v341_v38 }
  0x5c   : > { %3075 = vmatmul.msk.f32.gmra.mxu1 %vm5068_vm0, %v346_v39 }
  0x63   : > { %540 = vmatmul.f32.gmra.mxu0 %v343_v40 }
  0x64   : > { %3076 = vmatmul.msk.f32.gmra.mxu1 %vm5068_vm0, %v348_v41 }
  0x6b   : > { %543 = vmatmul.f32.gmra.mxu0 %v345_v42 }
  0x6c   : > { %3077 = vmatmul.msk.f32.gmra.mxu1 %vm5068_vm0, %v350_v43 }
  0x73   : > { %546 = vmatmul.f32.gmra.mxu0 %v347_v44 }
  0x74   : > { %3078 = vmatmul.msk.f32.gmra.mxu1 %vm5068_vm0, %v352_v45  ;;  %v369_v45 = vld [vmem:[%s3396_s27 + $0x140] sm:$0xff] }
  0x7b   : > { %549 = vmatmul.f32.gmra.mxu0 %v349_v46 }
  0x7c   : > { %3079 = vmatmul.msk.f32.gmra.mxu1 %vm5068_vm0, %v354_v47 }
  0x83   : > { %552 = vmatmul.f32.gmra.mxu0 %v351_v48 }
  0x84   : > { %3080 = vmatmul.msk.f32.gmra.mxu1 %vm5068_vm0, %v356_v49 }
  0x8b   : > { %555 = vmatmul.f32.gmra.mxu0 %v353_v50 }
  0x8c   : > { %3081 = vmatmul.msk.f32.gmra.mxu1 %vm5068_vm0, %v358_v51 }
  0x93   : > { %558 = vmatmul.f32.gmra.mxu0 %v355_v52 }
  0x94   : > { %3082 = vmatmul.msk.f32.gmra.mxu1 %vm5068_vm0, %v360_v53  ;;  %v374_v53 = vld [vmem:[%s3396_s27 + $0x168] sm:$0xff] }
  0x99   : > { %v624_v55 = vpop.f32.mrf.mxu1 }
  0x9b   : > { %561 = vmatmul.f32.gmra.mxu0 %v357_v54 }
  0x9c   : > { %3083 = vmatmul.msk.f32.gmra.mxu1 %vm5068_vm0, %v362_v56 }
  0xa1   : > { %v627_v58 = vpop.f32.mrf.mxu1 }
  0xa3   : > { %564 = vmatmul.f32.gmra.mxu0 %v359_v57 }
  0xa4   : > { %3084 = vmatmul.msk.f32.gmra.mxu1 %vm5068_vm0, %v364_v59 }
  0xa8   : > { %v520_v61 = vpop.f32.mrf.mxu0 }
  0xa9   : > { %v521_v63 = vadd.f32 %v3476_v60, %v520_v61  ;;  %v630_v1 = vpop.f32.mrf.mxu1 }
  0xab   : > { %v3481_v0 = vadd.f32 %v624_v55, %v521_v63  ;;  %567 = vmatmul.f32.gmra.mxu0 %v361_v62 }
  0xac   : > { %3085 = vmatmul.msk.f32.gmra.mxu1 %vm5068_vm0, %v366_v2  ;;  %v371_v2 = vld [vmem:[%s3396_s27 + $0x150] sm:$0xff] }
  0xad   : > { %v711_v3 = vsub.f32 0.0, %v3481_v0 }
  0xaf   : > { %v740_v4 = vmul.f32 1.442695, %v711_v3 }
  0xb0   : > { %v523_v5 = vpop.f32.mrf.mxu0 }
  0xb1   : > { %3117 = vpow2.f32 %v740_v4  ;;  %v524_v7 = vadd.f32 %v3476_v60, %v523_v5  ;;  %v633_v9 = vpop.f32.mrf.mxu1 }
  0xb3   : > { %v3488_v8 = vadd.f32 %v627_v58, %v524_v7  ;;  %570 = vmatmul.f32.gmra.mxu0 %v363_v6 }
  0xb4   : > { %3086 = vmatmul.msk.f32.gmra.mxu1 %vm5068_vm0, %v368_v10 }
  0xb5   : > { %v712_v11 = vsub.f32 0.0, %v3488_v8 }
  0xb7   : > { %v3118_v12 = vpop.eup %3117  ;;  %v742_v13 = vmul.f32 1.442695, %v712_v11  ;;  %v376_v11 = vld [vmem:[%s3396_s27 + $0x178] sm:$0xff] }
  0xb8   : > { %v798_v14 = vadd.f32 1.0, %v3118_v12  ;;  %v526_v15 = vpop.f32.mrf.mxu0 }
  0xb9   : > { %3119 = vpow2.f32 %v742_v13  ;;  %v527_v17 = vadd.f32 %v3476_v60, %v526_v15  ;;  %v636_v19 = vpop.f32.mrf.mxu1 }
  0xba   : > { %3121 = vrcp.f32 %v798_v14  ;;  %v838_v34 = vand.u32 2147483648, %v798_v14  ;;  %v836_v36 = vand.u32 2147483647, %v798_v14  ;;  %vm832_vm2 = vweird.f32 %v798_v14 }
  0xbb   : > { %v3495_v18 = vadd.f32 %v630_v1, %v527_v17  ;;  %573 = vmatmul.f32.gmra.mxu0 %v365_v16 }
  0xbc   : > { %3087 = vmatmul.msk.f32.gmra.mxu1 %vm5068_vm0, %v370_v20  ;;  %v839_v42 = vor.u32 1.1754944e-38, %v838_v34  ;;  %vm837_vm4 = vcmp.eq.f32.partialorder %v836_v36, 8.507059e+37 }
  0xbd   : > { %v713_v21 = vsub.f32 0.0, %v3495_v18 }
  0xbf   : > { %v3120_v22 = vpop.eup %3119  ;;  %v744_v23 = vmul.f32 1.442695, %v713_v21 }
  0xc0   : > { %v3122_v24 = vpop.eup %3121  ;;  %v799_v25 = vadd.f32 1.0, %v3120_v22  ;;  %v529_v26 = vpop.f32.mrf.mxu0 }
  0xc1   : > { %v828_v28 = vmul.f32 %v3122_v24, %v798_v14  ;;  %3123 = vpow2.f32 %v744_v23  ;;  %v530_v29 = vadd.f32 %v3476_v60, %v529_v26  ;;  %v3504_v32 = vpop.f32.mrf.mxu1  ;;  %vm833_vm1 = vweird.f32 %v3122_v24 }
  0xc2   : > { %3125 = vrcp.f32 %v799_v25  ;;  %vm834_vm3 = vmor %vm832_vm2, %vm833_vm1  ;;  %v853_v54 = vand.u32 2147483648, %v799_v25  ;;  %v851_v56 = vand.u32 2147483647, %v799_v25  ;;  %vm847_vm7 = vweird.f32 %v799_v25 }
  0xc3   : > { %v829_v30 = vsub.f32 1.0, %v828_v28  ;;  %v3502_v31 = vadd.f32 %v633_v9, %v530_v29  ;;  %576 = vmatmul.f32.gmra.mxu0 %v367_v27 }
  0xc4   : > { %3088 = vmatmul.msk.f32.gmra.mxu1 %vm5068_vm0, %v372_v33  ;;  %v854_v63 = vor.u32 1.1754944e-38, %v853_v54  ;;  %vm852_vm9 = vcmp.eq.f32.partialorder %v851_v56, 8.507059e+37 }
  0xc5   : > { %v830_v35 = vmul.f32 %v3122_v24, %v829_v30  ;;  %v714_v37 = vsub.f32 0.0, %v3502_v31 }
  0xc7   : > { %v3124_v38 = vpop.eup %3123  ;;  %v831_v39 = vadd.f32 %v3122_v24, %v830_v35  ;;  %v746_v40 = vmul.f32 1.442695, %v714_v37  ;;  %v378_v37 = vld [vmem:[%s3396_s27 + $0x188] sm:$0xff] }
  0xc8   : > { %v3126_v41 = vpop.eup %3125  ;;  %v3509_v43 = vadd.f32 1.0, %v3124_v38  ;;  %v532_v44 = vpop.f32.mrf.mxu0 }
  0xc9   : > { %v835_v46 = vsel %vm834_vm3, %v3122_v24, %v831_v39  ;;  %v843_v47 = vmul.f32 %v3126_v41, %v799_v25  ;;  %3127 = vpow2.f32 %v746_v40  ;;  %v533_v51 = vadd.f32 %v3476_v60, %v532_v44  ;;  %v3515_v52 = vpop.f32.mrf.mxu1  ;;  %v373_v24 = vld [vmem:[%s3396_s27 + $0x160] sm:$0xff] }
  0xca   : > { %v840_v48 = vsel %vm837_vm4, %v839_v42, %v835_v46  ;;  %3129 = vrcp.f32 %v3509_v43  ;;  %vm848_vm6 = vweird.f32 %v3126_v41  ;;  %v868_v12 = vand.u32 2147483648, %v3509_v43 }
  0xcb   : > { %v1262_v49 = vmul.f32 %v840_v48, %v3481_v0  ;;  %v844_v50 = vsub.f32 1.0, %v843_v47  ;;  %579 = vmatmul.f32.gmra.mxu0 %v369_v45  ;;  %v3519_v57 = vadd.f32 %v636_v19, %v533_v51  ;;  %vm849_vm8 = vmor %vm847_vm7, %vm848_vm6  ;;  %vm862_vm12 = vweird.f32 %v3509_v43  ;;  %v375_v47 = vld [vmem:[%s3396_s27 + $0x170] sm:$0xff] }
  0xcc   : > { %3089 = vmatmul.msk.f32.gmra.mxu1 %vm5068_vm0, %v374_v53  ;;  %v869_v21 = vor.u32 1.1754944e-38, %v868_v12 }
  0xcd   : > { %1292 = vst.msk [vmem:[#allocation2] sm:$0xff] %vm5072_vm5, %v1262_v49  ;;  %v845_v55 = vmul.f32 %v3126_v41, %v844_v50  ;;  %v715_v61 = vsub.f32 0.0, %v3519_v57 }
  0xcf   : > { %v3128_v58 = vpop.eup %3127  ;;  %v846_v59 = vadd.f32 %v3126_v41, %v845_v55  ;;  %v748_v5 = vmul.f32 1.442695, %v715_v61 }
  0xd0   : > { %v3130_v62 = vpop.eup %3129  ;;  %v3523_v0 = vadd.f32 1.0, %v3128_v58  ;;  %v535_v1 = vpop.f32.mrf.mxu0  ;;  %v380_v58 = vld [vmem:[%s3396_s27 + $0x198] sm:$0xff] }
  0xd1   : > { %v850_v3 = vsel %vm849_vm8, %v3126_v41, %v846_v59  ;;  %v858_v4 = vmul.f32 %v3130_v62, %v3509_v43  ;;  %v3529_v10 = vpop.f32.mrf.mxu1  ;;  %v536_v13 = vadd.f32 %v3476_v60, %v535_v1  ;;  %vm863_vm11 = vweird.f32 %v3130_v62 }
  0xd2   : > { %v855_v6 = vsel %vm852_vm9, %v854_v63, %v850_v3  ;;  %3131 = vrcp.f32 %v3523_v0  ;;  %vm864_vm13 = vmor %vm862_vm12, %vm863_vm11  ;;  %v881_v38 = vand.u32 2147483647, %v3523_v0  ;;  %v883_v39 = vand.u32 2147483648, %v3523_v0 }
  0xd3   : > { %v1263_v7 = vmul.f32 %v855_v6, %v3488_v8  ;;  %v859_v9 = vsub.f32 1.0, %v858_v4  ;;  %3133 = vpow2.f32 %v748_v5  ;;  %582 = vmatmul.f32.gmra.mxu0 %v371_v2  ;;  %v866_v8 = vand.u32 2147483647, %v3509_v43 }
  0xd4   : > { %v1404_v14 = vld [vmem:[#allocation2 + $0x1] sm:$0x3f]  ;;  %v3538_v17 = vadd.f32 %v3504_v32, %v536_v13  ;;  %3090 = vmatmul.msk.f32.gmra.mxu1 %vm5068_vm0, %v376_v11  ;;  %vm877_vm1 = vweird.f32 %v3523_v0  ;;  %v884_v45 = vor.u32 1.1754944e-38, %v883_v39  ;;  %vm882_vm3 = vcmp.eq.f32.partialorder %v881_v38, 8.507059e+37 }
  0xd5   : > { %v1322_v15 = vld [vmem:[#allocation2] sm:$0x3f]  ;;  %1293 = vst.msk [vmem:[#allocation2 + $0x8] sm:$0xff] %vm5072_vm5, %v1263_v7  ;;  %v860_v16 = vmul.f32 %v3130_v62, %v859_v9  ;;  %1406 = vrot.lane.b32.xlu1 %v1404_v14, %s3279_s28  ;;  %vm867_vm14 = vcmp.eq.f32.partialorder %v866_v8, 8.507059e+37  ;;  %vm1329_vm11 = vcmask 261126  }
  0xd6   : > { %1324 = vst.msk [vmem:[#allocation3] sm:$0x3f] %vm1323_vm10, %v1322_v15  ;;  %v716_v22 = vsub.f32 0.0, %v3538_v17  ;;  %v377_v7 = vld [vmem:[%s3396_s27 + $0x180] sm:$0xff]  ;;  %v382_v15 = vld [vmem:[%s3396_s27 + $0x1a8] sm:$0xff] }
  0xd7   : > { %v861_v19 = vadd.f32 %v3130_v62, %v860_v16 }
  0xd8   : > { %v3132_v20 = vpop.eup %3131  ;;  %v538_v23 = vpop.f32.mrf.mxu0  ;;  %v750_v32 = vmul.f32 1.442695, %v716_v22 }
  0xd9   : > { %v3134_v25 = vpop.eup %3133  ;;  %v865_v26 = vsel %vm864_vm13, %v3130_v62, %v861_v19  ;;  %v873_v27 = vmul.f32 %v3132_v20, %v3523_v0  ;;  %v539_v28 = vadd.f32 %v3476_v60, %v538_v23  ;;  %v3553_v36 = vpop.f32.mrf.mxu1  ;;  %vm878_vm15 = vweird.f32 %v3132_v20 }
  0xda   : > { %v870_v29 = vsel %vm867_vm14, %v869_v21, %v865_v26  ;;  %v3547_v30 = vadd.f32 1.0, %v3134_v25  ;;  %vm879_vm2 = vmor %vm877_vm1, %vm878_vm15 }
  0xdb   : > { %v1264_v33 = vmul.f32 %v870_v29, %v3495_v18  ;;  %v874_v34 = vsub.f32 1.0, %v873_v27  ;;  %v3551_v35 = vadd.f32 %v3515_v52, %v539_v28  ;;  %585 = vmatmul.f32.gmra.mxu0 %v373_v24 }
  0xdc   : > { %3135 = vrcp.f32 %v3547_v30  ;;  %v1453_v40 = vld [vmem:[#allocation2 + $0x9] sm:$0x3f]  ;;  %3091 = vmatmul.msk.f32.gmra.mxu1 %vm5068_vm0, %v378_v37  ;;  %v896_v3 = vand.u32 2147483647, %v3547_v30  ;;  %vm892_vm6 = vweird.f32 %v3547_v30 }
  0xdd   : > { %1294 = vst.msk [vmem:[#allocation2 + $0x10] sm:$0xff] %vm5072_vm5, %v1264_v33  ;;  %v875_v41 = vmul.f32 %v3132_v20, %v874_v34  ;;  %3137 = vpow2.f32 %v750_v32  ;;  %v717_v18 = vsub.f32 0.0, %v3551_v35  ;;  %1455 = vrot.lane.b32.xlu2 %v1453_v40, %s3280_s29  ;;  %v1355_v42 = vld [vmem:[#allocation2 + $0x8] sm:$0x3f]  ;;  %v379_v32 = vld [vmem:[%s3396_s27 + $0x190] sm:$0xff] }
  0xde   : > { %1357 = vrot.lane.b32.xlu0 %v1355_v42, %s3281_s11  ;;  %vm897_vm8 = vcmp.eq.f32.partialorder %v896_v3, 8.507059e+37 }
  0xdf   : > { %v876_v43 = vadd.f32 %v3132_v20, %v875_v41  ;;  %v752_v44 = vmul.f32 1.442695, %v717_v18 }
  0xe0   : > { %v541_v46 = vpop.f32.mrf.mxu0 }
  0xe1   : > { %v880_v48 = vsel %vm879_vm2, %v3132_v20, %v876_v43  ;;  %3139 = vpow2.f32 %v752_v44  ;;  %v542_v49 = vadd.f32 %v3476_v60, %v541_v46  ;;  %v3572_v56 = vpop.f32.mrf.mxu1 }
  0xe2   : > { %v3136_v50 = vpop.eup %3135  ;;  %v885_v51 = vsel %vm882_vm3, %v884_v45, %v880_v48  ;;  %vm5069_vm3 = vcmask 257024  }
  0xe3   : > { %v3138_v52 = vpop.eup %3137  ;;  %v1265_v53 = vmul.f32 %v885_v51, %v3502_v31  ;;  %v888_v54 = vmul.f32 %v3136_v50, %v3547_v30  ;;  %v3570_v55 = vadd.f32 %v3529_v10, %v542_v49  ;;  %588 = vmatmul.f32.gmra.mxu0 %v375_v47  ;;  %v898_v31 = vand.u32 2147483648, %v3547_v30 }
  0xe4   : > { %v3575_v59 = vadd.f32 1.0, %v3138_v52  ;;  %v1572_v61 = vld [vmem:[#allocation2 + $0x10] sm:$0x3f]  ;;  %3092 = vmatmul.msk.f32.gmra.mxu1 %vm5068_vm0, %v380_v58  ;;  %vm893_vm4 = vweird.f32 %v3136_v50 }
  0xe5   : > { %v1502_v62 = vld [vmem:[#allocation2 + $0xf] sm:$0x3f]  ;;  %1295 = vst.msk [vmem:[#allocation2 + $0x18] sm:$0xff] %vm5072_vm5, %v1265_v53  ;;  %v889_v63 = vsub.f32 1.0, %v888_v54  ;;  %v718_v0 = vsub.f32 0.0, %v3570_v55  ;;  %1574 = vrot.lane.b32.xlu2 %v1572_v61, %s3279_s28  ;;  %vm894_vm7 = vmor %vm892_vm6, %vm893_vm4  ;;  %v899_v11 = vor.u32 1.1754944e-38, %v898_v31 }
  0xe6   : > { %3141 = vrcp.f32 %v3575_v59  ;;  %1503 = vst.msk [vmem:[#allocation3 + $0x8] sm:$0x3f] %vm1323_vm10, %v1502_v62  ;;  %v911_v28 = vand.u32 2147483647, %v3575_v59  ;;  %vm907_vm12 = vweird.f32 %v3575_v59  ;;  %v381_v62 = vld [vmem:[%s3396_s27 + $0x1a0] sm:$0xff] }
  0xe7   : > { %v3140_v1 = vpop.eup %3139  ;;  %v890_v2 = vmul.f32 %v3136_v50, %v889_v63  ;;  %v754_v4 = vmul.f32 1.442695, %v718_v0 }
  0xe8   : > { %v3585_v5 = vadd.f32 1.0, %v3140_v1  ;;  %v544_v6 = vpop.f32.mrf.mxu0  ;;  %vm912_vm14 = vcmp.eq.f32.partialorder %v911_v28, 8.507059e+37 }
  0xe9   : > { %v891_v9 = vadd.f32 %v3136_v50, %v890_v2  ;;  %3143 = vpow2.f32 %v754_v4  ;;  %v545_v10 = vadd.f32 %v3476_v60, %v544_v6  ;;  %v3594_v14 = vpop.f32.mrf.mxu1 }
  0xea   : > { %3145 = vrcp.f32 %v3585_v5  ;;  %v926_v41 = vand.u32 2147483647, %v3585_v5  ;;  %v928_v18 = vand.u32 2147483648, %v3585_v5  ;;  %vm922_vm1 = vweird.f32 %v3585_v5 }
  0xeb   : > { %v895_v12 = vsel %vm894_vm7, %v3136_v50, %v891_v9  ;;  %v3592_v13 = vadd.f32 %v3553_v36, %v545_v10  ;;  %591 = vmatmul.f32.gmra.mxu0 %v377_v7 }
  0xec   : > { %v3142_v16 = vpop.eup %3141  ;;  %v900_v8 = vsel %vm897_vm8, %v899_v11, %v895_v12  ;;  %v1529_v19 = vld [vmem:[#allocation2 + $0x17] sm:$0x3f]  ;;  %3093 = vmatmul.msk.f32.gmra.mxu1 %vm5068_vm0, %v382_v15  ;;  %v929_v58 = vor.u32 1.1754944e-38, %v928_v18  ;;  %vm927_vm4 = vcmp.eq.f32.partialorder %v926_v41, 8.507059e+37 }
  0xed   : > { %v1615_v20 = vld [vmem:[#allocation2 + $0x18] sm:$0x3f]  ;;  %v1266_v21 = vmul.f32 %v900_v8, %v3519_v57  ;;  %v903_v22 = vmul.f32 %v3142_v16, %v3575_v59  ;;  %v719_v23 = vsub.f32 0.0, %v3592_v13  ;;  %1531 = vrot.lane.b32.xlu0 %v1529_v19, %s3281_s11  ;;  %v913_v57 = vand.u32 2147483648, %v3575_v59 }
  0xee   : > { %1617 = vrot.lane.b32.xlu1 %v1615_v20, %s3280_s29  ;;  %vm908_vm9 = vweird.f32 %v3142_v16 }
  0xef   : > { %v3144_v24 = vpop.eup %3143  ;;  %1296 = vst.msk [vmem:[#allocation2 + $0x20] sm:$0xff] %vm5072_vm5, %v1266_v21  ;;  %v904_v25 = vsub.f32 1.0, %v903_v22  ;;  %v756_v26 = vmul.f32 1.442695, %v719_v23  ;;  %vm909_vm13 = vmor %vm907_vm12, %vm908_vm9  ;;  %v914_v40 = vor.u32 1.1754944e-38, %v913_v57 }
  0xf0   : > { %v3146_v27 = vpop.eup %3145  ;;  %v3606_v29 = vadd.f32 1.0, %v3144_v24  ;;  %v547_v30 = vpop.f32.mrf.mxu0 }
  0xf1   : > { %v905_v33 = vmul.f32 %v3142_v16, %v904_v25  ;;  %v918_v34 = vmul.f32 %v3146_v27, %v3585_v5  ;;  %3147 = vpow2.f32 %v756_v26  ;;  %v548_v38 = vadd.f32 %v3476_v60, %v547_v30  ;;  %v3613_v39 = vpop.f32.mrf.mxu1 }
  0xf2   : > { %3149 = vrcp.f32 %v3606_v29  ;;  %vm923_vm15 = vweird.f32 %v3146_v27  ;;  %v943_v5 = vand.u32 2147483648, %v3606_v29  ;;  %v941_v9 = vand.u32 2147483647, %v3606_v29 }
  0xf3   : > { %v906_v36 = vadd.f32 %v3142_v16, %v905_v33  ;;  %v919_v37 = vsub.f32 1.0, %v918_v34  ;;  %594 = vmatmul.f32.gmra.mxu0 %v379_v32  ;;  %v3618_v44 = vadd.f32 %v3572_v56, %v548_v38  ;;  %vm924_vm2 = vmor %vm922_vm1, %vm923_vm15  ;;  %vm937_vm7 = vweird.f32 %v3606_v29 }
  0xf4   : > { %v944_v12 = vor.u32 1.1754944e-38, %v943_v5  ;;  %vm942_vm9 = vcmp.eq.f32.partialorder %v941_v9, 8.507059e+37 }
  0xf5   : > { %v910_v42 = vsel %vm909_vm13, %v3142_v16, %v906_v36  ;;  %v920_v43 = vmul.f32 %v3146_v27, %v919_v37  ;;  %v720_v52 = vsub.f32 0.0, %v3618_v44 }
  0xf6   : > { %v915_v45 = vsel %vm912_vm14, %v914_v40, %v910_v42  ;;  %v1728_v46 = vld [vmem:[#allocation2 + $0x1f] sm:$0x3f] }
  0xf7   : > { %v1411_v47 = vld [vmem:[#allocation2 + $0x1f] sm:$0x3f]  ;;  %v3148_v49 = vpop.eup %3147  ;;  %v1267_v50 = vmul.f32 %v915_v45, %v3538_v17  ;;  %v921_v51 = vadd.f32 %v3146_v27, %v920_v43  ;;  %1730 = vrot.lane.b32.xlu2 %v1728_v46, %s3279_s28  ;;  %v758_v31 = vmul.f32 1.442695, %v720_v52 }
  0xf8   : > { %v1658_v48 = vld [vmem:[#allocation2 + $0x1e] sm:$0x3f]  ;;  %v1413_v53 = vrot.slane %v1411_v47, 2  ;;  %v3150_v56 = vpop.eup %3149  ;;  %v3626_v59 = vadd.f32 1.0, %v3148_v49  ;;  %v550_v61 = vpop.f32.mrf.mxu0 }
  0xf9   : > { %1659 = vst.msk [vmem:[#allocation3 + $0x10] sm:$0x3f] %vm1323_vm10, %v1658_v48  ;;  %v1325_v54 = vld [vmem:[#allocation2 + $0x1e] sm:$0x3f]  ;;  %v925_v17 = vsel %vm924_vm2, %v3146_v27, %v921_v51  ;;  %v933_v0 = vmul.f32 %v3150_v56, %v3606_v29  ;;  %v3635_v4 = vpop.f32.mrf.mxu1  ;;  %v551_v6 = vadd.f32 %v3476_v60, %v550_v61  ;;  %vm938_vm6 = vweird.f32 %v3150_v56 }
  0xfa   : > { %v1327_v63 = vrot.slane %v1325_v54, 2  ;;  %1297 = vst.msk [vmem:[#allocation2 + $0x28] sm:$0xff] %vm5072_vm5, %v1267_v50  ;;  %1414 = vrot.lane.b32.xlu1 %v1413_v53, %s3279_s28  ;;  %v930_v1 = vsel %vm927_vm4, %v929_v58, %v925_v17  ;;  %3151 = vrcp.f32 %v3626_v59  ;;  %vm939_vm8 = vmor %vm937_vm7, %vm938_vm6  ;;  %v956_v30 = vand.u32 2147483647, %v3626_v59 }
  0xfb   : > { %v1268_v2 = vmul.f32 %v930_v1, %v3551_v35  ;;  %v934_v3 = vsub.f32 1.0, %v933_v0  ;;  %3153 = vpow2.f32 %v758_v31  ;;  %597 = vmatmul.f32.gmra.mxu0 %v381_v62  ;;  %v3643_v10 = vadd.f32 %v3594_v14, %v551_v6 }
  0xfc   : > { %1330 = vst.msk [vmem:[#allocation3] sm:$0xc0] %vm1329_vm11, %v1327_v63  ;;  %v958_v32 = vand.u32 2147483648, %v3626_v59  ;;  %vm952_vm13 = vweird.f32 %v3626_v59  ;;  %vm957_vm15 = vcmp.eq.f32.partialorder %v956_v30, 8.507059e+37  ;;  %vm1337_vm7 = vcmask 261124  }
  0xfd   : > { %1332 = vst.msk [vmem:[#allocation3 + $0x20] sm:$0xf] %vm5069_vm3, %v1327_v63  ;;  %v935_v7 = vmul.f32 %v3150_v56, %v934_v3  ;;  %v721_v15 = vsub.f32 0.0, %v3643_v10 }
  0xfe   : > { %1298 = vst.msk [vmem:[#allocation2 + $0x30] sm:$0xff] %vm5072_vm5, %v1268_v2  ;;  %v959_v18 = vor.u32 1.1754944e-38, %v958_v32 }
  0xff   : > { %v936_v35 = vadd.f32 %v3150_v56, %v935_v7  ;;  %v760_v26 = vmul.f32 1.442695, %v721_v15 }
 0x100   : > { %v3152_v11 = vpop.eup %3151  ;;  %v553_v19 = vpop.f32.mrf.mxu0 }
 0x101   : > { %v1685_v16 = vld [vmem:[#allocation2 + $0x26] sm:$0x3f]  ;;  %v3154_v20 = vpop.eup %3153  ;;  %v940_v21 = vsel %vm939_vm8, %v3150_v56, %v936_v35  ;;  %v948_v22 = vmul.f32 %v3152_v11, %v3626_v59  ;;  %v554_v27 = vadd.f32 %v3476_v60, %v553_v19  ;;  %v3655_v29 = vpop.f32.mrf.mxu1  ;;  %vm953_vm12 = vweird.f32 %v3152_v11 }
 0x102   : > { %v1460_v8 = vld [vmem:[#allocation2 + $0x27] sm:$0x3f]  ;;  %1687 = vrot.lane.b32.xlu0 %v1685_v16, %s3281_s11  ;;  %v945_v24 = vsel %vm942_vm9, %v944_v12, %v940_v21  ;;  %v3649_v25 = vadd.f32 1.0, %v3154_v20  ;;  %vm954_vm14 = vmor %vm952_vm13, %vm953_vm12  ;;  %vm1339_vm8 = vcmask 254976  }
 0x103   : > { %v1462_v14 = vrot.slane %v1460_v8, 2  ;;  %v1771_v23 = vld [vmem:[#allocation2 + $0x27] sm:$0x3f]  ;;  %v1269_v28 = vmul.f32 %v945_v24, %v3570_v55  ;;  %v949_v57 = vsub.f32 1.0, %v948_v22  ;;  %v3662_v36 = vadd.f32 %v3613_v39, %v554_v27 }
 0x104   : > { %1773 = vrot.lane.b32.xlu1 %v1771_v23, %s3280_s29  ;;  %3155 = vrcp.f32 %v3649_v25  ;;  %v1362_v33 = vld [vmem:[#allocation2 + $0x26] sm:$0x3f]  ;;  %v971_v62 = vand.u32 2147483647, %v3649_v25  ;;  %v973_v63 = vand.u32 2147483648, %v3649_v25  ;;  %vm967_vm2 = vweird.f32 %v3649_v25 }
 0x105   : > { %1463 = vrot.lane.b32.xlu2 %v1462_v14, %s3280_s29  ;;  %1299 = vst.msk [vmem:[#allocation2 + $0x38] sm:$0xff] %vm5072_vm5, %v1269_v28  ;;  %v950_v34 = vmul.f32 %v3152_v11, %v949_v57  ;;  %3157 = vpow2.f32 %v760_v26  ;;  %v1814_v55 = vld [vmem:[#allocation2 + $0x2d] sm:$0x3f]  ;;  %v722_v38 = vsub.f32 0.0, %v3662_v36  ;;  %v1364_v40 = vrot.slane %v1362_v33, 2 }
 0x106   : > { %1815 = vst.msk [vmem:[#allocation3 + $0x18] sm:$0x3f] %vm1323_vm10, %v1814_v55  ;;  %v1504_v41 = vld [vmem:[#allocation2 + $0x2d] sm:$0x3f]  ;;  %vm972_vm6 = vcmp.eq.f32.partialorder %v971_v62, 8.507059e+37  ;;  %v974_v9 = vor.u32 1.1754944e-38, %v973_v63 }
 0x107   : > { %v951_v37 = vadd.f32 %v3152_v11, %v950_v34  ;;  %v1506_v43 = vrot.slane %v1504_v41, 2  ;;  %v762_v46 = vmul.f32 1.442695, %v722_v38  ;;  %v1884_v49 = vld [vmem:[#allocation2 + $0x2e] sm:$0x3f] }
 0x108   : > { %v556_v42 = vpop.f32.mrf.mxu0  ;;  %v1578_v53 = vld [vmem:[#allocation2 + $0x2e] sm:$0x3f] }
 0x109   : > { %v955_v45 = vsel %vm954_vm14, %v3152_v11, %v951_v37  ;;  %v557_v39 = vadd.f32 %v3476_v60, %v556_v42  ;;  %1508 = vst.msk [vmem:[#allocation3 + $0x8] sm:$0xc0] %vm1329_vm11, %v1506_v43  ;;  %3159 = vpow2.f32 %v762_v46  ;;  %v3673_v54 = vpop.f32.mrf.mxu1  ;;  %v1580_v17 = vrot.slane %v1578_v53, 2 }
 0x10a   : > { %1365 = vrot.lane.b32.xlu0 %v1364_v40, %s3281_s11  ;;  %v3156_v47 = vpop.eup %3155  ;;  %v960_v48 = vsel %vm957_vm15, %v959_v18, %v955_v45  ;;  %1509 = vst.msk [vmem:[#allocation3 + $0x28] sm:$0xf] %vm5069_vm3, %v1506_v43 }
 0x10b   : > { %v3158_v50 = vpop.eup %3157  ;;  %v1270_v51 = vmul.f32 %v960_v48, %v3592_v13  ;;  %v963_v52 = vmul.f32 %v3156_v47, %v3649_v25  ;;  %v3679_v58 = vadd.f32 %v3635_v4, %v557_v39  ;;  %vm968_vm1 = vweird.f32 %v3156_v47 }
 0x10c   : > { %v3676_v56 = vadd.f32 1.0, %v3158_v50  ;;  %v1927_v59 = vld [vmem:[#allocation2 + $0x36] sm:$0x3f]  ;;  %vm969_vm4 = vmor %vm967_vm2, %vm968_vm1 }
 0x10d   : > { %1886 = vrot.lane.b32.xlu2 %v1884_v49, %s3279_s28  ;;  %v1621_v61 = vld [vmem:[#allocation2 + $0x36] sm:$0x3f]  ;;  %1300 = vst.msk [vmem:[#allocation2 + $0x40] sm:$0xff] %vm5072_vm5, %v1270_v51  ;;  %v964_v13 = vsub.f32 1.0, %v963_v52  ;;  %1929 = vrot.lane.b32.xlu1 %v1927_v59, %s3280_s29  ;;  %v723_v31 = vsub.f32 0.0, %v3679_v58 }
 0x10e   : > { %3161 = vrcp.f32 %v3676_v56  ;;  %v1623_v1 = vrot.slane %v1621_v61, 2  ;;  %v1535_v3 = vld [vmem:[#allocation2 + $0x35] sm:$0x3f]  ;;  %v986_v26 = vand.u32 2147483647, %v3676_v56  ;;  %vm982_vm12 = vweird.f32 %v3676_v56 }
 0x10f   : > { %v965_v0 = vmul.f32 %v3156_v47, %v964_v13  ;;  %v3160_v4 = vpop.eup %3159  ;;  %v764_v6 = vmul.f32 1.442695, %v723_v31  ;;  %v1537_v15 = vrot.slane %v1535_v3, 2  ;;  %v1841_v24 = vld [vmem:[#allocation2 + $0x35] sm:$0x3f] }
 0x110   : > { %v559_v2 = vpop.f32.mrf.mxu0  ;;  %v3690_v35 = vadd.f32 1.0, %v3160_v4  ;;  %vm987_vm14 = vcmp.eq.f32.partialorder %v986_v26, 8.507059e+37 }
 0x111   : > { %v966_v5 = vadd.f32 %v3156_v47, %v965_v0  ;;  %v560_v7 = vadd.f32 %v3476_v60, %v559_v2  ;;  %3163 = vpow2.f32 %v764_v6  ;;  %v3696_v16 = vpop.f32.mrf.mxu1 }
 0x112   : > { %1581 = vrot.lane.b32.xlu0 %v1580_v17, %s3279_s28  ;;  %3165 = vrcp.f32 %v3690_v35  ;;  %v1003_v50 = vand.u32 2147483648, %v3690_v35  ;;  %vm997_vm1 = vweird.f32 %v3690_v35 }
 0x113   : > { %v970_v11 = vsel %vm969_vm4, %v3156_v47, %v966_v5  ;;  %v3694_v12 = vadd.f32 %v3655_v29, %v560_v7  ;;  %v1001_v47 = vand.u32 2147483647, %v3690_v35 }
 0x114   : > { %v3162_v8 = vpop.eup %3161  ;;  %v975_v19 = vsel %vm972_vm6, %v974_v9, %v970_v11  ;;  %v1333_v22 = vld [vmem:[#allocation2 + $0x3c] sm:$0x3f]  ;;  %v1004_v31 = vor.u32 1.1754944e-38, %v1003_v50 }
 0x115   : > { %1624 = vrot.lane.b32.xlu2 %v1623_v1, %s3280_s29  ;;  %v1271_v20 = vmul.f32 %v975_v19, %v3618_v44  ;;  %v978_v21 = vmul.f32 %v3162_v8, %v3676_v56  ;;  %1538 = vrot.lane.b32.xlu1 %v1537_v15, %s3281_s11  ;;  %v1660_v14 = vld [vmem:[#allocation2 + $0x3c] sm:$0x3f]  ;;  %v724_v23 = vsub.f32 0.0, %v3694_v12  ;;  %v1335_v27 = vrot.slane %v1333_v22, 4 }
 0x116   : > { %v1662_v28 = vrot.slane %v1660_v14, 2  ;;  %v988_v44 = vand.u32 2147483648, %v3676_v56  ;;  %v1421_v30 = vld [vmem:[#allocation2 + $0x3d] sm:$0x3f]  ;;  %vm983_vm9 = vweird.f32 %v3162_v8  ;;  %vm1002_vm4 = vcmp.eq.f32.partialorder %v1001_v47, 8.507059e+37 }
 0x117   : > { %1301 = vst.msk [vmem:[#allocation2 + $0x48] sm:$0xff] %vm5072_vm5, %v1271_v20  ;;  %v979_v25 = vsub.f32 1.0, %v978_v21  ;;  %v766_v57 = vmul.f32 1.442695, %v724_v23  ;;  %v3164_v32 = vpop.eup %3163  ;;  %v1734_v18 = vld [vmem:[#allocation2 + $0x3d] sm:$0x3f]  ;;  %vm984_vm13 = vmor %vm982_vm12, %vm983_vm9 }
 0x118   : > { %v562_v29 = vpop.f32.mrf.mxu0  ;;  %1338 = vst.msk [vmem:[#allocation3 + $0x20] sm:$0xf0] %vm1337_vm7, %v1335_v27  ;;  %v3166_v55 = vpop.eup %3165  ;;  %v3710_v37 = vadd.f32 1.0, %v3164_v32  ;;  %v1423_v42 = vrot.slane %v1421_v30, 4  ;;  %v989_v45 = vor.u32 1.1754944e-38, %v988_v44  ;;  %v1736_v51 = vrot.slane %v1734_v18, 2 }
 0x119   : > { %v980_v33 = vmul.f32 %v3162_v8, %v979_v25  ;;  %v563_v34 = vadd.f32 %v3476_v60, %v562_v29  ;;  %3167 = vpow2.f32 %v766_v57  ;;  %1340 = vst.msk [vmem:[#allocation3 + $0x40] sm:$0x3] %vm1339_vm8, %v1335_v27  ;;  %v993_v40 = vmul.f32 %v3166_v55, %v3690_v35  ;;  %v3717_v43 = vpop.f32.mrf.mxu1 }
 0x11a   : > { %1843 = vrot.lane.b32.xlu0 %v1841_v24, %s3281_s11  ;;  %1664 = vst.msk [vmem:[#allocation3 + $0x10] sm:$0xc0] %vm1329_vm11, %v1662_v28  ;;  %3169 = vrcp.f32 %v3710_v37  ;;  %vm998_vm15 = vweird.f32 %v3166_v55  ;;  %v1016_v15 = vand.u32 2147483647, %v3710_v37  ;;  %vm1012_vm9 = vweird.f32 %v3710_v37 }
 0x11b   : > { %v981_v38 = vadd.f32 %v3162_v8, %v980_v33  ;;  %v3715_v41 = vadd.f32 %v3673_v54, %v563_v34  ;;  %1665 = vst.msk [vmem:[#allocation3 + $0x30] sm:$0xf] %vm5069_vm3, %v1662_v28  ;;  %v994_v39 = vsub.f32 1.0, %v993_v40  ;;  %vm999_vm2 = vmor %vm997_vm1, %vm998_vm15 }
 0x11d   : > { %v985_v46 = vsel %vm984_vm13, %v3162_v8, %v981_v38  ;;  %v725_v48 = vsub.f32 0.0, %v3715_v41  ;;  %1424 = vrot.lane.b32.xlu1 %v1423_v42, %s3279_s28  ;;  %v995_v54 = vmul.f32 %v3166_v55, %v994_v39  ;;  %v1018_v8 = vand.u32 2147483648, %v3710_v37 }
 0x11e   : > { %v990_v49 = vsel %vm987_vm14, %v989_v45, %v985_v46  ;;  %v1470_v52 = vld [vmem:[#allocation2 + $0x45] sm:$0x3f]  ;;  %vm1017_vm13 = vcmp.eq.f32.partialorder %v1016_v15, 8.507059e+37  ;;  %vm1345_vm14 = vcmask 261122  }
 0x11f   : > { %v1272_v53 = vmul.f32 %v990_v49, %v3643_v10  ;;  %v768_v56 = vmul.f32 1.442695, %v725_v48  ;;  %v1472_v59 = vrot.slane %v1470_v52, 4  ;;  %v3168_v61 = vpop.eup %3167  ;;  %v1691_v62 = vld [vmem:[#allocation2 + $0x44] sm:$0x3f]  ;;  %v996_v63 = vadd.f32 %v3166_v55, %v995_v54 }
 0x120   : > { %v565_v13 = vpop.f32.mrf.mxu0  ;;  %v3730_v17 = vadd.f32 1.0, %v3168_v61  ;;  %v3170_v0 = vpop.eup %3169  ;;  %v1372_v3 = vld [vmem:[#allocation2 + $0x44] sm:$0x3f]  ;;  %v1693_v4 = vrot.slane %v1691_v62, 2  ;;  %v1019_v28 = vor.u32 1.1754944e-38, %v1018_v8 }
 0x121   : > { %1302 = vst.msk [vmem:[#allocation2 + $0x50] sm:$0xff] %vm5072_vm5, %v1272_v53  ;;  %3171 = vpow2.f32 %v768_v56  ;;  %1473 = vrot.lane.b32.xlu2 %v1472_v59, %s3280_s29  ;;  %v566_v10 = vadd.f32 %v3476_v60, %v565_v13  ;;  %v1000_v1 = vsel %vm999_vm2, %v3166_v55, %v996_v63  ;;  %v1008_v2 = vmul.f32 %v3170_v0, %v3710_v37  ;;  %v3738_v5 = vpop.f32.mrf.mxu1  ;;  %v1777_v7 = vld [vmem:[#allocation2 + $0x45] sm:$0x3f]  ;;  %v3794_v13 = vld [vmem:[%s5060_s2] ss:$0 sm:$0xff] }
 0x122   : > { %1737 = vrot.lane.b32.xlu0 %v1736_v51, %s3279_s28  ;;  %3173 = vrcp.f32 %v3730_v17  ;;  %v1005_v6 = vsel %vm1002_vm4, %v1004_v31, %v1000_v1  ;;  %v1374_v19 = vrot.slane %v1372_v3, 4  ;;  %vm1013_vm6 = vweird.f32 %v3170_v0 }
 0x123   : > { %v1273_v9 = vmul.f32 %v1005_v6, %v3662_v36  ;;  %v1009_v35 = vsub.f32 1.0, %v1008_v2  ;;  %v3742_v11 = vadd.f32 %v3696_v16, %v566_v10  ;;  %v1779_v14 = vrot.slane %v1777_v7, 2  ;;  %vm1014_vm12 = vmor %vm1012_vm9, %vm1013_vm6 }
 0x124   : > { %v1031_v30 = vand.u32 2147483647, %v3730_v17  ;;  %v1033_v32 = vand.u32 2147483648, %v3730_v17  ;;  %vm1027_vm15 = vweird.f32 %v3730_v17 }
 0x125   : > { %1694 = vrot.lane.b32.xlu1 %v1693_v4, %s3281_s11  ;;  %1303 = vst.msk [vmem:[#allocation2 + $0x58] sm:$0xff] %vm5072_vm5, %v1273_v9  ;;  %v1010_v21 = vmul.f32 %v3170_v0, %v1009_v35  ;;  %v726_v22 = vsub.f32 0.0, %v3742_v11 }
 0x126   : > { %vm3774_vm2 = vcmp.eq.f32.partialorder %v1031_v30, 8.507059e+37  ;;  %v1034_v51 = vor.u32 1.1754944e-38, %v1033_v32 }
 0x127   : > { %v3172_v20 = vpop.eup %3171  ;;  %v1011_v24 = vadd.f32 %v3170_v0, %v1010_v21  ;;  %v770_v25 = vmul.f32 1.442695, %v726_v22 }
 0x128   : > { %v3749_v36 = vadd.f32 1.0, %v3172_v20  ;;  %v568_v23 = vpop.f32.mrf.mxu0  ;;  %v3751_v16 = vpop.eup %3173  ;;  %v1586_v27 = vld [vmem:[#allocation2 + $0x4c] sm:$0x3f] }
 0x129   : > { %1780 = vrot.lane.b32.xlu2 %v1779_v14, %s3280_s29  ;;  %v569_v26 = vadd.f32 %v3476_v60, %v568_v23  ;;  %v1023_v44 = vmul.f32 %v3751_v16, %v3730_v17  ;;  %v1510_v57 = vld [vmem:[#allocation2 + $0x4b] sm:$0x3f]  ;;  %v1015_v29 = vsel %vm1014_vm12, %v3170_v0, %v1011_v24  ;;  %v3762_v33 = vpop.f32.mrf.mxu1  ;;  %v1588_v38 = vrot.slane %v1586_v27, 4 }
 0x12a   : > { %1375 = vrot.lane.b32.xlu0 %v1374_v19, %s3281_s11  ;;  %3175 = vrcp.f32 %v3749_v36  ;;  %v1020_v34 = vsel %vm1017_vm13, %v1019_v28, %v1015_v29  ;;  %v1890_v37 = vld [vmem:[#allocation2 + $0x4c] sm:$0x3f]  ;;  %v1512_v42 = vrot.slane %v1510_v57, 4  ;;  %vm1028_vm1 = vweird.f32 %v3751_v16 }
 0x12b   : > { %3177 = vpow2.f32 %v770_v25  ;;  %v1024_v60 = vsub.f32 1.0, %v1023_v44  ;;  %v3765_v55 = vadd.f32 %v3717_v43, %v569_v26  ;;  %v1816_v40 = vld [vmem:[#allocation2 + $0x4b] sm:$0x3f]  ;;  %v1274_v18 = vmul.f32 %v1020_v34, %v3679_v58  ;;  %vm3784_vm4 = vmor %vm1027_vm15, %vm1028_vm1 }
 0x12c   : > { %v1629_v39 = vld [vmem:[#allocation2 + $0x54] sm:$0x3f]  ;;  %v1892_v58 = vrot.slane %v1890_v37, 2  ;;  %v1818_v48 = vrot.slane %v1816_v40, 2  ;;  %v1046_v52 = vand.u32 2147483647, %v3749_v36  ;;  %vm1042_vm9 = vweird.f32 %v3749_v36 }
 0x12d   : > { %v1025_v45 = vmul.f32 %v3751_v16, %v1024_v60  ;;  %v727_v46 = vsub.f32 0.0, %v3765_v55  ;;  %1589 = vrot.lane.b32.xlu1 %v1588_v38, %s3279_s28  ;;  %1304 = vst.msk [vmem:[#allocation2 + $0x60] sm:$0xff] %vm5072_vm5, %v1274_v18  ;;  %v1631_v47 = vrot.slane %v1629_v39, 4  ;;  %v1847_v63 = vld [vmem:[#allocation2 + $0x53] sm:$0x3f]  ;;  %v1048_v35 = vand.u32 2147483648, %v3749_v36 }
 0x12e   : > { %1514 = vst.msk [vmem:[#allocation3 + $0x28] sm:$0xf0] %vm1337_vm7, %v1512_v42  ;;  %v1341_v17 = vld [vmem:[#allocation2 + $0x5a] sm:$0x3f]  ;;  %v1543_v6 = vld [vmem:[#allocation2 + $0x53] sm:$0x3f] }
 0x12f   : > { %v1026_v50 = vadd.f32 %v3751_v16, %v1025_v45  ;;  %v772_v53 = vmul.f32 1.442695, %v727_v46  ;;  %1515 = vst.msk [vmem:[#allocation3 + $0x48] sm:$0x3] %vm1339_vm8, %v1512_v42  ;;  %v1343_v31 = vrot.slane %v1341_v17, 6  ;;  %v1849_v15 = vrot.slane %v1847_v63, 2 }
 0x130   : > { %v3176_v49 = vpop.eup %3175  ;;  %v571_v54 = vpop.f32.mrf.mxu0  ;;  %v1666_v1 = vld [vmem:[#allocation2 + $0x5a] sm:$0x3f]  ;;  %1820 = vst.msk [vmem:[#allocation3 + $0x18] sm:$0xc0] %vm1329_vm11, %v1818_v48  ;;  %v1933_v8 = vld [vmem:[#allocation2 + $0x54] sm:$0x3f] }
 0x131   : > { %v3178_v56 = vpop.eup %3177  ;;  %v1038_v61 = vmul.f32 %v3176_v49, %v3749_v36  ;;  %1632 = vrot.lane.b32.xlu2 %v1631_v47, %s3280_s29  ;;  %v572_v62 = vadd.f32 %v3794_v13, %v571_v54  ;;  %v1030_v10 = vsel %vm3784_vm4, %v3751_v16, %v1026_v50  ;;  %3179 = vpow2.f32 %v772_v53  ;;  %v3809_v7 = vpop.f32.mrf.mxu1  ;;  %1821 = vst.msk [vmem:[#allocation3 + $0x38] sm:$0xf] %vm5069_vm3, %v1818_v48 }
 0x132   : > { %1893 = vrot.lane.b32.xlu0 %v1892_v58, %s3279_s28  ;;  %v3801_v0 = vadd.f32 1.0, %v3178_v56  ;;  %v1035_v2 = vsel %vm3774_vm2, %v1034_v51, %v1030_v10  ;;  %vm1043_vm6 = vweird.f32 %v3176_v49  ;;  %1346 = vst.msk [vmem:[#allocation3 + $0x40] sm:$0xfc] %vm1345_vm14, %v1343_v31  ;;  %v1668_v20 = vrot.slane %v1666_v1, 4 }
 0x133   : > { %v1039_v3 = vsub.f32 1.0, %v1038_v61  ;;  %v3807_v4 = vadd.f32 %v3738_v5, %v572_v62  ;;  %v1275_v9 = vmul.f32 %v1035_v2, %v3694_v12  ;;  %v1545_v22 = vrot.slane %v1543_v6, 4  ;;  %vm1044_vm12 = vmor %vm1042_vm9, %vm1043_vm6 }
 0x134   : > { %3181 = vrcp.f32 %v3801_v0  ;;  %v1935_v14 = vrot.slane %v1933_v8, 2  ;;  %vm1047_vm13 = vcmp.eq.f32.partialorder %v1046_v52, 8.507059e+37  ;;  %v1049_v16 = vor.u32 1.1754944e-38, %v1048_v35  ;;  %v1431_v27 = vld [vmem:[#allocation2 + $0x5b] sm:$0x3f] }
 0x135   : > { %v1040_v19 = vmul.f32 %v3176_v49, %v1039_v3  ;;  %v728_v5 = vsub.f32 0.0, %v3807_v4  ;;  %1305 = vst.msk [vmem:[#allocation2 + $0x68] sm:$0xff] %vm5072_vm5, %v1275_v9  ;;  %1850 = vrot.lane.b32.xlu1 %v1849_v15, %s3281_s11  ;;  %v1382_v34 = vld [vmem:[#allocation2 + $0x62] sm:$0x3f]  ;;  %v1433_v60 = vrot.slane %v1431_v27, 6  ;;  %v1063_v40 = vand.u32 2147483648, %v3801_v0 }
 0x136   : > { %1670 = vst.msk [vmem:[#allocation3 + $0x30] sm:$0xf0] %vm1337_vm7, %v1668_v20  ;;  %v1061_v46 = vand.u32 2147483647, %v3801_v0  ;;  %v1742_v48 = vld [vmem:[#allocation2 + $0x5b] sm:$0x3f]  ;;  %vm1057_vm1 = vweird.f32 %v3801_v0 }
 0x137   : > { %v1041_v12 = vadd.f32 %v3176_v49, %v1040_v19  ;;  %v774_v21 = vmul.f32 1.442695, %v728_v5  ;;  %v3180_v23 = vpop.eup %3179  ;;  %1671 = vst.msk [vmem:[#allocation3 + $0x50] sm:$0x3] %vm1339_vm8, %v1668_v20  ;;  %v1064_v54 = vor.u32 1.1754944e-38, %v1063_v40  ;;  %v1744_v61 = vrot.slane %v1742_v48, 4 }
 0x138   : > { %v574_v24 = vpop.f32.mrf.mxu0  ;;  %v3821_v26 = vadd.f32 1.0, %v3180_v23  ;;  %vm1062_vm4 = vcmp.eq.f32.partialorder %v1061_v46, 8.507059e+37  ;;  %v1699_v10 = vld [vmem:[#allocation2 + $0x62] sm:$0x3f]  ;;  %v2005_v23 = vld [vmem:[%s5061_s3 + $0x78] sm:$0xff]  ;;  %v2003_v40 = vld [vmem:[%s5061_s3 + $0x68] sm:$0xff] }
 0x139   : > { %v1045_v25 = vsel %vm1044_vm12, %v3176_v49, %v1041_v12  ;;  %3183 = vpow2.f32 %v774_v21  ;;  %1936 = vrot.lane.b32.xlu2 %v1935_v14, %s3280_s29  ;;  %v575_v36 = vadd.f32 %v3794_v13, %v574_v24  ;;  %v3831_v30 = vpop.f32.mrf.mxu1  ;;  %2058 = vmatpush.msra.mxu2 %v2005_v23  ;;  %v2002_v46 = vld [vmem:[%s5061_s3 + $0x60] sm:$0xff] }
 0x13a   : > { %1546 = vrot.lane.b32.xlu0 %v1545_v22, %s3281_s11  ;;  %v3182_v28 = vpop.eup %3181  ;;  %v1050_v44 = vsel %vm1047_vm13, %v1049_v16, %v1045_v25  ;;  %3185 = vrcp.f32 %v3821_v26  ;;  %v1078_v2 = vand.u32 2147483648, %v3821_v26  ;;  %v1076_v9 = vand.u32 2147483647, %v3821_v26 }
 0x13b   : > { %v1276_v57 = vmul.f32 %v1050_v44, %v3715_v41  ;;  %v1053_v29 = vmul.f32 %v3182_v28, %v3801_v0  ;;  %v3834_v32 = vadd.f32 %v3762_v33, %v575_v36  ;;  %vm1058_vm15 = vweird.f32 %v3182_v28 }
 0x13c   : > { %v1480_v38 = vld [vmem:[#allocation2 + $0x63] sm:$0x3f]  ;;  %v1384_v33 = vrot.slane %v1382_v34, 6  ;;  %v1516_v39 = vld [vmem:[#allocation2 + $0x69] sm:$0x3f]  ;;  %vm1059_vm2 = vmor %vm1057_vm1, %vm1058_vm15  ;;  %vm1072_vm9 = vweird.f32 %v3821_v26  ;;  %v1079_v12 = vor.u32 1.1754944e-38, %v1078_v2 }
 0x13d   : > { %1306 = vst.msk [vmem:[#allocation2 + $0x70] sm:$0xff] %vm5072_vm5, %v1276_v57  ;;  %v1054_v37 = vsub.f32 1.0, %v1053_v29  ;;  %v729_v18 = vsub.f32 0.0, %v3834_v32  ;;  %1434 = vrot.lane.b32.xlu1 %v1433_v60, %s3279_s28  ;;  %v1482_v41 = vrot.slane %v1480_v38, 6  ;;  %v1518_v49 = vrot.slane %v1516_v39, 6  ;;  %v1456_v29 = vpop.permute.xlu2 %1455 }
 0x13e   : > { %v1822_v53 = vld [vmem:[#allocation2 + $0x69] sm:$0x3f]  ;;  %v1785_v0 = vld [vmem:[#allocation2 + $0x63] sm:$0x3f]  ;;  %vm1360_vm15 = vcmask 521472   ;;  %vm5071_vm1 = vcmask 783872  }
 0x13f   : > { %v3184_v42 = vpop.eup %3183  ;;  %v1055_v45 = vmul.f32 %v3182_v28, %v1054_v37  ;;  %v776_v58 = vmul.f32 1.442695, %v729_v18  ;;  %1520 = vst.msk [vmem:[#allocation3 + $0x48] sm:$0xfc] %vm1345_vm14, %v1518_v49  ;;  %v1824_v31 = vrot.slane %v1822_v53, 4  ;;  %v1787_v15 = vrot.slane %v1785_v0, 4 }
 0x140   : > { %v3841_v43 = vadd.f32 1.0, %v3184_v42  ;;  %v577_v47 = vpop.f32.mrf.mxu0  ;;  %v3186_v50 = vpop.eup %3185  ;;  %v1594_v14 = vld [vmem:[#allocation2 + $0x6a] sm:$0x3f] }
 0x141   : > { %v1056_v51 = vadd.f32 %v3182_v28, %v1055_v45  ;;  %1483 = vrot.lane.b32.xlu2 %v1482_v41, %s3280_s29  ;;  %v578_v52 = vadd.f32 %v3794_v13, %v577_v47  ;;  %v1068_v56 = vmul.f32 %v3186_v50, %v3821_v26  ;;  %v3856_v3 = vpop.f32.mrf.mxu1  ;;  %vm1073_vm6 = vweird.f32 %v3186_v50  ;;  %1826 = vst.msk [vmem:[#allocation3 + $0x38] sm:$0xf0] %vm1337_vm7, %v1824_v31  ;;  %v1898_v49 = vld [vmem:[#allocation2 + $0x6a] sm:$0x3f] }
 0x142   : > { %1385 = vrot.lane.b32.xlu0 %v1384_v33, %s3281_s11  ;;  %3187 = vrcp.f32 %v3841_v43  ;;  %vm1074_vm12 = vmor %vm1072_vm9, %vm1073_vm6  ;;  %1827 = vst.msk [vmem:[#allocation3 + $0x58] sm:$0x3] %vm1339_vm8, %v1824_v31  ;;  %vm1077_vm7 = vcmp.eq.f32.partialorder %v1076_v9, 8.507059e+37  ;;  %v1091_v36 = vand.u32 2147483647, %v3841_v43  ;;  %v1093_v57 = vand.u32 2147483648, %v3841_v43 }
 0x143   : > { %v1060_v59 = vsel %vm1059_vm2, %v3182_v28, %v1056_v51  ;;  %3189 = vpow2.f32 %v776_v58  ;;  %v1069_v63 = vsub.f32 1.0, %v1068_v56  ;;  %v3852_v17 = vadd.f32 %v3809_v7, %v578_v52  ;;  %v2004_v28 = vld [vmem:[%s5061_s3 + $0x70] sm:$0xff]  ;;  %v2001_v56 = vld [vmem:[%s5061_s3 + $0x58] sm:$0xff] }
 0x144   : > { %v1065_v62 = vsel %vm1062_vm4, %v1064_v54, %v1060_v59  ;;  %v1701_v7 = vrot.slane %v1699_v10, 4  ;;  %v1551_v34 = vld [vmem:[#allocation2 + $0x71] sm:$0x3f]  ;;  %v1596_v60 = vrot.slane %v1594_v14, 6  ;;  %2059 = vmatpush.msra.mxu2 %v2004_v28  ;;  %vm1087_vm13 = vweird.f32 %v3841_v43 }
 0x145   : > { %v1277_v1 = vmul.f32 %v1065_v62, %v3742_v11  ;;  %v1070_v6 = vmul.f32 %v3186_v50, %v1069_v63  ;;  %v730_v35 = vsub.f32 0.0, %v3852_v17  ;;  %1745 = vrot.lane.b32.xlu1 %v1744_v61, %s3279_s28  ;;  %v1637_v37 = vld [vmem:[#allocation2 + $0x72] sm:$0x3f]  ;;  %vm5070_vm2 = vcmask 1046272  }
 0x146   : > { %2060 = vmatpush.msra.mxu2 %v2003_v40  ;;  %v1553_v41 = vrot.slane %v1551_v34, 6  ;;  %v1639_v42 = vrot.slane %v1637_v37, 6  ;;  %vm3908_vm6 = vcmp.eq.f32.partialorder %v1091_v36, 8.507059e+37  ;;  %v1094_v58 = vor.u32 1.1754944e-38, %v1093_v57  ;;  %v1855_v0 = vld [vmem:[#allocation2 + $0x71] sm:$0x3f] }
 0x147   : > { %1307 = vst.msk [vmem:[#allocation2 + $0x78] sm:$0xff] %vm5072_vm5, %v1277_v1  ;;  %v1071_v19 = vadd.f32 %v3186_v50, %v1070_v6  ;;  %v778_v11 = vmul.f32 1.442695, %v730_v35  ;;  %v1407_v53 = vpop.permute.xlu1 %1406  ;;  %v2000_v31 = vld [vmem:[%s5061_s3 + $0x50] sm:$0xff]  ;;  %v1900_v6 = vrot.slane %v1898_v49, 4  ;;  %v2021_v36 = vld [vmem:[%s5061_s3 + $0xf8] sm:$0xff] }
 0x148   : > { %v3862_v8 = vpop.eup %3187  ;;  %v580_v5 = vpop.f32.mrf.mxu0  ;;  %2061 = vmatpush.msra.mxu2 %v2002_v46  ;;  %v1941_v9 = vld [vmem:[#allocation2 + $0x72] sm:$0x3f]  ;;  %2090 = vmatpush.msra.mxu3 %v2021_v36 }
 0x149   : > { %v3190_v20 = vpop.eup %3189  ;;  %v1083_v21 = vmul.f32 %v3862_v8, %v3841_v43  ;;  %1788 = vrot.lane.b32.xlu2 %v1787_v15, %s3280_s29  ;;  %v581_v22 = vadd.f32 %v3794_v13, %v580_v5  ;;  %v1075_v16 = vsel %vm1074_vm12, %v3186_v50, %v1071_v19  ;;  %3191 = vpow2.f32 %v778_v11  ;;  %v3897_v45 = vpop.f32.mrf.mxu1  ;;  %v2020_v34 = vld [vmem:[%s5061_s3 + $0xf0] sm:$0xff] }
 0x14a   : > { %1702 = vrot.lane.b32.xlu0 %v1701_v7, %s3281_s11  ;;  %v3875_v24 = vadd.f32 1.0, %v3190_v20  ;;  %v1080_v25 = vsel %vm1077_vm7, %v1079_v12, %v1075_v16  ;;  %vm1088_vm8 = vweird.f32 %v3862_v8  ;;  %2062 = vmatpush.msra.mxu2 %v2001_v56  ;;  %v3940_v7 = vpop.permute.xlu2 %1574  ;;  %v1943_v20 = vrot.slane %v1941_v9, 4  ;;  %v1998_v12 = vld [vmem:[%s5061_s3 + $0x40] sm:$0xff] }
 0x14b   : > { %v1084_v26 = vsub.f32 1.0, %v1083_v21  ;;  %v3879_v27 = vadd.f32 %v3831_v30, %v581_v22  ;;  %v1278_v44 = vmul.f32 %v1080_v25, %v3765_v55  ;;  %vm3904_vm4 = vmor %vm1087_vm13, %vm1088_vm8  ;;  %2091 = vmatpush.msra.mxu3 %v2020_v34 }
 0x14c   : > { %3193 = vrcp.f32 %v3875_v24  ;;  %2063 = vmatpush.msra.mxu2 %v2000_v31  ;;  %v1108_v35 = vand.u32 2147483648, %v3875_v24  ;;  %v1106_v5 = vand.u32 2147483647, %v3875_v24  ;;  %vm1102_vm12 = vweird.f32 %v3875_v24 }
 0x14d   : > { %v1085_v38 = vmul.f32 %v3862_v8, %v1084_v26  ;;  %v731_v30 = vsub.f32 0.0, %v3879_v27  ;;  %1308 = vst.msk [vmem:[#allocation2 + $0x80] sm:$0xff] %vm5072_vm5, %v1278_v44  ;;  %1597 = vrot.lane.b32.xlu1 %v1596_v60, %s3279_s28  ;;  %v1997_v26 = vld [vmem:[%s5061_s3 + $0x38] sm:$0xff] }
 0x14e   : > { %v1672_v50 = vld [vmem:[#allocation2 + $0x78] sm:$0x3f]  ;;  %v1109_v28 = vor.u32 1.1754944e-38, %v1108_v35  ;;  %vm1107_vm8 = vcmp.eq.f32.partialorder %v1106_v5, 8.507059e+37 }
 0x14f   : > { %v1086_v55 = vadd.f32 %v3862_v8, %v1085_v38  ;;  %v780_v18 = vmul.f32 1.442695, %v731_v30  ;;  %v3192_v33 = vpop.eup %3191  ;;  %v1347_v59 = vld [vmem:[#allocation2 + $0x78] sm:$0x3f]  ;;  %v1674_v1 = vrot.slane %v1672_v50, 6 }
 0x150   : > { %v1358_v47 = vpop.permute.xlu0 %1357  ;;  %v583_v48 = vpop.f32.mrf.mxu0  ;;  %v3915_v52 = vadd.f32 1.0, %v3192_v33  ;;  %1348 = vst.msk [vmem:[#allocation3 + $0x60] sm:$0x3f] %vm1323_vm10, %v1347_v59  ;;  %v1439_v33 = vld [vmem:[#allocation2 + $0x79] sm:$0x3f] }
 0x151   : > { %v1090_v51 = vsel %vm3904_vm4, %v3862_v8, %v1086_v55  ;;  %3195 = vpow2.f32 %v780_v18  ;;  %1640 = vrot.lane.b32.xlu2 %v1639_v42, %s3280_s29  ;;  %1361 = vst.msk [vmem:[#allocation3] sm:$0x3f] %vm1360_vm15, %v1358_v47  ;;  %v584_v54 = vadd.f32 %v3794_v13, %v583_v48  ;;  %v1857_v8 = vrot.slane %v1855_v0, 4  ;;  %v3970_v44 = vpop.f32.mrf.mxu1  ;;  %v1995_v18 = vld [vmem:[%s5061_s3 + $0x28] sm:$0xff] }
 0x152   : > { %1554 = vrot.lane.b32.xlu0 %v1553_v41, %s3281_s11  ;;  %v3194_v61 = vpop.eup %3193  ;;  %v1095_v62 = vsel %vm3908_vm6, %v1094_v58, %v1090_v51  ;;  %1410 = vst.msk [vmem:[#allocation3] sm:$0x3f] %vm5071_vm1, %v1407_v53  ;;  %3197 = vrcp.f32 %v3915_v52  ;;  %v1123_v40 = vand.u32 2147483648, %v3915_v52  ;;  %v2019_v41 = vld [vmem:[%s5061_s3 + $0xe8] sm:$0xff]  ;;  %v3992_v46 = vpop.permute.xlu2 %1730  ;;  %vm1117_vm4 = vweird.f32 %v3915_v52 }
 0x153   : > { %v1279_v63 = vmul.f32 %v1095_v62, %v3807_v4  ;;  %v1098_v10 = vmul.f32 %v3194_v61, %v3875_v24  ;;  %1459 = vst.msk [vmem:[#allocation3] sm:$0x3f] %vm5070_vm2, %v1456_v29  ;;  %v3935_v2 = vadd.f32 %v3856_v3, %v584_v54  ;;  %v1999_v3 = vld [vmem:[%s5061_s3 + $0x48] sm:$0xff]  ;;  %vm1103_vm9 = vweird.f32 %v3194_v61  ;;  %v1996_v29 = vld [vmem:[%s5061_s3 + $0x30] sm:$0xff]  ;;  %2092 = vmatpush.msra.mxu3 %v2019_v41  ;;  %v1994_v62 = vld [vmem:[%s5061_s3 + $0x20] sm:$0xff] }
 0x154   : > { %2064 = vmatpush.msra.mxu2 %v1999_v3  ;;  %1676 = vst.msk [vmem:[#allocation3 + $0x50] sm:$0xfc] %vm1345_vm14, %v1674_v1  ;;  %vm1104_vm7 = vmor %vm1102_vm12, %vm1103_vm9  ;;  %v1488_v55 = vld [vmem:[#allocation2 + $0x81] sm:$0x3f]  ;;  %v1124_v56 = vor.u32 1.1754944e-38, %v1123_v40  ;;  %v1993_v1 = vld [vmem:[%s5061_s3 + $0x18] sm:$0xff] }
 0x155   : > { %1309 = vst.msk [vmem:[#allocation2 + $0x88] sm:$0xff] %vm5072_vm5, %v1279_v63  ;;  %v1099_v4 = vsub.f32 1.0, %v1098_v10  ;;  %v732_v15 = vsub.f32 0.0, %v3935_v2  ;;  %1901 = vrot.lane.b32.xlu1 %v1900_v6, %s3279_s28  ;;  %v1390_v39 = vld [vmem:[#allocation2 + $0x80] sm:$0x3f]  ;;  %v2017_v6 = vld [vmem:[%s5061_s3 + $0xd8] sm:$0xff] }
 0x156   : > { %2065 = vmatpush.msra.mxu2 %v1998_v12  ;;  %v2018_v63 = vld [vmem:[%s5061_s3 + $0xe0] sm:$0xff]  ;;  %v2013_v40 = vld [vmem:[%s5061_s3 + $0xb8] sm:$0xff] }
 0x157   : > { %v3196_v19 = vpop.eup %3195  ;;  %v1100_v11 = vmul.f32 %v3194_v61, %v1099_v4  ;;  %v782_v22 = vmul.f32 1.442695, %v732_v15  ;;  %2093 = vmatpush.msra.mxu3 %v2018_v63 }
 0x158   : > { %v3952_v21 = vadd.f32 1.0, %v3196_v19  ;;  %v586_v14 = vpop.f32.mrf.mxu0  ;;  %v3954_v23 = vpop.eup %3197  ;;  %2066 = vmatpush.msra.mxu2 %v1997_v26  ;;  %v1992_v19 = vld [vmem:[%s5061_s3 + $0x10] sm:$0xff]  ;;  %v2015_v26 = vld [vmem:[%s5061_s3 + $0xc8] sm:$0xff] }
 0x159   : > { %v1101_v16 = vadd.f32 %v3194_v61, %v1100_v11  ;;  %1944 = vrot.lane.b32.xlu2 %v1943_v20, %s3280_s29  ;;  %v587_v25 = vadd.f32 %v3794_v13, %v586_v14  ;;  %v1113_v24 = vmul.f32 %v3954_v23, %v3915_v52  ;;  %vm1118_vm13 = vweird.f32 %v3954_v23  ;;  %v696_v3 = vpop.f32.mrf.mxu1  ;;  %2094 = vmatpush.msra.mxu3 %v2017_v6  ;;  %v2016_v11 = vld [vmem:[%s5061_s3 + $0xd0] sm:$0xff] }
 0x15a   : > { %1858 = vrot.lane.b32.xlu0 %v1857_v8, %s3281_s11  ;;  %3199 = vrcp.f32 %v3952_v21  ;;  %2067 = vmatpush.msra.mxu2 %v1996_v29  ;;  %vm4004_vm6 = vmor %vm1117_vm4, %vm1118_vm13  ;;  %v1136_v35 = vand.u32 2147483647, %v3952_v21  ;;  %v1138_v8 = vand.u32 2147483648, %v3952_v21 }
 0x15b   : > { %v1105_v57 = vsel %vm1104_vm7, %v3194_v61, %v1101_v16  ;;  %3201 = vpow2.f32 %v782_v22  ;;  %v1114_v37 = vsub.f32 1.0, %v1113_v24  ;;  %v3979_v38 = vadd.f32 %v3897_v45, %v587_v25  ;;  %2095 = vmatpush.msra.mxu3 %v2016_v11  ;;  %v1991_v25 = vld [vmem:[%s5061_s3 + $0x8] sm:$0xff]  ;;  %v2008_v11 = vld [vmem:[%s5061_s3 + $0x90] sm:$0xff] }
 0x15c   : > { %v1110_v60 = vsel %vm1107_vm8, %v1109_v28, %v1105_v57  ;;  %v1121_v45 = vand.u32 2147483647, %v3915_v52  ;;  %v1828_v58 = vld [vmem:[#allocation2 + $0x87] sm:$0x3f]  ;;  %2068 = vmatpush.msra.mxu2 %v1995_v18  ;;  %vm1132_vm7 = vweird.f32 %v3952_v21  ;;  %vm1137_vm8 = vcmp.eq.f32.partialorder %v1136_v35, 8.507059e+37 }
 0x15d   : > { %v1280_v30 = vmul.f32 %v1110_v60, %v3834_v32  ;;  %v1115_v42 = vmul.f32 %v3954_v23, %v1114_v37  ;;  %v733_v32 = vsub.f32 0.0, %v3979_v38  ;;  %1490 = vrot.lane.b32.xlu1 %v1488_v55, %s3280_s29  ;;  %v1521_v51 = vld [vmem:[#allocation2 + $0x87] sm:$0x3f]  ;;  %v1830_v10 = vrot.slane %v1828_v58, 6  ;;  %2096 = vmatpush.msra.mxu3 %v2015_v26 }
 0x15e   : > { %vm1122_vm9 = vcmp.eq.f32.partialorder %v1121_v45, 8.507059e+37  ;;  %2069 = vmatpush.msra.mxu2 %v1994_v62  ;;  %1522 = vst.msk [vmem:[#allocation3 + $0x68] sm:$0x3f] %vm1323_vm10, %v1521_v51  ;;  %v1601_v16 = vld [vmem:[#allocation2 + $0x88] sm:$0x3f]  ;;  %v2014_v57 = vld [vmem:[%s5061_s3 + $0xc0] sm:$0xff] }
 0x15f   : > { %1310 = vst.msk [vmem:[#allocation2 + $0x90] sm:$0xff] %vm5072_vm5, %v1280_v30  ;;  %v1532_v43 = vpop.permute.xlu0 %1531  ;;  %v1116_v48 = vadd.f32 %v3954_v23, %v1115_v42  ;;  %v784_v49 = vmul.f32 1.442695, %v733_v32  ;;  %v4052_v20 = vpop.permute.xlu2 %1463  ;;  %2097 = vmatpush.msra.mxu3 %v2014_v57  ;;  %v2012_v45 = vld [vmem:[%s5061_s3 + $0xb0] sm:$0xff] }
 0x160   : > { %v3997_v47 = vpop.eup %3199  ;;  %1534 = vst.msk [vmem:[#allocation3 + $0x8] sm:$0x3f] %vm1360_vm15, %v1532_v43  ;;  %v589_v50 = vpop.f32.mrf.mxu0  ;;  %2070 = vmatpush.msra.mxu2 %v1993_v1 }
 0x161   : > { %v3202_v53 = vpop.eup %3201  ;;  %v1128_v59 = vmul.f32 %v3997_v47, %v3952_v21  ;;  %1441 = vrot.lane.b32.xlu2 %v1439_v33, %s3279_s28  ;;  %1577 = vst.msk [vmem:[#allocation3 + $0x8] sm:$0x3f] %vm5071_vm1, %v3940_v7  ;;  %v1618_v52 = vpop.permute.xlu1 %1617  ;;  %v590_v61 = vadd.f32 %v3794_v13, %v589_v50  ;;  %v1120_v0 = vsel %vm4004_vm6, %v3954_v23, %v1116_v48  ;;  %3203 = vpow2.f32 %v784_v49 }
 0x162   : > { %1392 = vrot.lane.b32.xlu0 %v1390_v39, %s3281_s11  ;;  %v4024_v31 = vadd.f32 1.0, %v3202_v53  ;;  %1620 = vst.msk [vmem:[#allocation3 + $0x8] sm:$0x3f] %vm5070_vm2, %v1618_v52  ;;  %v1125_v9 = vsel %vm1122_vm9, %v1124_v56, %v1120_v0  ;;  %vm1133_vm12 = vweird.f32 %v3997_v47  ;;  %2071 = vmatpush.msra.mxu2 %v1992_v19  ;;  %v1139_v21 = vor.u32 1.1754944e-38, %v1138_v8  ;;  %v699_v58 = vpop.f32.mrf.mxu1 }
 0x163   : > { %v1129_v4 = vsub.f32 1.0, %v1128_v59  ;;  %v4035_v7 = vadd.f32 %v3970_v44, %v590_v61  ;;  %v1281_v15 = vmul.f32 %v1125_v9, %v3852_v17  ;;  %1832 = vst.msk [vmem:[#allocation3 + $0x58] sm:$0xfc] %vm1345_vm14, %v1830_v10  ;;  %vm4065_vm14 = vmor %vm1132_vm7, %vm1133_vm12  ;;  %v1990_v44 = vld [vmem:[%s5061_s3] sm:$0xff]  ;;  %2098 = vmatpush.msra.mxu3 %v2013_v40  ;;  %v2009_v9 = vld [vmem:[%s5061_s3 + $0x98] sm:$0xff]  ;;  %vm1368_vm7 = vcmask 523526  }
 0x164   : > { %3205 = vrcp.f32 %v4024_v31  ;;  %2072 = vmatpush.msra.mxu2 %v1991_v25  ;;  %v1153_v39 = vand.u32 2147483648, %v4024_v31  ;;  %v1151_v50 = vand.u32 2147483647, %v4024_v31  ;;  %v2010_v61 = vld [vmem:[%s5061_s3 + $0xa0] sm:$0xff]  ;;  %vm1147_vm4 = vweird.f32 %v4024_v31 }
 0x165   : > { %v1130_v5 = vmul.f32 %v3997_v47, %v1129_v4  ;;  %v734_v17 = vsub.f32 0.0, %v4035_v7  ;;  %1311 = vst.msk [vmem:[#allocation2 + $0x98] sm:$0xff] %vm5072_vm5, %v1281_v15  ;;  %2099 = vmatpush.msra.mxu3 %v2012_v45 }
 0x166   : > { %v1558_v12 = vld [vmem:[#allocation2 + $0x8f] sm:$0x3f]  ;;  %2073 = vmatpush.msra.mxu2 %v1990_v44  ;;  %v1154_v1 = vor.u32 1.1754944e-38, %v1153_v39  ;;  %vm1152_vm9 = vcmp.eq.f32.partialorder %v1151_v50, 8.507059e+37 }
 0x167   : > { %v1644_v22 = vld [vmem:[#allocation2 + $0x90] sm:$0x3f]  ;;  %v1131_v14 = vadd.f32 %v3997_v47, %v1130_v5  ;;  %v786_v23 = vmul.f32 1.442695, %v734_v17  ;;  %v3204_v36 = vpop.eup %3203  ;;  %v4103_v54 = vpop.permute.xlu2 %1886 }
 0x168   : > { %1646 = vrot.lane.b32.xlu1 %v1644_v22, %s3280_s29  ;;  %v592_v24 = vpop.f32.mrf.mxu0  ;;  %v4078_v34 = vadd.f32 1.0, %v3204_v36 }
 0x169   : > { %v1135_v29 = vsel %vm4065_vm14, %v3997_v47, %v1131_v14  ;;  %3207 = vpow2.f32 %v786_v23  ;;  %1603 = vrot.lane.b32.xlu2 %v1601_v16, %s3279_s28  ;;  %v593_v60 = vadd.f32 %v3794_v13, %v592_v24  ;;  %v2011_v47 = vld [vmem:[%s5061_s3 + $0xa8] sm:$0xff]  ;;  %v2006_v24 = vld [vmem:[%s5061_s3 + $0x80] sm:$0xff] }
 0x16a   : > { %1560 = vrot.lane.b32.xlu0 %v1558_v12, %s3281_s11  ;;  %v3206_v37 = vpop.eup %3205  ;;  %v1140_v30 = vsel %vm1137_vm8, %v1139_v21, %v1135_v29  ;;  %3209 = vrcp.f32 %v4078_v34  ;;  %2100 = vmatpush.msra.mxu3 %v2011_v47  ;;  %v1166_v17 = vand.u32 2147483647, %v4078_v34  ;;  %v1168_v12 = vand.u32 2147483648, %v4078_v34  ;;  %v702_v21 = vpop.f32.mrf.mxu1 }
 0x16b   : > { %v1282_v55 = vmul.f32 %v1140_v30, %v3879_v27  ;;  %v1143_v18 = vmul.f32 %v3206_v37, %v4024_v31  ;;  %v4091_v42 = vadd.f32 %v696_v3, %v593_v60  ;;  %vm1148_vm13 = vweird.f32 %v3206_v37 }
 0x16c   : > { %v4089_v41 = vpop.permute.xlu1 %1414  ;;  %v1445_v33 = vld [vmem:[#allocation2 + $0x97] sm:$0x3f]  ;;  %vm1149_vm6 = vmor %vm1147_vm4, %vm1148_vm13  ;;  %2101 = vmatpush.msra.mxu3 %v2010_v61  ;;  %vm1162_vm14 = vweird.f32 %v4078_v34  ;;  %vm1370_vm8 = vcmask 519424   ;;  %v1169_v57 = vor.u32 1.1754944e-38, %v1168_v12  ;;  %vm1417_vm4 = vcmask 785926  }
 0x16d   : > { %1312 = vst.msk [vmem:[#allocation2 + $0xa0] sm:$0xff] %vm5072_vm5, %v1282_v55  ;;  %v1144_v32 = vsub.f32 1.0, %v1143_v18  ;;  %v735_v27 = vsub.f32 0.0, %v4091_v42  ;;  %v1447_v43 = vrot.slane %v1445_v33, 2  ;;  %v1349_v51 = vld [vmem:[#allocation2 + $0x96] sm:$0x3f] }
 0x16e   : > { %v1677_v53 = vld [vmem:[#allocation2 + $0x96] sm:$0x3f]  ;;  %v1351_v62 = vrot.slane %v1349_v51, 2  ;;  %2102 = vmatpush.msra.mxu3 %v2009_v9 }
 0x16f   : > { %v3208_v48 = vpop.eup %3207  ;;  %v1145_v49 = vmul.f32 %v3206_v37, %v1144_v32  ;;  %v788_v59 = vmul.f32 1.442695, %v735_v27  ;;  %1678 = vst.msk [vmem:[#allocation3 + $0x70] sm:$0x3f] %vm1323_vm10, %v1677_v53 }
 0x170   : > { %v4105_v56 = vadd.f32 1.0, %v3208_v48  ;;  %v595_v52 = vpop.f32.mrf.mxu0  ;;  %v4110_v63 = vpop.eup %3209  ;;  %1353 = vst.msk [vmem:[#allocation3 + $0x60] sm:$0xc0] %vm1329_vm11, %v1351_v62  ;;  %2103 = vmatpush.msra.mxu3 %v2008_v11 }
 0x171   : > { %v1146_v10 = vadd.f32 %v3206_v37, %v1145_v49  ;;  %v596_v0 = vadd.f32 %v3794_v13, %v595_v52  ;;  %v1158_v6 = vmul.f32 %v4110_v63, %v4078_v34  ;;  %1354 = vst.msk [vmem:[#allocation3 + $0x80] sm:$0xf] %vm5069_vm3, %v1351_v62  ;;  %vm1163_vm12 = vweird.f32 %v4110_v63 }
 0x172   : > { %1448 = vrot.lane.b32.xlu0 %v1447_v43, %s3279_s28  ;;  %3211 = vrcp.f32 %v4105_v56  ;;  %vm1164_vm13 = vmor %vm1162_vm14, %vm1163_vm12  ;;  %vm1177_vm12 = vweird.f32 %v4105_v56  ;;  %v1181_v39 = vand.u32 2147483647, %v4105_v56 }
 0x173   : > { %v1150_v31 = vsel %vm1149_vm6, %v3206_v37, %v1146_v10  ;;  %3213 = vpow2.f32 %v788_v59  ;;  %v1159_v15 = vsub.f32 1.0, %v1158_v6  ;;  %v4126_v3 = vadd.f32 %v699_v58, %v596_v0  ;;  %v4156_v37 = vpop.permute.xlu2 %1624  ;;  %v1707_v0 = vld [vmem:[#allocation2 + $0x80] sm:$0x3f] }
 0x174   : > { %v1688_v4 = vpop.permute.xlu0 %1687  ;;  %v1155_v35 = vsel %vm1152_vm9, %v1154_v1, %v1150_v31  ;;  %v1494_v19 = vld [vmem:[#allocation2 + $0x9f] sm:$0x3f]  ;;  %vm1167_vm6 = vcmp.eq.f32.partialorder %v1166_v17, 8.507059e+37  ;;  %vm1419_vm9 = vcmask 781824   ;;  %vm1182_vm3 = vcmp.eq.f32.partialorder %v1181_v39, 8.507059e+37 }
 0x175   : > { %1690 = vst.msk [vmem:[#allocation3 + $0x10] sm:$0x3f] %vm1360_vm15, %v1688_v4  ;;  %v1283_v5 = vmul.f32 %v1155_v35, %v3935_v2  ;;  %v1496_v22 = vrot.slane %v1494_v19, 2  ;;  %v1160_v14 = vmul.f32 %v4110_v63, %v1159_v15  ;;  %v736_v23 = vsub.f32 0.0, %v4126_v3  ;;  %v1396_v16 = vld [vmem:[#allocation2 + $0x9e] sm:$0x3f] }
 0x176   : > { %v1774_v8 = vpop.permute.xlu1 %1773  ;;  %1733 = vst.msk [vmem:[#allocation3 + $0x10] sm:$0x3f] %vm5071_vm1, %v3992_v46  ;;  %v2007_v2 = vld [vmem:[%s5061_s3 + $0x88] sm:$0xff]  ;;  %v1398_v46 = vrot.slane %v1396_v16, 2  ;;  %v1709_v35 = vrot.slane %v1707_v0, 6 }
 0x177   : > { %1776 = vst.msk [vmem:[#allocation3 + $0x10] sm:$0x3f] %vm5070_vm2, %v1774_v8  ;;  %1497 = vrot.lane.b32.xlu2 %v1496_v22, %s3280_s29  ;;  %v1161_v26 = vadd.f32 %v4110_v63, %v1160_v14  ;;  %v790_v36 = vmul.f32 1.442695, %v736_v23  ;;  %2104 = vmatpush.msra.mxu3 %v2007_v2  ;;  %v1750_v14 = vld [vmem:[#allocation2 + $0x79] sm:$0x3f] }
 0x178   : > { %1313 = vst.msk [vmem:[#allocation2 + $0xa8] sm:$0xff] %vm5072_vm5, %v1283_v5  ;;  %v3212_v25 = vpop.eup %3211  ;;  %v598_v28 = vpop.f32.mrf.mxu0  ;;  %1399 = vrot.lane.b32.xlu1 %v1398_v46, %s3281_s11  ;;  %v1793_v2 = vld [vmem:[#allocation2 + $0x81] sm:$0x3f] }
 0x179   : > { %v3214_v44 = vpop.eup %3213  ;;  %v1173_v29 = vmul.f32 %v3212_v25, %v4105_v56  ;;  %v599_v34 = vadd.f32 %v3794_v13, %v598_v28  ;;  %v1165_v60 = vsel %vm1164_vm13, %v4110_v63, %v1161_v26  ;;  %3215 = vpow2.f32 %v790_v36  ;;  %2105 = vmatpush.msra.mxu3 %v2006_v24 }
 0x17a   : > { %v4158_v30 = vadd.f32 1.0, %v3214_v44  ;;  %v1170_v40 = vsel %vm1167_vm6, %v1169_v57, %v1165_v60  ;;  %v1183_v13 = vand.u32 2147483648, %v4105_v56  ;;  %vm1178_vm14 = vweird.f32 %v3212_v25 }
 0x17b   : > { %v1174_v55 = vsub.f32 1.0, %v1173_v29  ;;  %v4160_v45 = vadd.f32 %v702_v21, %v599_v34  ;;  %v1284_v32 = vmul.f32 %v1170_v40, %v3979_v38  ;;  %vm1466_vm13 = vcmask 1048326   ;;  %vm1179_vm0 = vmor %vm1177_vm12, %vm1178_vm14  ;;  %v4186_v56 = vpop.permute.xlu2 %1473  ;;  %v1863_v21 = vld [vmem:[#allocation2 + $0x8f] sm:$0x3f] }
 0x17c   : > { %v1366_v18 = vpop.permute.xlu0 %1365  ;;  %3217 = vrcp.f32 %v4158_v30  ;;  %vm1468_vm6 = vcmask 1044224   ;;  %v1184_v50 = vor.u32 1.1754944e-38, %v1183_v13  ;;  %v1198_v31 = vand.u32 2147483648, %v4158_v30 }
 0x17d   : > { %1369 = vst.msk [vmem:[#allocation3] sm:$0xc0] %vm1368_vm7, %v1366_v18  ;;  %v1175_v33 = vmul.f32 %v3212_v25, %v1174_v55  ;;  %v737_v27 = vsub.f32 0.0, %v4160_v45  ;;  %v1196_v19 = vand.u32 2147483647, %v4158_v30  ;;  %v1795_v57 = vrot.slane %v1793_v2, 6 }
 0x17e   : > { %1371 = vst.msk [vmem:[#allocation3 + $0x20] sm:$0xf] %vm1370_vm8, %v1366_v18  ;;  %v1199_v23 = vor.u32 1.1754944e-38, %v1198_v31  ;;  %v1752_v29 = vrot.slane %v1750_v14, 6 }
 0x17f   : > { %1314 = vst.msk [vmem:[#allocation2 + $0xb0] sm:$0xff] %vm5072_vm5, %v1284_v32  ;;  %v1607_v38 = vld [vmem:[#allocation2 + $0xa6] sm:$0x3f]  ;;  %v1176_v43 = vadd.f32 %v3212_v25, %v1175_v33  ;;  %v792_v58 = vmul.f32 1.442695, %v737_v27  ;;  %v4173_v48 = vpop.permute.xlu1 %1929  ;;  %v3216_v49 = vpop.eup %3215  ;;  %vm1197_vm12 = vcmp.eq.f32.partialorder %v1196_v19, 8.507059e+37 }
 0x180   : > { %1418 = vst.msk [vmem:[#allocation3] sm:$0xc0] %vm1417_vm4, %v4089_v41  ;;  %v1609_v47 = vrot.slane %v1607_v38, 2  ;;  %v4179_v53 = vadd.f32 1.0, %v3216_v49  ;;  %v4188_v61 = vld [vmem:[#allocation2 + $0xa5] sm:$0x3f] }
 0x181   : > { %1420 = vst.msk [vmem:[#allocation3 + $0x20] sm:$0xf] %vm1419_vm9, %v4089_v41  ;;  %v1180_v51 = vsel %vm1179_vm0, %v3212_v25, %v1176_v43  ;;  %3219 = vpow2.f32 %v792_v58  ;;  %v1833_v41 = vld [vmem:[#allocation2 + $0xa5] sm:$0x3f]  ;;  %v1525_v1 = vrot.slane %v4188_v61, 2  ;;  %vm1192_vm0 = vweird.f32 %v4158_v30 }
 0x182   : > { %1467 = vst.msk [vmem:[#allocation3] sm:$0xc0] %vm1466_vm13, %v4052_v20  ;;  %1610 = vrot.lane.b32.xlu0 %v1609_v47, %s3279_s28  ;;  %v3218_v59 = vpop.eup %3217  ;;  %v1185_v52 = vsel %vm1182_vm3, %v1184_v50, %v1180_v51  ;;  %3221 = vrcp.f32 %v4179_v53  ;;  %v1213_v44 = vand.u32 2147483648, %v4179_v53  ;;  %vm1207_vm14 = vweird.f32 %v4179_v53  ;;  %v1949_v43 = vld [vmem:[#allocation2 + $0x90] sm:$0x3f] }
 0x183   : > { %1469 = vst.msk [vmem:[#allocation3 + $0x20] sm:$0xf] %vm1468_vm6, %v4052_v20  ;;  %v1285_v62 = vmul.f32 %v1185_v52, %v4035_v7  ;;  %v1188_v63 = vmul.f32 %v3218_v59, %v4158_v30  ;;  %vm1193_vm3 = vweird.f32 %v3218_v59  ;;  %v4216_v28 = vpop.permute.xlu2 %1780  ;;  %v1211_v60 = vand.u32 2147483647, %v4179_v53 }
 0x184   : > { %v1582_v10 = vpop.permute.xlu0 %1581  ;;  %1834 = vst.msk [vmem:[#allocation3 + $0x78] sm:$0x3f] %vm1323_vm10, %v1833_v41  ;;  %vm1194_vm10 = vmor %vm1192_vm0, %vm1193_vm3  ;;  %v1214_v32 = vor.u32 1.1754944e-38, %v1213_v44  ;;  %v1951_v51 = vrot.slane %v1949_v43, 6  ;;  %v1714_v41 = vld [vmem:[#allocation2 + $0x9e] sm:$0x3f] }
 0x185   : > { %1315 = vst.msk [vmem:[#allocation2 + $0xb8] sm:$0xff] %vm5072_vm5, %v1285_v62  ;;  %v1189_v20 = vsub.f32 1.0, %v1188_v63 }
 0x186   : > { %v1650_v6 = vld [vmem:[#allocation2 + $0xae] sm:$0x3f]  ;;  %1527 = vst.msk [vmem:[#allocation3 + $0x68] sm:$0xc0] %vm1329_vm11, %v1525_v1 }
 0x187   : > { %v1564_v9 = vld [vmem:[#allocation2 + $0xad] sm:$0x3f]  ;;  %v1652_v4 = vrot.slane %v1650_v6, 2  ;;  %v3220_v15 = vpop.eup %3219  ;;  %v1190_v8 = vmul.f32 %v3218_v59, %v1189_v20  ;;  %v1539_v11 = vpop.permute.xlu1 %1538  ;;  %v1757_v20 = vld [vmem:[#allocation2 + $0x97] sm:$0x3f] }
 0x188   : > { %v1566_v7 = vrot.slane %v1564_v9, 2  ;;  %v4202_v5 = vadd.f32 1.0, %v3220_v15  ;;  %1541 = vst.msk [vmem:[#allocation3 + $0x8] sm:$0xc0] %vm1368_vm7, %v1539_v11  ;;  %v3222_v12 = vpop.eup %3221  ;;  %v1870_v6 = vld [vmem:[#allocation2 + $0xad] sm:$0x3f] }
 0x189   : > { %v1970_v17 = vld [vmem:[#allocation3] sm:$0xff]  ;;  %1653 = vrot.lane.b32.xlu2 %v1652_v4, %s3280_s29  ;;  %v1191_v22 = vadd.f32 %v3218_v59, %v1190_v8  ;;  %1542 = vst.msk [vmem:[#allocation3 + $0x28] sm:$0xf] %vm1370_vm8, %v1539_v11  ;;  %v1203_v16 = vmul.f32 %v3222_v12, %v4179_v53  ;;  %vm1208_vm0 = vweird.f32 %v3222_v12  ;;  %v1800_v9 = vld [vmem:[#allocation2 + $0x9f] sm:$0x3f] }
 0x18a   : > { %1567 = vrot.lane.b32.xlu1 %v1566_v7, %s3281_s11  ;;  %2074 = vmatmul.f32.vlgmr.msra.gmra.mxu2 %v1970_v17  ;;  %3223 = vrcp.f32 %v4202_v5  ;;  %1584 = vst.msk [vmem:[#allocation3 + $0x8] sm:$0xc0] %vm1417_vm4, %v1582_v10  ;;  %vm1209_vm3 = vmor %vm1207_vm14, %vm1208_vm0  ;;  %v1228_v47 = vand.u32 2147483648, %v4202_v5  ;;  %vm1222_vm0 = vweird.f32 %v4202_v5  ;;  %v1226_v49 = vand.u32 2147483647, %v4202_v5 }
 0x18b   : > { %1710 = vrot.lane.b32.xlu0 %v1709_v35, %s3281_s11  ;;  %v1195_v46 = vsel %vm1194_vm10, %v3218_v59, %v1191_v22  ;;  %1585 = vst.msk [vmem:[#allocation3 + $0x28] sm:$0xf] %vm1419_vm9, %v1582_v10  ;;  %v1204_v36 = vsub.f32 1.0, %v1203_v16  ;;  %vm1212_vm10 = vcmp.eq.f32.partialorder %v1211_v60, 8.507059e+37  ;;  %v4248_v50 = vpop.permute.xlu2 %1632  ;;  %v1913_v8 = vld [vmem:[#allocation2 + $0xa6] sm:$0x3f] }
 0x18c   : > { %v1844_v25 = vpop.permute.xlu0 %1843  ;;  %v1200_v26 = vsel %vm1197_vm12, %v1199_v23, %v1195_v46  ;;  %v1679_v30 = vld [vmem:[#allocation2 + $0xb4] sm:$0x3f]  ;;  %1627 = vst.msk [vmem:[#allocation3 + $0x8] sm:$0xc0] %vm1466_vm13, %v4156_v37  ;;  %vm5085_vm12 = vcmask 257024   ;;  %v1229_v61 = vor.u32 1.1754944e-38, %v1228_v47 }
 0x18d   : > { %1846 = vst.msk [vmem:[#allocation3 + $0x18] sm:$0x3f] %vm1360_vm15, %v1844_v25  ;;  %v1286_v24 = vmul.f32 %v1200_v26, %v4091_v42  ;;  %v1205_v34 = vmul.f32 %v3222_v12, %v1204_v36  ;;  %v1865_v42 = vrot.slane %v1863_v21, 6  ;;  %v1681_v55 = vrot.slane %v1679_v30, 2  ;;  %vm5086_vm14 = vmmov %vm5085_vm12  ;;  %v1763_v7 = vld [vmem:[#allocation2 + $0xb5] sm:$0x3f] }
 0x18e   : > { %1889 = vst.msk [vmem:[#allocation3 + $0x18] sm:$0x3f] %vm5071_vm1, %v4103_v54  ;;  %vm1478_vm1 = vcmask 1042176   ;;  %v1765_v19 = vrot.slane %v1763_v7, 2  ;;  %v2022_v7 = vld [vmem:[%s5061_s3 + $0x100] sm:$0xff] }
 0x18f   : > { %1932 = vst.msk [vmem:[#allocation3 + $0x18] sm:$0x3f] %vm5070_vm2, %v4173_v48  ;;  %v4228_v40 = vpop.permute.xlu1 %1424  ;;  %v1206_v54 = vadd.f32 %v3222_v12, %v1205_v34  ;;  %v1906_v48 = vld [vmem:[#allocation2 + $0x88] sm:$0x3f]  ;;  %vm1476_vm2 = vcmask 1048324  }
 0x190   : > { %1316 = vst.msk [vmem:[#allocation2 + $0xc0] sm:$0xff] %vm5072_vm5, %v1286_v24  ;;  %v3224_v18 = vpop.eup %3223  ;;  %v1908_v52 = vrot.slane %v1906_v48, 6 }
 0x191   : > { %1796 = vrot.lane.b32.xlu2 %v1795_v57, %s3280_s29  ;;  %v1218_v13 = vmul.f32 %v3224_v18, %v4202_v5  ;;  %1628 = vst.msk [vmem:[#allocation3 + $0x28] sm:$0xf] %vm1468_vm6, %v4156_v37  ;;  %v1210_v33 = vsel %vm1209_vm3, %v3222_v12, %v1206_v54  ;;  %vm1223_vm3 = vweird.f32 %v3224_v18  ;;  %v1956_v57 = vld [vmem:[#allocation2 + $0xae] sm:$0x3f] }
 0x192   : > { %1753 = vrot.lane.b32.xlu1 %v1752_v29, %s3279_s28  ;;  %1528 = vst.msk [vmem:[#allocation3 + $0x88] sm:$0xf] %vm5085_vm12, %v1525_v1  ;;  %v1215_v39 = vsel %vm1212_vm10, %v1214_v32, %v1210_v33  ;;  %vm1224_vm10 = vmor %vm1222_vm0, %vm1223_vm3  ;;  %vm1227_vm12 = vcmp.eq.f32.partialorder %v1226_v49, 8.507059e+37  ;;  %vm1380_vm0 = vcmask 517376   ;;  %vm1427_vm3 = vcmask 785924   ;;  %v2051_v49 = vld [vmem:[%s5061_s3 + $0x1e8] sm:$0xff] }
 0x193   : > { %1866 = vrot.lane.b32.xlu0 %v1865_v42, %s3281_s11  ;;  %v1219_v27 = vsub.f32 1.0, %v1218_v13  ;;  %1683 = vst.msk [vmem:[#allocation3 + $0x70] sm:$0xc0] %vm1329_vm11, %v1681_v55  ;;  %v1287_v58 = vmul.f32 %v1215_v39, %v4126_v3  ;;  %v1971_v59 = vld [vmem:[#allocation3 + $0x8] sm:$0xff]  ;;  %v2034_v39 = vld [vmem:[%s5061_s3 + $0x160] sm:$0xff] }
 0x194   : > { %v1738_v38 = vpop.permute.xlu0 %1737  ;;  %1684 = vst.msk [vmem:[#allocation3 + $0x90] sm:$0xf] %vm5086_vm14, %v1681_v55  ;;  %2106 = vmatmul.f32.vlgmr.msra.gmra.mxu3 %v1971_v59  ;;  %vm1378_vm14 = vcmask 523524   ;;  %v2036_v55 = vld [vmem:[%s5061_s3 + $0x170] sm:$0xff]  ;;  %v2049_v59 = vld [vmem:[%s5061_s3 + $0x1d8] sm:$0xff] }
 0x195   : > { %v1220_v37 = vmul.f32 %v3224_v18, %v1219_v27  ;;  %1317 = vst.msk [vmem:[#allocation2 + $0xc8] sm:$0xff] %vm5072_vm5, %v1287_v58  ;;  %v2053_v27 = vld [vmem:[%s5061_s3 + $0x1f8] sm:$0xff]  ;;  %v2052_v58 = vld [vmem:[%s5061_s3 + $0x1f0] sm:$0xff] }
 0x196   : > { %2154 = vmatpush.msrb.mxu3 %v2053_v27 }
 0x197   : > { %v1221_v53 = vadd.f32 %v3224_v18, %v1220_v37  ;;  %v1695_v3 = vpop.permute.xlu1 %1694  ;;  %v1720_v15 = vld [vmem:[#allocation2 + $0xbc] sm:$0x3f]  ;;  %v2032_v37 = vld [vmem:[%s5061_s3 + $0x150] sm:$0xff] }
 0x198   : > { %1697 = vst.msk [vmem:[#allocation3 + $0x10] sm:$0xc0] %vm1368_vm7, %v1695_v3  ;;  %v1722_v5 = vrot.slane %v1720_v15, 2  ;;  %v1806_v22 = vld [vmem:[#allocation2 + $0xbd] sm:$0x3f]  ;;  %2155 = vmatpush.msrb.mxu3 %v2052_v58 }
 0x199   : > { %1952 = vrot.lane.b32.xlu2 %v1951_v51, %s3280_s29  ;;  %v1225_v62 = vsel %vm1224_vm10, %v3224_v18, %v1221_v53  ;;  %1698 = vst.msk [vmem:[#allocation3 + $0x30] sm:$0xf] %vm1370_vm8, %v1695_v3  ;;  %vm1429_vm10 = vcmask 779776   ;;  %v1808_v16 = vrot.slane %v1806_v22, 2  ;;  %v2035_v18 = vld [vmem:[%s5061_s3 + $0x168] sm:$0xff]  ;;  %v2030_v51 = vld [vmem:[%s5061_s3 + $0x140] sm:$0xff] }
 0x19a   : > { %1909 = vrot.lane.b32.xlu1 %v1908_v52, %s3279_s28  ;;  %v1230_v63 = vsel %vm1227_vm12, %v1229_v61, %v1225_v62  ;;  %1740 = vst.msk [vmem:[#allocation3 + $0x10] sm:$0xc0] %vm1417_vm4, %v1738_v38  ;;  %vm5087_vm12 = vcmask 257024   ;;  %2156 = vmatpush.msrb.mxu3 %v2051_v49  ;;  %v2050_v53 = vld [vmem:[%s5061_s3 + $0x1e0] sm:$0xff]  ;;  %v2029_v52 = vld [vmem:[%s5061_s3 + $0x138] sm:$0xff]  ;;  %v2048_v3 = vld [vmem:[%s5061_s3 + $0x1d0] sm:$0xff] }
 0x19b   : > { %1716 = vrot.lane.b32.xlu0 %v1714_v41, %s3281_s11  ;;  %v1288_v10 = vmul.f32 %v1230_v63, %v4160_v45  ;;  %1741 = vst.msk [vmem:[#allocation3 + $0x30] sm:$0xf] %vm1419_vm9, %v1738_v38  ;;  %v1937_v45 = vpop.permute.xlu2 %1936  ;;  %v2033_v38 = vld [vmem:[%s5061_s3 + $0x158] sm:$0xff]  ;;  %v2028_v41 = vld [vmem:[%s5061_s3 + $0x130] sm:$0xff]  ;;  %v2039_v22 = vld [vmem:[%s5061_s3 + $0x188] sm:$0xff] }
 0x19c   : > { %v1376_v0 = vpop.permute.xlu0 %1375  ;;  %v1835_v1 = vld [vmem:[#allocation2 + $0xc3] sm:$0x3f]  ;;  %1783 = vst.msk [vmem:[#allocation3 + $0x10] sm:$0xc0] %vm1466_vm13, %v4216_v28  ;;  %2157 = vmatpush.msrb.mxu3 %v2050_v53 }
 0x19d   : > { %1379 = vst.msk [vmem:[#allocation3 + $0x20] sm:$0xf0] %vm1378_vm14, %v1376_v0  ;;  %v1837_v4 = vrot.slane %v1835_v1, 2  ;;  %v1919_v14 = vld [vmem:[#allocation2 + $0xc4] sm:$0x3f] }
 0x19e   : > { %1318 = vst.msk [vmem:[#allocation2 + $0xd0] sm:$0xff] %vm5072_vm5, %v1288_v10  ;;  %v1921_v2 = vrot.slane %v1919_v14, 2  ;;  %vm1486_vm5 = vcmask 1048322   ;;  %2158 = vmatpush.msrb.mxu3 %v2049_v59  ;;  %v2027_v10 = vld [vmem:[%s5061_s3 + $0x128] sm:$0xff] }
 0x19f   : > { %1381 = vst.msk [vmem:[#allocation3 + $0x40] sm:$0x3] %vm1380_vm0, %v1376_v0  ;;  %v1590_v31 = vpop.permute.xlu1 %1589  ;;  %v2026_v0 = vld [vmem:[%s5061_s3 + $0x120] sm:$0xff]  ;;  %v2047_v1 = vld [vmem:[%s5061_s3 + $0x1c8] sm:$0xff] }
 0x1a0   : > { %1428 = vst.msk [vmem:[#allocation3 + $0x20] sm:$0xf0] %vm1427_vm3, %v4228_v40  ;;  %2159 = vmatpush.msrb.mxu3 %v2048_v3 }
 0x1a1   : > { %1430 = vst.msk [vmem:[#allocation3 + $0x40] sm:$0x3] %vm1429_vm10, %v4228_v40  ;;  %1759 = vrot.lane.b32.xlu2 %v1757_v20, %s3279_s28  ;;  %v2037_v40 = vld [vmem:[%s5061_s3 + $0x178] sm:$0xff] }
 0x1a2   : > { %1477 = vst.msk [vmem:[#allocation3 + $0x20] sm:$0xf0] %vm1476_vm2, %v4186_v56  ;;  %1802 = vrot.lane.b32.xlu1 %v1800_v9, %s3280_s29  ;;  %2122 = vmatpush.msrb.mxu2 %v2037_v40  ;;  %v2025_v20 = vld [vmem:[%s5061_s3 + $0x118] sm:$0xff] }
 0x1a3   : > { %1872 = vrot.lane.b32.xlu0 %v1870_v6, %s3281_s11  ;;  %1479 = vst.msk [vmem:[#allocation3 + $0x40] sm:$0x3] %vm1478_vm1, %v4186_v56  ;;  %v1484_v17 = vpop.permute.xlu2 %1483  ;;  %2160 = vmatpush.msrb.mxu3 %v2047_v1  ;;  %v2024_v6 = vld [vmem:[%s5061_s3 + $0x110] sm:$0xff]  ;;  %v2045_v9 = vld [vmem:[%s5061_s3 + $0x1b8] sm:$0xff] }
 0x1a4   : > { %v1894_v35 = vpop.permute.xlu0 %1893  ;;  %1784 = vst.msk [vmem:[#allocation3 + $0x30] sm:$0xf] %vm1468_vm6, %v4216_v28  ;;  %2123 = vmatpush.msrb.mxu2 %v2036_v55 }
 0x1a5   : > { %1839 = vst.msk [vmem:[#allocation3 + $0x78] sm:$0xc0] %vm1329_vm11, %v1837_v4  ;;  %v1876_v23 = vld [vmem:[#allocation2 + $0xcb] sm:$0x3f]  ;;  %vm1388_vm11 = vcmask 523522  }
 0x1a6   : > { %1840 = vst.msk [vmem:[#allocation3 + $0x98] sm:$0xf] %vm5087_vm12, %v1837_v4  ;;  %v1878_v46 = vrot.slane %v1876_v23, 2  ;;  %vm1437_vm12 = vcmask 785922   ;;  %v1962_v36 = vld [vmem:[#allocation2 + $0xcc] sm:$0x3f]  ;;  %2124 = vmatpush.msrb.mxu2 %v2035_v18 }
 0x1a7   : > { %v1851_v56 = vpop.permute.xlu1 %1850  ;;  %v1964_v21 = vrot.slane %v1962_v36, 2  ;;  %v2023_v4 = vld [vmem:[%s5061_s3 + $0x108] sm:$0xff]  ;;  %v2038_v23 = vld [vmem:[%s5061_s3 + $0x180] sm:$0xff] }
 0x1a8   : > { %1853 = vst.msk [vmem:[#allocation3 + $0x18] sm:$0xc0] %vm1368_vm7, %v1851_v56  ;;  %2125 = vmatpush.msrb.mxu2 %v2034_v39 }
 0x1a9   : > { %v1974_v11 = vld [vmem:[#allocation3 + $0x20] sm:$0xff]  ;;  %1915 = vrot.lane.b32.xlu2 %v1913_v8, %s3279_s28  ;;  %1854 = vst.msk [vmem:[#allocation3 + $0x38] sm:$0xf] %vm1370_vm8, %v1851_v56  ;;  %v2041_v56 = vld [vmem:[%s5061_s3 + $0x198] sm:$0xff] }
 0x1aa   : > { %2077 = vmatmul.f32.gmra.mxu2 %v1974_v11  ;;  %1723 = vrot.lane.b32.xlu1 %v1722_v5, %s3281_s11  ;;  %1896 = vst.msk [vmem:[#allocation3 + $0x18] sm:$0xc0] %vm1417_vm4, %v1894_v35  ;;  %v2043_v11 = vld [vmem:[%s5061_s3 + $0x1a8] sm:$0xff]  ;;  %v2042_v5 = vld [vmem:[%s5061_s3 + $0x1a0] sm:$0xff] }
 0x1ab   : > { %1766 = vrot.lane.b32.xlu0 %v1765_v19, %s3279_s28  ;;  %1897 = vst.msk [vmem:[#allocation3 + $0x38] sm:$0xf] %vm1419_vm9, %v1894_v35  ;;  %v1789_v28 = vpop.permute.xlu2 %1788  ;;  %2126 = vmatpush.msrb.mxu2 %v2033_v38  ;;  %v2044_v35 = vld [vmem:[%s5061_s3 + $0x1b0] sm:$0xff] }
 0x1ac   : > { %v1547_v12 = vpop.permute.xlu0 %1546  ;;  %1939 = vst.msk [vmem:[#allocation3 + $0x18] sm:$0xc0] %vm1466_vm13, %v1937_v45 }
 0x1ad   : > { %1549 = vst.msk [vmem:[#allocation3 + $0x28] sm:$0xf0] %vm1378_vm14, %v1547_v12  ;;  %2127 = vmatpush.msrb.mxu2 %v2032_v37 }
 0x1ae   : > { %1550 = vst.msk [vmem:[#allocation3 + $0x48] sm:$0x3] %vm1380_vm0, %v1547_v12 }
 0x1af   : > { %1592 = vst.msk [vmem:[#allocation3 + $0x28] sm:$0xf0] %vm1427_vm3, %v1590_v31  ;;  %v1435_v25 = vpop.permute.xlu1 %1434 }
 0x1b0   : > { %1593 = vst.msk [vmem:[#allocation3 + $0x48] sm:$0x3] %vm1429_vm10, %v1590_v31 }
 0x1b1   : > { %1635 = vst.msk [vmem:[#allocation3 + $0x28] sm:$0xf0] %vm1476_vm2, %v4248_v50  ;;  %1809 = vrot.lane.b32.xlu2 %v1808_v16, %s3280_s29 }
 0x1b2   : > { %1636 = vst.msk [vmem:[#allocation3 + $0x48] sm:$0x3] %vm1478_vm1, %v4248_v50  ;;  %1879 = vrot.lane.b32.xlu1 %v1878_v46, %s3281_s11  ;;  %v2031_v50 = vld [vmem:[%s5061_s3 + $0x148] sm:$0xff] }
 0x1b3   : > { %1922 = vrot.lane.b32.xlu0 %v1921_v2, %s3279_s28  ;;  %1940 = vst.msk [vmem:[#allocation3 + $0x38] sm:$0xf] %vm1468_vm6, %v1937_v45  ;;  %v1641_v34 = vpop.permute.xlu2 %1640  ;;  %2128 = vmatpush.msrb.mxu2 %v2031_v50  ;;  %v2046_v45 = vld [vmem:[%s5061_s3 + $0x1c0] sm:$0xff] }
 0x1b4   : > { %v1386_v26 = vpop.permute.xlu0 %1385  ;;  %2161 = vmatpush.msrb.mxu3 %v2046_v45  ;;  %v1973_v18 = vld [vmem:[#allocation3 + $0x18] sm:$0xff] }
 0x1b5   : > { %1389 = vst.msk [vmem:[#allocation3 + $0x40] sm:$0xfc] %vm1388_vm11, %v1386_v26  ;;  %2129 = vmatpush.msrb.mxu2 %v2030_v51 }
 0x1b6   : > { %1438 = vst.msk [vmem:[#allocation3 + $0x40] sm:$0xfc] %vm1437_vm12, %v1435_v25  ;;  %2162 = vmatpush.msrb.mxu3 %v2045_v9 }
 0x1b7   : > { %1487 = vst.msk [vmem:[#allocation3 + $0x40] sm:$0xfc] %vm1486_vm5, %v1484_v17  ;;  %v1746_v44 = vpop.permute.xlu1 %1745  ;;  %2130 = vmatpush.msrb.mxu2 %v2029_v52  ;;  %v2040_v17 = vld [vmem:[%s5061_s3 + $0x190] sm:$0xff] }
 0x1b8   : > { %v1975_v24 = vld [vmem:[#allocation3 + $0x28] sm:$0xff]  ;;  %2163 = vmatpush.msrb.mxu3 %v2044_v35 }
 0x1b9   : > { %2109 = vmatmul.f32.gmra.mxu3 %v1975_v24  ;;  %1965 = vrot.lane.b32.xlu2 %v1964_v21, %s3280_s29  ;;  %v1972_v24 = vld [vmem:[#allocation3 + $0x10] sm:$0xff] }
 0x1ba   : > { %1958 = vrot.lane.b32.xlu1 %v1956_v57, %s3280_s29  ;;  %2131 = vmatpush.msrb.mxu2 %v2028_v41 }
 0x1bb   : > { %v1945_v54 = vpop.permute.xlu2 %1944  ;;  %2164 = vmatpush.msrb.mxu3 %v2043_v11 }
 0x1bc   : > { %v1703_v29 = vpop.permute.xlu0 %1702  ;;  %2132 = vmatpush.msrb.mxu2 %v2027_v10 }
 0x1bd   : > { %1705 = vst.msk [vmem:[#allocation3 + $0x30] sm:$0xf0] %vm1378_vm14, %v1703_v29  ;;  %2165 = vmatpush.msrb.mxu3 %v2042_v5 }
 0x1be   : > { %1706 = vst.msk [vmem:[#allocation3 + $0x50] sm:$0x3] %vm1380_vm0, %v1703_v29  ;;  %v1978_v60 = vld [vmem:[#allocation3 + $0x40] sm:$0xff]  ;;  %2133 = vmatpush.msrb.mxu2 %v2026_v0 }
 0x1bf   : > { %1748 = vst.msk [vmem:[#allocation3 + $0x30] sm:$0xf0] %vm1427_vm3, %v1746_v44  ;;  %2080 = vmatmul.f32.gmra.mxu2 %v1978_v60  ;;  %v1598_v30 = vpop.permute.xlu1 %1597  ;;  %2166 = vmatpush.msrb.mxu3 %v2041_v56 }
 0x1c0   : > { %1749 = vst.msk [vmem:[#allocation3 + $0x50] sm:$0x3] %vm1429_vm10, %v1746_v44  ;;  %2134 = vmatpush.msrb.mxu2 %v2025_v20 }
 0x1c1   : > { %1791 = vst.msk [vmem:[#allocation3 + $0x30] sm:$0xf0] %vm1476_vm2, %v1789_v28  ;;  %2167 = vmatpush.msrb.mxu3 %v2040_v17 }
 0x1c2   : > { %1792 = vst.msk [vmem:[#allocation3 + $0x50] sm:$0x3] %vm1478_vm1, %v1789_v28  ;;  %2135 = vmatpush.msrb.mxu2 %v2024_v6 }
 0x1c3   : > { %v1442_v43 = vpop.permute.xlu2 %1441  ;;  %2168 = vmatpush.msrb.mxu3 %v2039_v22 }
 0x1c4   : > { %v1555_v42 = vpop.permute.xlu0 %1554  ;;  %2136 = vmatpush.msrb.mxu2 %v2023_v4 }
 0x1c5   : > { %1557 = vst.msk [vmem:[#allocation3 + $0x48] sm:$0xfc] %vm1388_vm11, %v1555_v42  ;;  %2169 = vmatpush.msrb.mxu3 %v2038_v23 }
 0x1c6   : > { %1600 = vst.msk [vmem:[#allocation3 + $0x48] sm:$0xfc] %vm1437_vm12, %v1598_v30  ;;  %2137 = vmatpush.msrb.mxu2 %v2022_v7 }
 0x1c7   : > { %1643 = vst.msk [vmem:[#allocation3 + $0x48] sm:$0xfc] %vm1486_vm5, %v1641_v34  ;;  %v1902_v32 = vpop.permute.xlu1 %1901 }
 0x1c8   : > { %v1976_v60 = vld [vmem:[#allocation3 + $0x30] sm:$0xff] }
 0x1cb   : > { %v1604_v62 = vpop.permute.xlu2 %1603 }
 0x1cc   : > { %v1859_v13 = vpop.permute.xlu0 %1858 }
 0x1cd   : > { %1861 = vst.msk [vmem:[#allocation3 + $0x38] sm:$0xf0] %vm1378_vm14, %v1859_v13 }
 0x1ce   : > { %1862 = vst.msk [vmem:[#allocation3 + $0x58] sm:$0x3] %vm1380_vm0, %v1859_v13  ;;  %v1979_v33 = vld [vmem:[#allocation3 + $0x48] sm:$0xff] }
 0x1cf   : > { %1904 = vst.msk [vmem:[#allocation3 + $0x38] sm:$0xf0] %vm1427_vm3, %v1902_v32  ;;  %2112 = vmatmul.f32.gmra.mxu3 %v1979_v33  ;;  %v1491_v48 = vpop.permute.xlu1 %1490 }
 0x1d0   : > { %1905 = vst.msk [vmem:[#allocation3 + $0x58] sm:$0x3] %vm1429_vm10, %v1902_v32 }
 0x1d1   : > { %1947 = vst.msk [vmem:[#allocation3 + $0x38] sm:$0xf0] %vm1476_vm2, %v1945_v54  ;;  %vm5089_vm2 = vcmask 1046272  }
 0x1d2   : > { %1948 = vst.msk [vmem:[#allocation3 + $0x58] sm:$0x3] %vm1478_vm1, %v1945_v54  ;;  %vm5088_vm1 = vcmask 783872   ;;  %vm5091_vm0 = vmmov %vm5089_vm2 }
 0x1d3   : > { %vm5090_vm14 = vmmov %vm5088_vm1  ;;  %v1498_v31 = vpop.permute.xlu2 %1497 }
 0x1d4   : > { %v1393_v47 = vpop.permute.xlu0 %1392  ;;  %vm5092_vm3 = vmmov %vm5088_vm1 }
 0x1d5   : > { %1395 = vst.msk [vmem:[#allocation3 + $0x60] sm:$0x3f] %vm1360_vm15, %v1393_v47  ;;  %vm5093_vm10 = vmmov %vm5088_vm1 }
 0x1d6   : > { %1444 = vst.msk [vmem:[#allocation3 + $0x60] sm:$0x3f] %vm5088_vm1, %v1442_v43 }
 0x1d7   : > { %1493 = vst.msk [vmem:[#allocation3 + $0x60] sm:$0x3f] %vm5089_vm2, %v1491_v48  ;;  %vm2290_vm2 = vcmask 519168  }
 0x1d8   : > { %v1977_v33 = vld [vmem:[#allocation3 + $0x38] sm:$0xff] }
 0x1da   : > { %v1647_v63 = vpop.permute.xlu1 %1646 }
 0x1dc   : > { %v1561_v61 = vpop.permute.xlu0 %1560 }
 0x1dd   : > { %1563 = vst.msk [vmem:[#allocation3 + $0x68] sm:$0x3f] %vm1360_vm15, %v1561_v61 }
 0x1de   : > { %1606 = vst.msk [vmem:[#allocation3 + $0x68] sm:$0x3f] %vm5090_vm14, %v1604_v62 }
 0x1df   : > { %1649 = vst.msk [vmem:[#allocation3 + $0x68] sm:$0x3f] %vm5091_vm0, %v1647_v63  ;;  %v3115_v63 = vld [vmem:[%s5062_s4] ss:$0 sm:$0xff] }
 0x1e3   : > { %v1654_v19 = vpop.permute.xlu2 %1653 }
 0x1e4   : > { %v1449_v15 = vpop.permute.xlu0 %1448 }
 0x1ea   : > { %v1400_v8 = vpop.permute.xlu1 %1399 }
 0x1eb   : > { %1402 = vst.msk [vmem:[#allocation3 + $0x60] sm:$0xc0] %vm1368_vm7, %v1400_v8  ;;  %v1797_v14 = vpop.permute.xlu2 %1796 }
 0x1ec   : > { %1403 = vst.msk [vmem:[#allocation3 + $0x80] sm:$0xf] %vm1370_vm8, %v1400_v8 }
 0x1ed   : > { %1451 = vst.msk [vmem:[#allocation3 + $0x60] sm:$0xc0] %vm1417_vm4, %v1449_v15 }
 0x1ee   : > { %1452 = vst.msk [vmem:[#allocation3 + $0x80] sm:$0xf] %vm1419_vm9, %v1449_v15 }
 0x1ef   : > { %1500 = vst.msk [vmem:[#allocation3 + $0x60] sm:$0xc0] %vm1466_vm13, %v1498_v31 }
 0x1f0   : > { %1501 = vst.msk [vmem:[#allocation3 + $0x80] sm:$0xf] %vm1468_vm6, %v1498_v31 }
 0x1f3   : > { %v1953_v26 = vpop.permute.xlu2 %1952 }
 0x1f4   : > { %v1611_v12 = vpop.permute.xlu0 %1610 }
 0x1f6   : > { %v1982_v16 = vld [vmem:[#allocation3 + $0x60] sm:$0xff] }
 0x1f7   : > { %2083 = vmatmul.f32.gmra.mxu2 %v1982_v16  ;;  %v1986_v25 = vld [vmem:[#allocation3 + $0x80] sm:$0xf] }
 0x1fb   : > { %v1760_v44 = vpop.permute.xlu2 %1759 }
 0x1fc   : > { %v1568_v2 = vpop.permute.xlu1 %1567 }
 0x1fd   : > { %v1711_v46 = vpop.permute.xlu0 %1710  ;;  %1570 = vst.msk [vmem:[#allocation3 + $0x68] sm:$0xc0] %vm1368_vm7, %v1568_v2 }
 0x1fe   : > { %1713 = vst.msk [vmem:[#allocation3 + $0x50] sm:$0xfc] %vm1388_vm11, %v1711_v46 }
 0x1ff   : > { %1571 = vst.msk [vmem:[#allocation3 + $0x88] sm:$0xf] %vm1370_vm8, %v1568_v2  ;;  %2086 = vmatmul.f32.gmra.mxu2 %v1986_v25 }
 0x200   : > { %1613 = vst.msk [vmem:[#allocation3 + $0x68] sm:$0xc0] %vm1417_vm4, %v1611_v12 }
 0x201   : > { %1614 = vst.msk [vmem:[#allocation3 + $0x88] sm:$0xf] %vm1419_vm9, %v1611_v12 }
 0x202   : > { %1656 = vst.msk [vmem:[#allocation3 + $0x68] sm:$0xc0] %vm1466_vm13, %v1654_v19 }
 0x203   : > { %1657 = vst.msk [vmem:[#allocation3 + $0x88] sm:$0xf] %vm1468_vm6, %v1654_v19  ;;  %v1916_v40 = vpop.permute.xlu2 %1915 }
 0x204   : > { %v1754_v36 = vpop.permute.xlu1 %1753 }
 0x205   : > { %v1867_v28 = vpop.permute.xlu0 %1866  ;;  %1756 = vst.msk [vmem:[#allocation3 + $0x50] sm:$0xfc] %vm1437_vm12, %v1754_v36 }
 0x206   : > { %1869 = vst.msk [vmem:[#allocation3 + $0x58] sm:$0xfc] %vm1388_vm11, %v1867_v28  ;;  %vm5094_vm11 = vmmov %vm5091_vm0 }
 0x207   : > { %1799 = vst.msk [vmem:[#allocation3 + $0x50] sm:$0xfc] %vm1486_vm5, %v1797_v14  ;;  %2138 = vmatmul.f32.vlgmr.msrb.gmra.mxu2 %v1972_v24 }
 0x209   : > { %v1983_v21 = vld [vmem:[#allocation3 + $0x68] sm:$0xff] }
 0x20a   : > { %2115 = vmatmul.f32.gmra.mxu3 %v1983_v21  ;;  %v1987_v34 = vld [vmem:[#allocation3 + $0x88] sm:$0xf] }
 0x20b   : > { %v1810_v13 = vpop.permute.xlu2 %1809 }
 0x20c   : > { %v1910_v29 = vpop.permute.xlu1 %1909 }
 0x20d   : > { %v1717_v57 = vpop.permute.xlu0 %1716  ;;  %1912 = vst.msk [vmem:[#allocation3 + $0x58] sm:$0xfc] %vm1437_vm12, %v1910_v29  ;;  %v2075_v50 = vpop.f32.mrf.mxu2 }
 0x20e   : > { %1719 = vst.msk [vmem:[#allocation3 + $0x70] sm:$0x3f] %vm1360_vm15, %v1717_v57  ;;  %v1980_v55 = vld [vmem:[#allocation3 + $0x50] sm:$0xff]  ;;  %v2076_v1 = vadd.f32 %v3115_v63, %v2075_v50 }
 0x20f   : > { %1762 = vst.msk [vmem:[#allocation3 + $0x70] sm:$0x3f] %vm5092_vm3, %v1760_v44  ;;  %2141 = vmatmul.f32.gmra.mxu2 %v1976_v60 }
 0x210   : > { %1955 = vst.msk [vmem:[#allocation3 + $0x58] sm:$0xfc] %vm1486_vm5, %v1953_v26  ;;  %vm5095_vm5 = vmmov %vm5091_vm0 }
 0x212   : > { %2118 = vmatmul.f32.gmra.mxu3 %v1987_v34 }
 0x213   : > { %v1966_v43 = vpop.permute.xlu2 %1965 }
 0x214   : > { %v1803_v42 = vpop.permute.xlu1 %1802 }
 0x215   : > { %v1873_v30 = vpop.permute.xlu0 %1872  ;;  %1805 = vst.msk [vmem:[#allocation3 + $0x70] sm:$0x3f] %vm5094_vm11, %v1803_v42 }
 0x216   : > { %1875 = vst.msk [vmem:[#allocation3 + $0x78] sm:$0x3f] %vm1360_vm15, %v1873_v30 }
 0x217   : > { %1918 = vst.msk [vmem:[#allocation3 + $0x78] sm:$0x3f] %vm5093_vm10, %v1916_v40  ;;  %2144 = vmatmul.f32.gmra.mxu2 %v1980_v55  ;;  %v1981_v38 = vld [vmem:[#allocation3 + $0x58] sm:$0xff]  ;;  %v2107_v53 = vpop.f32.mrf.mxu3 }
 0x218   : > { %v2108_v20 = vadd.f32 %v2107_v53, %v2076_v1 }
 0x21a   : > { %2170 = vmatmul.f32.vlgmr.msrb.gmra.mxu3 %v1973_v18 }
 0x21c   : > { %v1724_v32 = vpop.permute.xlu1 %1723 }
 0x21d   : > { %v1767_v54 = vpop.permute.xlu0 %1766  ;;  %1726 = vst.msk [vmem:[#allocation3 + $0x70] sm:$0xc0] %vm1368_vm7, %v1724_v32 }
 0x21e   : > { %1727 = vst.msk [vmem:[#allocation3 + $0x90] sm:$0xf] %vm1370_vm8, %v1724_v32 }
 0x21f   : > { %1769 = vst.msk [vmem:[#allocation3 + $0x70] sm:$0xc0] %vm1417_vm4, %v1767_v54 }
 0x220   : > { %1770 = vst.msk [vmem:[#allocation3 + $0x90] sm:$0xf] %vm1419_vm9, %v1767_v54 }
 0x221   : > { %1812 = vst.msk [vmem:[#allocation3 + $0x70] sm:$0xc0] %vm1466_vm13, %v1810_v13 }
 0x222   : > { %2173 = vmatmul.f32.gmra.mxu3 %v1977_v33  ;;  %1813 = vst.msk [vmem:[#allocation3 + $0x90] sm:$0xf] %vm1468_vm6, %v1810_v13 }
 0x224   : > { %v1880_v27 = vpop.permute.xlu1 %1879 }
 0x225   : > { %v1923_v39 = vpop.permute.xlu0 %1922  ;;  %1882 = vst.msk [vmem:[#allocation3 + $0x78] sm:$0xc0] %vm1368_vm7, %v1880_v27 }
 0x226   : > { %1883 = vst.msk [vmem:[#allocation3 + $0x98] sm:$0xf] %vm1370_vm8, %v1880_v27 }
 0x227   : > { %1925 = vst.msk [vmem:[#allocation3 + $0x78] sm:$0xc0] %vm1417_vm4, %v1923_v39 }
 0x228   : > { %1926 = vst.msk [vmem:[#allocation3 + $0x98] sm:$0xf] %vm1419_vm9, %v1923_v39  ;;  %v1984_v58 = vld [vmem:[#allocation3 + $0x70] sm:$0xff]  ;;  %vm5096_vm9 = vcmask 523264  }
 0x229   : > { %1968 = vst.msk [vmem:[#allocation3 + $0x78] sm:$0xc0] %vm1466_vm13, %v1966_v43  ;;  %2147 = vmatmul.f32.gmra.mxu2 %v1984_v58  ;;  %v1988_v48 = vld [vmem:[#allocation3 + $0x90] sm:$0xf]  ;;  %vm5097_vm14 = vmmov %vm5096_vm9 }
 0x22a   : > { %2176 = vmatmul.f32.gmra.mxu3 %v1981_v38  ;;  %1969 = vst.msk [vmem:[#allocation3 + $0x98] sm:$0xf] %vm1468_vm6, %v1966_v43 }
 0x22c   : > { %v1959_v47 = vpop.permute.xlu1 %1958 }
 0x22d   : > { %1961 = vst.msk [vmem:[#allocation3 + $0x78] sm:$0x3f] %vm5095_vm5, %v1959_v47  ;;  %v2078_v51 = vpop.f32.mrf.mxu2  ;;  %vm5098_vm5 = vmmov %vm5096_vm9 }
 0x22e   : > { %v2079_v4 = vadd.f32 %v3115_v63, %v2078_v51 }
 0x231   : > { %2150 = vmatmul.f32.gmra.mxu2 %v1988_v48  ;;  %v1989_v49 = vld [vmem:[#allocation3 + $0x98] sm:$0xf] }
 0x234   : > { %v1985_v37 = vld [vmem:[#allocation3 + $0x78] sm:$0xff] }
 0x235   : > { %2179 = vmatmul.f32.gmra.mxu3 %v1985_v37 }
 0x23c   : > { %v2110_v52 = vpop.f32.mrf.mxu3 }
 0x23d   : > { %2182 = vmatmul.f32.gmra.mxu3 %v1989_v49  ;;  %v2111_v7 = vadd.f32 %v2110_v52, %v2079_v4 }
 0x242   : > { %v2081_v59 = vpop.f32.mrf.mxu2 }
 0x243   : > { %v2082_v5 = vadd.f32 %v3115_v63, %v2081_v59 }
 0x252   : > { %v2113_v61 = vpop.f32.mrf.mxu3 }
 0x253   : > { %v2114_v22 = vadd.f32 %v2113_v61, %v2082_v5 }
 0x27a   : > { %v2084_v3 = vpop.f32.mrf.mxu2 }
 0x27b   : > { %v2085_v57 = vadd.f32 %v3115_v63, %v2084_v3 }
 0x282   : > { %v2087_v41 = vpop.f32.mrf.mxu2 }
 0x283   : > { %v2088_v43 = vadd.f32 %v3115_v63, %v2087_v41 }
 0x28a   : > { %v2139_v10 = vpop.f32.mrf.mxu2 }
 0x28b   : > { %v2140_v45 = vadd.f32 %v2139_v10, %v2108_v20 }
 0x28d   : > { %v2116_v62 = vpop.f32.mrf.mxu3 }
 0x28e   : > { %v2117_v34 = vadd.f32 %v2116_v62, %v2085_v57 }
 0x292   : > { %v2142_v31 = vpop.f32.mrf.mxu2 }
 0x293   : > { %v2143_v8 = vadd.f32 %v2142_v31, %v2111_v7 }
 0x295   : > { %v4459_v0 = vpop.f32.mrf.mxu3 }
 0x296   : > { %v2120_v50 = vadd.f32 %v4459_v0, %v2088_v43 }
 0x29a   : > { %v2145_v17 = vpop.f32.mrf.mxu2 }
 0x29b   : > { %v2146_v16 = vadd.f32 %v2145_v17, %v2114_v22 }
 0x29d   : > { %v2171_v6 = vpop.f32.mrf.mxu3 }
 0x29e   : > { %v2172_v9 = vadd.f32 %v2171_v6, %v2140_v45 }
 0x2a0   : > { %v2186_v35 = vsub.f32 0.0, %v2172_v9 }
 0x2a2   : > { %v2191_v15 = vmul.f32 1.442695, %v2186_v35 }
 0x2a4   : > { %3225 = vpow2.f32 %v2191_v15 }
 0x2a5   : > { %v2174_v19 = vpop.f32.mrf.mxu3 }
 0x2a6   : > { %v4461_v11 = vadd.f32 %v2174_v19, %v2143_v8 }
 0x2a8   : > { %v2187_v56 = vsub.f32 0.0, %v4461_v11 }
 0x2aa   : > { %v3226_v12 = vpop.eup %3225  ;;  %v2193_v14 = vmul.f32 1.442695, %v2187_v56 }
 0x2ab   : > { %v2201_v23 = vadd.f32 1.0, %v3226_v12 }
 0x2ac   : > { %3227 = vpow2.f32 %v2193_v14  ;;  %v2148_v44 = vpop.f32.mrf.mxu2 }
 0x2ad   : > { %3229 = vrcp.f32 %v2201_v23  ;;  %v2177_v2 = vpop.f32.mrf.mxu3  ;;  %v2217_v60 = vand.u32 2147483648, %v2201_v23  ;;  %v2215_v42 = vand.u32 2147483647, %v2201_v23  ;;  %v2149_v40 = vadd.f32 %v2148_v44, %v2117_v34 }
 0x2ae   : > { %v4464_v46 = vadd.f32 %v2177_v2, %v2146_v16  ;;  %vm2211_vm7 = vweird.f32 %v2201_v23 }
 0x2af   : > { %v2218_v13 = vor.u32 1.1754944e-38, %v2217_v60  ;;  %vm2216_vm4 = vcmp.eq.f32.partialorder %v2215_v42, 8.507059e+37 }
 0x2b0   : > { %v2188_v25 = vsub.f32 0.0, %v4464_v46 }
 0x2b2   : > { %v3228_v26 = vpop.eup %3227  ;;  %v2195_v36 = vmul.f32 1.442695, %v2188_v25 }
 0x2b3   : > { %v3230_v28 = vpop.eup %3229  ;;  %v2202_v21 = vadd.f32 1.0, %v3228_v26 }
 0x2b4   : > { %v2207_v24 = vmul.f32 %v3230_v28, %v2201_v23  ;;  %3231 = vpow2.f32 %v2195_v36  ;;  %vm2212_vm15 = vweird.f32 %v3230_v28  ;;  %v2151_v37 = vpop.f32.mrf.mxu2 }
 0x2b5   : > { %3233 = vrcp.f32 %v2202_v21  ;;  %vm2213_vm8 = vmor %vm2211_vm7, %vm2212_vm15  ;;  %v2232_v51 = vand.u32 2147483648, %v2202_v21  ;;  %v2230_v59 = vand.u32 2147483647, %v2202_v21  ;;  %v2152_v3 = vadd.f32 %v2151_v37, %v2120_v50 }
 0x2b6   : > { %v2208_v29 = vsub.f32 1.0, %v2207_v24  ;;  %vm2226_vm6 = vweird.f32 %v2202_v21  ;;  %vm2298_vm15 = vcmask 523268  }
 0x2b7   : > { %v2233_v63 = vor.u32 1.1754944e-38, %v2232_v51  ;;  %vm2231_vm1 = vcmp.eq.f32.partialorder %v2230_v59, 8.507059e+37 }
 0x2b8   : > { %v2209_v30 = vmul.f32 %v3230_v28, %v2208_v29  ;;  %v2180_v54 = vpop.f32.mrf.mxu3 }
 0x2b9   : > { %v4467_v39 = vadd.f32 %v2180_v54, %v2149_v40 }
 0x2ba   : > { %v3232_v55 = vpop.eup %3231  ;;  %v2210_v18 = vadd.f32 %v3230_v28, %v2209_v30 }
 0x2bb   : > { %v3234_v32 = vpop.eup %3233  ;;  %v2203_v33 = vadd.f32 1.0, %v3232_v55  ;;  %v2189_v49 = vsub.f32 0.0, %v4467_v39 }
 0x2bc   : > { %v2214_v27 = vsel %vm2213_vm8, %v3230_v28, %v2210_v18  ;;  %v2222_v38 = vmul.f32 %v3234_v32, %v2202_v21  ;;  %vm2227_vm13 = vweird.f32 %v3234_v32 }
 0x2bd   : > { %v2219_v58 = vsel %vm2216_vm4, %v2218_v13, %v2214_v27  ;;  %3235 = vrcp.f32 %v2203_v33  ;;  %v2197_v52 = vmul.f32 1.442695, %v2189_v49  ;;  %vm2228_vm12 = vmor %vm2226_vm6, %vm2227_vm13  ;;  %v2247_v31 = vand.u32 2147483648, %v2203_v33 }
 0x2be   : > { %v2281_v47 = vmul.f32 %v2219_v58, %v2172_v9  ;;  %v2223_v48 = vsub.f32 1.0, %v2222_v38  ;;  %v2245_v19 = vand.u32 2147483647, %v2203_v33  ;;  %vm2241_vm3 = vweird.f32 %v2203_v33 }
 0x2bf   : > { %3237 = vpow2.f32 %v2197_v52  ;;  %v2248_v17 = vor.u32 1.1754944e-38, %v2247_v31  ;;  %v2494_v52 = vld [vmem:[%s5063_s5 + $0x78] sm:$0xff] }
 0x2c0   : > { %2286 = vst.msk [vmem:[#allocation4] sm:$0xff] %vm5096_vm9, %v2281_v47  ;;  %v2224_v53 = vmul.f32 %v3234_v32, %v2223_v48  ;;  %v2183_v41 = vpop.f32.mrf.mxu3  ;;  %vm2246_vm11 = vcmp.eq.f32.partialorder %v2245_v19, 8.507059e+37  ;;  %2561 = vmatpush.msra.mxu2 %v2494_v52  ;;  %v2526_v52 = vld [vmem:[%s5063_s5 + $0x178] sm:$0xff] }
 0x2c1   : > { %v4472_v10 = vadd.f32 %v2183_v41, %v2152_v3  ;;  %v2493_v3 = vld [vmem:[%s5063_s5 + $0x70] sm:$0xff] }
 0x2c2   : > { %v2225_v61 = vadd.f32 %v3234_v32, %v2224_v53  ;;  %2562 = vmatpush.msra.mxu2 %v2493_v3  ;;  %v2502_v3 = vld [vmem:[%s5063_s5 + $0xb8] sm:$0xff]  ;;  %v2501_v41 = vld [vmem:[%s5063_s5 + $0xb0] sm:$0xff] }
 0x2c3   : > { %v3236_v62 = vpop.eup %3235  ;;  %v2190_v45 = vsub.f32 0.0, %v4472_v10 }
 0x2c4   : > { %v2229_v1 = vsel %vm2228_vm12, %v3234_v32, %v2225_v61  ;;  %v2237_v0 = vmul.f32 %v3236_v62, %v2203_v33  ;;  %vm2242_vm0 = vweird.f32 %v3236_v62  ;;  %vm5101_vm12 = vmmov %vm5098_vm5 }
 0x2c5   : > { %v2234_v20 = vsel %vm2231_vm1, %v2233_v63, %v2229_v1  ;;  %v2199_v4 = vmul.f32 1.442695, %v2190_v45  ;;  %v3238_v15 = vpop.eup %3237  ;;  %vm2243_vm10 = vmor %vm2241_vm3, %vm2242_vm0  ;;  %vm2312_vm0 = vcmask 1043968  }
 0x2c6   : > { %v2282_v6 = vmul.f32 %v2234_v20, %v4461_v11  ;;  %v2238_v9 = vsub.f32 1.0, %v2237_v0  ;;  %v2204_v56 = vadd.f32 1.0, %v3238_v15  ;;  %v2492_v0 = vld [vmem:[%s5063_s5 + $0x68] sm:$0xff]  ;;  %vm5102_vm3 = vmmov %vm5098_vm5 }
 0x2c7   : > { %v2307_v35 = vld [vmem:[#allocation4 + $0x1] sm:$0xf]  ;;  %3239 = vpow2.f32 %v2199_v4  ;;  %2563 = vmatpush.msra.mxu2 %v2492_v0  ;;  %v2499_v0 = vld [vmem:[%s5063_s5 + $0xa0] sm:$0xff] }
 0x2c8   : > { %v2292_v7 = vld [vmem:[#allocation4] sm:$0xf]  ;;  %2287 = vst.msk [vmem:[#allocation4 + $0x8] sm:$0xff] %vm5097_vm14, %v2282_v6  ;;  %v2239_v8 = vmul.f32 %v3236_v62, %v2238_v9  ;;  %2309 = vrot.lane.b32.xlu0 %v2307_v35, %s3279_s28  ;;  %3241 = vrcp.f32 %v2204_v56  ;;  %v2262_v30 = vand.u32 2147483648, %v2204_v56  ;;  %v2260_v40 = vand.u32 2147483647, %v2204_v56 }
 0x2c9   : > { %v2335_v5 = vld [vmem:[#allocation4 + $0x2] sm:$0xf]  ;;  %2293 = vst.msk [vmem:[#allocation5] sm:$0xf] %vm2290_vm2, %v2292_v7  ;;  %vm2256_vm8 = vweird.f32 %v2204_v56 }
 0x2ca   : > { %v2240_v11 = vadd.f32 %v3236_v62, %v2239_v8  ;;  %2336 = vst.msk [vmem:[#allocation5 + $0x8] sm:$0xf] %vm2290_vm2, %v2335_v5  ;;  %v2263_v43 = vor.u32 1.1754944e-38, %v2262_v30  ;;  %vm2261_vm9 = vcmp.eq.f32.partialorder %v2260_v40, 8.507059e+37 }
 0x2cc   : > { %v2244_v12 = vsel %vm2243_vm10, %v3236_v62, %v2240_v11  ;;  %vm5103_vm10 = vmmov %vm5102_vm3 }
 0x2cd   : > { %v2249_v22 = vsel %vm2246_vm11, %v2248_v17, %v2244_v12  ;;  %v3240_v23 = vpop.eup %3239  ;;  %v2490_v12 = vld [vmem:[%s5063_s5 + $0x58] sm:$0xff] }
 0x2ce   : > { %v2283_v14 = vmul.f32 %v2249_v22, %v4464_v46  ;;  %v4482_v25 = vadd.f32 1.0, %v3240_v23  ;;  %v3242_v28 = vpop.eup %3241 }
 0x2cf   : > { %v2355_v16 = vld [vmem:[#allocation4 + $0xc] sm:$0xf]  ;;  %v2314_v2 = vld [vmem:[#allocation4 + $0x7] sm:$0xf]  ;;  %v2252_v57 = vmul.f32 %v3242_v28, %v2204_v56  ;;  %vm2257_vm7 = vweird.f32 %v3242_v28 }
 0x2d0   : > { %2288 = vst.msk [vmem:[#allocation4 + $0x10] sm:$0xff] %vm5098_vm5, %v2283_v14  ;;  %v2357_v26 = vrot.slane %v2355_v16, 4  ;;  %v2316_v36 = vrot.slane %v2314_v2, 4  ;;  %v2337_v21 = vld [vmem:[#allocation4 + $0x8] sm:$0xf]  ;;  %3243 = vrcp.f32 %v4482_v25  ;;  %v2277_v27 = vand.u32 2147483648, %v4482_v25  ;;  %vm2258_vm4 = vmor %vm2256_vm8, %vm2257_vm7 }
 0x2d1   : > { %v2300_v24 = vld [vmem:[#allocation4 + $0xc] sm:$0xf]  ;;  %v2294_v44 = vld [vmem:[#allocation4 + $0x6] sm:$0xf]  ;;  %v2339_v29 = vrot.slane %v2337_v21, 4  ;;  %v2253_v60 = vsub.f32 1.0, %v2252_v57  ;;  %vm2271_vm1 = vweird.f32 %v4482_v25 }
 0x2d2   : > { %2358 = vrot.lane.b32.xlu2 %v2357_v26, %s3279_s28  ;;  %2317 = vrot.lane.b32.xlu1 %v2316_v36, %s3279_s28  ;;  %2301 = vst.msk [vmem:[#allocation5 + $0x28] sm:$0xf] %vm2290_vm2, %v2300_v24  ;;  %v2375_v46 = vld [vmem:[#allocation4 + $0x7] sm:$0xf]  ;;  %v2296_v34 = vrot.slane %v2294_v44, 4  ;;  %v2278_v62 = vor.u32 1.1754944e-38, %v2277_v27 }
 0x2d3   : > { %2376 = vst.msk [vmem:[#allocation5 + $0x10] sm:$0xf] %vm2290_vm2, %v2375_v46  ;;  %v2254_v42 = vmul.f32 %v3242_v28, %v2253_v60  ;;  %v2275_v54 = vand.u32 2147483647, %v4482_v25  ;;  %v2349_v48 = vld [vmem:[#allocation4 + $0x6] sm:$0xf] }
 0x2d4   : > { %2341 = vst.msk [vmem:[#allocation5 + $0x8] sm:$0xf0] %vm2298_vm15, %v2339_v29  ;;  %v2415_v51 = vld [vmem:[#allocation4 + $0xc] sm:$0xf]  ;;  %v2389_v17 = vld [vmem:[#allocation4 + $0x8] sm:$0xf] }
 0x2d5   : > { %2299 = vst.msk [vmem:[#allocation5] sm:$0xf0] %vm2298_vm15, %v2296_v34  ;;  %v2255_v33 = vadd.f32 %v3242_v28, %v2254_v42  ;;  %vm4505_vm13 = vcmp.eq.f32.partialorder %v2275_v54, 8.507059e+37  ;;  %v2489_v14 = vld [vmem:[%s5063_s5 + $0x50] sm:$0xff]  ;;  %v2486_v54 = vld [vmem:[%s5063_s5 + $0x38] sm:$0xff]  ;;  %v2508_v27 = vld [vmem:[%s5063_s5 + $0xe8] sm:$0xff] }
 0x2d6   : > { %v3244_v32 = vpop.eup %3243  ;;  %2416 = vst.msk [vmem:[#allocation5 + $0x18] sm:$0xf] %vm2290_vm2, %v2415_v51  ;;  %v2504_v51 = vld [vmem:[%s5063_s5 + $0xc8] sm:$0xff]  ;;  %vm5104_vm8 = vcmask 261120  }
 0x2d7   : > { %v2455_v55 = vld [vmem:[#allocation4 + $0xe] sm:$0xf]  ;;  %v2457_v18 = vld [vmem:[#allocation4 + $0x14] sm:$0xf]  ;;  %v2267_v58 = vmul.f32 %v3244_v32, %v4482_v25  ;;  %v2259_v49 = vsel %vm2258_vm4, %v3242_v28, %v2255_v33  ;;  %vm2272_vm6 = vweird.f32 %v3244_v32 }
 0x2d8   : > { %v2459_v13 = vrot.slane %v2457_v18, 4  ;;  %2456 = vst.msk [vmem:[#allocation5 + $0x20] sm:$0xf] %vm2290_vm2, %v2455_v55  ;;  %v2328_v38 = vld [vmem:[#allocation4 + $0x13] sm:$0xf]  ;;  %v2264_v53 = vsel %vm2261_vm9, %v2263_v43, %v2259_v49  ;;  %vm2273_vm14 = vmor %vm2271_vm1, %vm2272_vm6  ;;  %v2487_v18 = vld [vmem:[%s5063_s5 + $0x40] sm:$0xff] }
 0x2d9   : > { %v2322_v47 = vld [vmem:[#allocation4 + $0xd] sm:$0xf]  ;;  %v2330_v37 = vrot.slane %v2328_v38, 4  ;;  %v2268_v59 = vsub.f32 1.0, %v2267_v58  ;;  %v2284_v61 = vmul.f32 %v2264_v53, %v4467_v39  ;;  %v2491_v39 = vld [vmem:[%s5063_s5 + $0x60] sm:$0xff]  ;;  %v2484_v38 = vld [vmem:[%s5063_s5 + $0x28] sm:$0xff] }
 0x2da   : > { %2324 = vrot.lane.b32.xlu2 %v2322_v47, %s3279_s28  ;;  %2351 = vrot.lane.b32.xlu1 %v2349_v48, %s3279_s28  ;;  %v2395_v50 = vld [vmem:[#allocation4 + $0xe] sm:$0xf]  ;;  %2461 = vst.msk [vmem:[#allocation5 + $0x20] sm:$0xf0] %vm2298_vm15, %v2459_v13  ;;  %v2302_v45 = vld [vmem:[#allocation4 + $0x12] sm:$0xf]  ;;  %vm5107_vm1 = vmmov %vm5104_vm8 }
 0x2db   : > { %2331 = vrot.lane.b32.xlu0 %v2330_v37, %s3279_s28  ;;  %v2269_v63 = vmul.f32 %v3244_v32, %v2268_v59  ;;  %v2397_v1 = vrot.slane %v2395_v50, 4  ;;  %v2342_v20 = vld [vmem:[#allocation4 + $0xe] sm:$0xf]  ;;  %2289 = vst.msk [vmem:[#allocation4 + $0x18] sm:$0xff] %vm5101_vm12, %v2284_v61  ;;  %v2304_v31 = vrot.slane %v2302_v45, 4  ;;  %2564 = vmatpush.msra.mxu2 %v2491_v39  ;;  %v2483_v43 = vld [vmem:[%s5063_s5 + $0x20] sm:$0xff] }
 0x2dc   : > { %v2377_v6 = vld [vmem:[#allocation4 + $0xd] sm:$0xf]  ;;  %2343 = vst.msk [vmem:[#allocation5 + $0x30] sm:$0xf] %vm2290_vm2, %v2342_v20  ;;  %v2382_v35 = vld [vmem:[#allocation4 + $0x13] sm:$0xf] }
 0x2dd   : > { %v2270_v9 = vadd.f32 %v3244_v32, %v2269_v63  ;;  %v2379_v4 = vrot.slane %v2377_v6, 4  ;;  %2383 = vst.msk [vmem:[#allocation5 + $0x38] sm:$0xf] %vm2290_vm2, %v2382_v35  ;;  %v2344_v7 = vld [vmem:[#allocation4 + $0x14] sm:$0xf]  ;;  %2565 = vmatpush.msra.mxu2 %v2490_v12  ;;  %v2509_v13 = vld [vmem:[%s5063_s5 + $0xf0] sm:$0xff] }
 0x2de   : > { %v2417_v15 = vld [vmem:[#allocation4 + $0x12] sm:$0xf]  ;;  %2306 = vst.msk [vmem:[#allocation5 + $0x28] sm:$0xf0] %vm2298_vm15, %v2304_v31  ;;  %v2346_v5 = vrot.slane %v2344_v7, 4  ;;  %v2485_v33 = vld [vmem:[%s5063_s5 + $0x30] sm:$0xff] }
 0x2df   : > { %v2274_v8 = vsel %vm2273_vm14, %v3244_v32, %v2270_v9  ;;  %v2362_v19 = vld [vmem:[#allocation4 + $0x12] sm:$0xf]  ;;  %v2419_v56 = vrot.slane %v2417_v15, 4  ;;  %2381 = vst.msk [vmem:[#allocation5 + $0x10] sm:$0xf0] %vm2298_vm15, %v2379_v4  ;;  %2566 = vmatpush.msra.mxu2 %v2489_v14  ;;  %v2507_v58 = vld [vmem:[%s5063_s5 + $0xe0] sm:$0xff] }
 0x2e0   : > { %v2279_v11 = vsel %vm4505_vm13, %v2278_v62, %v2274_v8  ;;  %2348 = vst.msk [vmem:[#allocation5 + $0x30] sm:$0xf0] %vm2298_vm15, %v2346_v5  ;;  %v2402_v21 = vld [vmem:[#allocation4 + $0x14] sm:$0xf]  ;;  %v2429_v42 = vld [vmem:[#allocation4 + $0xd] sm:$0xf] }
 0x2e1   : > { %v2285_v22 = vmul.f32 %v2279_v11, %v4472_v10  ;;  %2421 = vst.msk [vmem:[#allocation5 + $0x18] sm:$0xf0] %vm2298_vm15, %v2419_v56  ;;  %v2488_v10 = vld [vmem:[%s5063_s5 + $0x48] sm:$0xff]  ;;  %v2435_v46 = vld [vmem:[#allocation4 + $0x13] sm:$0xf]  ;;  %v2481_v37 = vld [vmem:[%s5063_s5 + $0x10] sm:$0xff] }
 0x2e2   : > { %2364 = vrot.lane.b32.xlu2 %v2362_v19, %s3279_s28  ;;  %2398 = vrot.lane.b32.xlu1 %v2397_v1, %s3279_s28  ;;  %v2408_v23 = vld [vmem:[#allocation4 + $0x1a] sm:$0xf]  ;;  %v2437_v60 = vrot.slane %v2435_v46, 4  ;;  %v2510_v32 = vld [vmem:[%s5063_s5 + $0xf8] sm:$0xff]  ;;  %v2505_v49 = vld [vmem:[%s5063_s5 + $0xd0] sm:$0xff] }
 0x2e3   : > { %2391 = vrot.lane.b32.xlu0 %v2389_v17, %s3279_s28  ;;  %2291 = vst.msk [vmem:[#allocation4 + $0x20] sm:$0xf] %vm2290_vm2, %v2285_v22  ;;  %v2368_v16 = vld [vmem:[#allocation4 + $0x18] sm:$0xf]  ;;  %v2410_v28 = vrot.slane %v2408_v23, 4  ;;  %2567 = vmatpush.msra.mxu2 %v2488_v10  ;;  %v2482_v47 = vld [vmem:[%s5063_s5 + $0x18] sm:$0xff] }
 0x2e4   : > { %v2384_v2 = vld [vmem:[#allocation4 + $0x19] sm:$0xf]  ;;  %v2370_v24 = vrot.slane %v2368_v16, 4  ;;  %2584 = vmatpush.msra.mxu3 %v2510_v32  ;;  %v2506_v48 = vld [vmem:[%s5063_s5 + $0xd8] sm:$0xff]  ;;  %v2480_v50 = vld [vmem:[%s5063_s5 + $0x8] sm:$0xff] }
 0x2e5   : > { %v2386_v25 = vrot.slane %v2384_v2, 4  ;;  %v2422_v26 = vld [vmem:[#allocation4 + $0x18] sm:$0xf]  ;;  %2568 = vmatpush.msra.mxu2 %v2487_v18  ;;  %v2525_v61 = vld [vmem:[%s5063_s5 + $0x170] sm:$0xff]  ;;  %v2524_v62 = vld [vmem:[%s5063_s5 + $0x168] sm:$0xff] }
 0x2e6   : > { %v2462_v36 = vld [vmem:[#allocation4 + $0x1a] sm:$0xf]  ;;  %2423 = vst.msk [vmem:[#allocation5 + $0x40] sm:$0xf] %vm2290_vm2, %v2422_v26  ;;  %2585 = vmatpush.msra.mxu3 %v2509_v13  ;;  %v2500_v63 = vld [vmem:[%s5063_s5 + $0xa8] sm:$0xff]  ;;  %v2522_v20 = vld [vmem:[%s5063_s5 + $0x158] sm:$0xff] }
 0x2e7   : > { %2388 = vst.msk [vmem:[#allocation5 + $0x38] sm:$0xf0] %vm2298_vm15, %v2386_v25  ;;  %v2442_v30 = vld [vmem:[#allocation4 + $0x19] sm:$0xf]  ;;  %2569 = vmatpush.msra.mxu2 %v2486_v54  ;;  %v2498_v39 = vld [vmem:[%s5063_s5 + $0x98] sm:$0xff]  ;;  %v2521_v45 = vld [vmem:[%s5063_s5 + $0x150] sm:$0xff] }
 0x2e8   : > { %2463 = vst.msk [vmem:[#allocation5 + $0x48] sm:$0xf] %vm2290_vm2, %v2462_v36  ;;  %2586 = vmatpush.msra.mxu3 %v2508_v27  ;;  %v2479_v53 = vld [vmem:[%s5063_s5] sm:$0xff]  ;;  %v2497_v6 = vld [vmem:[%s5063_s5 + $0x90] sm:$0xff]  ;;  %v2520_v9 = vld [vmem:[%s5063_s5 + $0x148] sm:$0xff]  ;;  %vm2320_vm2 = vcmask 1048068  }
 0x2e9   : > { %2570 = vmatpush.msra.mxu2 %v2485_v33  ;;  %v2503_v59 = vld [vmem:[%s5063_s5 + $0xc0] sm:$0xff]  ;;  %v2496_v31 = vld [vmem:[%s5063_s5 + $0x88] sm:$0xff]  ;;  %v2518_v15 = vld [vmem:[%s5063_s5 + $0x138] sm:$0xff] }
 0x2ea   : > { %2411 = vrot.lane.b32.xlu2 %v2410_v28, %s3279_s28  ;;  %2404 = vrot.lane.b32.xlu1 %v2402_v21, %s3279_s28  ;;  %v2424_v44 = vld [vmem:[#allocation4 + $0x1e] sm:$0xf]  ;;  %v2542_v8 = vld [vmem:[%s5063_s5 + $0x1f8] sm:$0xff]  ;;  %v2517_v19 = vld [vmem:[%s5063_s5 + $0x130] sm:$0xff] }
 0x2eb   : > { %2371 = vrot.lane.b32.xlu0 %v2370_v24, %s3279_s28  ;;  %v2464_v57 = vld [vmem:[#allocation4 + $0x20] sm:$0xf]  ;;  %v2426_v29 = vrot.slane %v2424_v44, 4  ;;  %2571 = vmatpush.msra.mxu2 %v2484_v38  ;;  %v2523_v1 = vld [vmem:[%s5063_s5 + $0x160] sm:$0xff]  ;;  %v2541_v5 = vld [vmem:[%s5063_s5 + $0x1f0] sm:$0xff] }
 0x2ec   : > { %v2466_v34 = vrot.slane %v2464_v57, 4  ;;  %v2448_v40 = vld [vmem:[#allocation4 + $0x1f] sm:$0xf]  ;;  %2587 = vmatpush.msra.mxu3 %v2507_v58  ;;  %v2514_v14 = vld [vmem:[%s5063_s5 + $0x118] sm:$0xff]  ;;  %v2513_v16 = vld [vmem:[%s5063_s5 + $0x110] sm:$0xff] }
 0x2ed   : > { %2428 = vst.msk [vmem:[#allocation5 + $0x40] sm:$0xf0] %vm2298_vm15, %v2426_v29  ;;  %v2450_v55 = vrot.slane %v2448_v40, 4  ;;  %2572 = vmatpush.msra.mxu2 %v2483_v43  ;;  %v2519_v4 = vld [vmem:[%s5063_s5 + $0x140] sm:$0xff]  ;;  %v2516_v56 = vld [vmem:[%s5063_s5 + $0x128] sm:$0xff]  ;;  %v2538_v23 = vld [vmem:[%s5063_s5 + $0x1d8] sm:$0xff] }
 0x2ee   : > { %2468 = vst.msk [vmem:[#allocation5 + $0x48] sm:$0xf0] %vm2298_vm15, %v2466_v34  ;;  %2588 = vmatpush.msra.mxu3 %v2506_v48  ;;  %v2495_v7 = vld [vmem:[%s5063_s5 + $0x80] sm:$0xff]  ;;  %v2540_v11 = vld [vmem:[%s5063_s5 + $0x1e8] sm:$0xff]  ;;  %v2537_v10 = vld [vmem:[%s5063_s5 + $0x1d0] sm:$0xff] }
 0x2ef   : > { %2573 = vmatpush.msra.mxu2 %v2482_v47  ;;  %v2515_v17 = vld [vmem:[%s5063_s5 + $0x120] sm:$0xff]  ;;  %v2512_v2 = vld [vmem:[%s5063_s5 + $0x108] sm:$0xff]  ;;  %v2534_v24 = vld [vmem:[%s5063_s5 + $0x1b8] sm:$0xff] }
 0x2f0   : > { %2589 = vmatpush.msra.mxu3 %v2505_v49  ;;  %v2539_v22 = vld [vmem:[%s5063_s5 + $0x1e0] sm:$0xff]  ;;  %v2536_v26 = vld [vmem:[%s5063_s5 + $0x1c8] sm:$0xff]  ;;  %v2533_v44 = vld [vmem:[%s5063_s5 + $0x1b0] sm:$0xff] }
 0x2f1   : > { %2574 = vmatpush.msra.mxu2 %v2481_v37  ;;  %v2511_v36 = vld [vmem:[%s5063_s5 + $0x100] sm:$0xff]  ;;  %v2532_v57 = vld [vmem:[%s5063_s5 + $0x1a8] sm:$0xff]  ;;  %v2550_v18 = vld [vmem:[%s5063_s5 + $0x238] sm:$0xff] }
 0x2f2   : > { %2444 = vrot.lane.b32.xlu2 %v2442_v30, %s3279_s28  ;;  %2438 = vrot.lane.b32.xlu1 %v2437_v60, %s3279_s28  ;;  %v2535_v21 = vld [vmem:[%s5063_s5 + $0x1c0] sm:$0xff]  ;;  %v2530_v60 = vld [vmem:[%s5063_s5 + $0x198] sm:$0xff] }
 0x2f3   : > { %2431 = vrot.lane.b32.xlu0 %v2429_v42, %s3279_s28  ;;  %2575 = vmatpush.msra.mxu2 %v2480_v50  ;;  %v2531_v34 = vld [vmem:[%s5063_s5 + $0x1a0] sm:$0xff]  ;;  %v2529_v30 = vld [vmem:[%s5063_s5 + $0x190] sm:$0xff]  ;;  %v2528_v42 = vld [vmem:[%s5063_s5 + $0x188] sm:$0xff] }
 0x2f4   : > { %2590 = vmatpush.msra.mxu3 %v2504_v51  ;;  %v2527_v54 = vld [vmem:[%s5063_s5 + $0x180] sm:$0xff]  ;;  %v2549_v33 = vld [vmem:[%s5063_s5 + $0x230] sm:$0xff]  ;;  %v2548_v27 = vld [vmem:[%s5063_s5 + $0x228] sm:$0xff] }
 0x2f5   : > { %2576 = vmatpush.msra.mxu2 %v2479_v53  ;;  %v2547_v38 = vld [vmem:[%s5063_s5 + $0x220] sm:$0xff]  ;;  %v2546_v48 = vld [vmem:[%s5063_s5 + $0x218] sm:$0xff]  ;;  %v2545_v49 = vld [vmem:[%s5063_s5 + $0x210] sm:$0xff] }
 0x2f6   : > { %2591 = vmatpush.msra.mxu3 %v2503_v59  ;;  %v2544_v50 = vld [vmem:[%s5063_s5 + $0x208] sm:$0xff]  ;;  %v2543_v51 = vld [vmem:[%s5063_s5 + $0x200] sm:$0xff] }
 0x2f7   : > { %2607 = vmatpush.msrb.mxu2 %v2526_v52 }
 0x2f8   : > { %2592 = vmatpush.msra.mxu3 %v2502_v3 }
 0x2f9   : > { %2608 = vmatpush.msrb.mxu2 %v2525_v61 }
 0x2fa   : > { %2593 = vmatpush.msra.mxu3 %v2501_v41 }
 0x2fb   : > { %2451 = vrot.lane.b32.xlu0 %v2450_v55, %s3279_s28  ;;  %2609 = vmatpush.msrb.mxu2 %v2524_v62 }
 0x2fc   : > { %2594 = vmatpush.msra.mxu3 %v2500_v63 }
 0x2fd   : > { %2610 = vmatpush.msrb.mxu2 %v2523_v1 }
 0x2fe   : > { %2595 = vmatpush.msra.mxu3 %v2499_v0  ;;  %v2473_v0 = vld [vmem:[#allocation5 + $0x20] sm:$0xff] }
 0x2ff   : > { %2611 = vmatpush.msrb.mxu2 %v2522_v20 }
 0x300   : > { %2596 = vmatpush.msra.mxu3 %v2498_v39  ;;  %v2478_v39 = vld [vmem:[#allocation5 + $0x48] sm:$0xff] }
 0x301   : > { %2612 = vmatpush.msrb.mxu2 %v2521_v45 }
 0x302   : > { %2597 = vmatpush.msra.mxu3 %v2497_v6 }
 0x303   : > { %2613 = vmatpush.msrb.mxu2 %v2520_v9 }
 0x304   : > { %2598 = vmatpush.msra.mxu3 %v2496_v31 }
 0x305   : > { %2614 = vmatpush.msrb.mxu2 %v2519_v4  ;;  %v3116_v4 = vld [vmem:[%s5064_s6] ss:$0 sm:$0xff] }
 0x306   : > { %2599 = vmatpush.msra.mxu3 %v2495_v7 }
 0x307   : > { %2615 = vmatpush.msrb.mxu2 %v2518_v15 }
 0x308   : > { %2630 = vmatpush.msrb.mxu3 %v2542_v8 }
 0x309   : > { %2616 = vmatpush.msrb.mxu2 %v2517_v19 }
 0x30a   : > { %2631 = vmatpush.msrb.mxu3 %v2541_v5 }
 0x30b   : > { %2617 = vmatpush.msrb.mxu2 %v2516_v56 }
 0x30c   : > { %2632 = vmatpush.msrb.mxu3 %v2540_v11 }
 0x30d   : > { %2618 = vmatpush.msrb.mxu2 %v2515_v17 }
 0x30e   : > { %2633 = vmatpush.msrb.mxu3 %v2539_v22 }
 0x30f   : > { %2619 = vmatpush.msrb.mxu2 %v2514_v14 }
 0x310   : > { %2634 = vmatpush.msrb.mxu3 %v2538_v23 }
 0x311   : > { %2620 = vmatpush.msrb.mxu2 %v2513_v16 }
 0x312   : > { %2635 = vmatpush.msrb.mxu3 %v2537_v10 }
 0x313   : > { %2621 = vmatpush.msrb.mxu2 %v2512_v2 }
 0x314   : > { %2636 = vmatpush.msrb.mxu3 %v2536_v26 }
 0x315   : > { %2622 = vmatpush.msrb.mxu2 %v2511_v36 }
 0x316   : > { %2637 = vmatpush.msrb.mxu3 %v2535_v21 }
 0x318   : > { %2638 = vmatpush.msrb.mxu3 %v2534_v24 }
 0x31a   : > { %2639 = vmatpush.msrb.mxu3 %v2533_v44 }
 0x31c   : > { %2640 = vmatpush.msrb.mxu3 %v2532_v57 }
 0x31e   : > { %2641 = vmatpush.msrb.mxu3 %v2531_v34 }
 0x320   : > { %2642 = vmatpush.msrb.mxu3 %v2530_v60 }
 0x322   : > { %2643 = vmatpush.msrb.mxu3 %v2529_v30 }
 0x324   : > { %2644 = vmatpush.msrb.mxu3 %v2528_v42 }
 0x326   : > { %2645 = vmatpush.msrb.mxu3 %v2527_v54 }
 0x32c   : > { %v2359_v35 = vpop.permute.xlu2 %2358 }
 0x32d   : > { %2361 = vst.msk [vmem:[#allocation5 + $0x8] sm:$0xf0] %vm2320_vm2, %v2359_v35 }
 0x334   : > { %v2325_v12 = vpop.permute.xlu2 %2324 }
 0x335   : > { %2327 = vst.msk [vmem:[#allocation5 + $0x28] sm:$0xf] %vm2312_vm0, %v2325_v12 }
 0x33a   : > { %v2310_v25 = vpop.permute.xlu0 %2309 }
 0x33b   : > { %2313 = vst.msk [vmem:[#allocation5] sm:$0xf] %vm2312_vm0, %v2310_v25 }
 0x33c   : > { %v2365_v28 = vpop.permute.xlu2 %2364 }
 0x33d   : > { %2367 = vst.msk [vmem:[#allocation5 + $0x30] sm:$0xf] %vm2312_vm0, %v2365_v28 }
 0x344   : > { %v2412_v46 = vpop.permute.xlu2 %2411  ;;  %v2318_v29 = vpop.permute.xlu1 %2317 }
 0x345   : > { %2414 = vst.msk [vmem:[#allocation5 + $0x38] sm:$0xf0] %vm2320_vm2, %v2412_v46 }
 0x346   : > { %2321 = vst.msk [vmem:[#allocation5] sm:$0xf0] %vm2320_vm2, %v2318_v29 }
 0x34c   : > { %v2445_v40 = vpop.permute.xlu2 %2444  ;;  %v2352_v55 = vpop.permute.xlu1 %2351 }
 0x34d   : > { %2447 = vst.msk [vmem:[#allocation5 + $0x40] sm:$0xf] %vm2312_vm0, %v2445_v40  ;;  %v2332_v32 = vpop.permute.xlu0 %2331  ;;  %v2469_v13 = vld [vmem:[#allocation5] sm:$0xff] }
 0x34e   : > { %2354 = vst.msk [vmem:[#allocation5 + $0x8] sm:$0xf] %vm2312_vm0, %v2352_v55  ;;  %2577 = vmatmul.f32.vlgmr.msra.gmra.mxu2 %v2469_v13 }
 0x34f   : > { %2334 = vst.msk [vmem:[#allocation5 + $0x28] sm:$0xf0] %vm2320_vm2, %v2332_v32  ;;  %2661 = vmatpush.msra.mxu2 %v2550_v18 }
 0x351   : > { %2662 = vmatpush.msra.mxu2 %v2549_v33 }
 0x353   : > { %2663 = vmatpush.msra.mxu2 %v2548_v27 }
 0x354   : > { %v2399_v43 = vpop.permute.xlu1 %2398 }
 0x355   : > { %2401 = vst.msk [vmem:[#allocation5 + $0x10] sm:$0xf0] %vm2320_vm2, %v2399_v43  ;;  %v2392_v58 = vpop.permute.xlu0 %2391  ;;  %v2470_v47 = vld [vmem:[#allocation5 + $0x8] sm:$0xff]  ;;  %2664 = vmatpush.msra.mxu2 %v2547_v38 }
 0x356   : > { %2394 = vst.msk [vmem:[#allocation5 + $0x10] sm:$0xf] %vm2312_vm0, %v2392_v58  ;;  %v2474_v37 = vld [vmem:[#allocation5 + $0x28] sm:$0xff]  ;;  %2600 = vmatmul.f32.vlgmr.msra.gmra.mxu3 %v2470_v47 }
 0x357   : > { %2580 = vmatmul.f32.gmra.mxu2 %v2474_v37 }
 0x358   : > { %2665 = vmatpush.msra.mxu2 %v2546_v48  ;;  %v2719_v48 = vlaneseq }
 0x35a   : > { %2666 = vmatpush.msra.mxu2 %v2545_v49  ;;  %vm4772_vm12 = vcmp.lt.s32.totalorder %v2719_v48, 32  ;;  %vm2729_vm14 = vcmp.ge.s32.totalorder %v2719_v48, 32 }
 0x35c   : > { %v2405_v53 = vpop.permute.xlu1 %2404  ;;  %2667 = vmatpush.msra.mxu2 %v2544_v50 }
 0x35d   : > { %2407 = vst.msk [vmem:[#allocation5 + $0x38] sm:$0xf] %vm2312_vm0, %v2405_v53  ;;  %v2372_v59 = vpop.permute.xlu0 %2371  ;;  %v2471_v52 = vld [vmem:[#allocation5 + $0x10] sm:$0xff]  ;;  %v2853_v53 = vld [vmem:[%s5065_s7 + $0x148] sm:$0xff] }
 0x35e   : > { %2374 = vst.msk [vmem:[#allocation5 + $0x30] sm:$0xf0] %vm2320_vm2, %v2372_v59  ;;  %2668 = vmatpush.msra.mxu2 %v2543_v51 }
 0x35f   : > { %2623 = vmatmul.f32.vlgmr.msrb.gmra.mxu2 %v2471_v52 }
 0x364   : > { %v2439_v3 = vpop.permute.xlu1 %2438  ;;  %v2476_v61 = vld [vmem:[#allocation5 + $0x38] sm:$0xff] }
 0x365   : > { %2441 = vst.msk [vmem:[#allocation5 + $0x18] sm:$0xf0] %vm2320_vm2, %v2439_v3  ;;  %v2432_v41 = vpop.permute.xlu0 %2431  ;;  %v2475_v62 = vld [vmem:[#allocation5 + $0x30] sm:$0xff] }
 0x366   : > { %2434 = vst.msk [vmem:[#allocation5 + $0x18] sm:$0xf] %vm2312_vm0, %v2432_v41  ;;  %2603 = vmatmul.f32.gmra.mxu3 %v2475_v62 }
 0x367   : > { %2626 = vmatmul.f32.gmra.mxu2 %v2476_v61 }
 0x36d   : > { %v2452_v63 = vpop.permute.xlu0 %2451  ;;  %v2472_v1 = vld [vmem:[#allocation5 + $0x18] sm:$0xff] }
 0x36e   : > { %2454 = vst.msk [vmem:[#allocation5 + $0x40] sm:$0xf0] %vm2320_vm2, %v2452_v63  ;;  %2646 = vmatmul.f32.vlgmr.msrb.gmra.mxu3 %v2472_v1  ;;  %vm2730_vm2 = vcmp.lt.s32.totalorder %v2719_v48, 64 }
 0x36f   : > { %3096 = vmatmul.msk.f32.vlgmr.msra.gmra.mxu2 %vm5102_vm3, %v2473_v0  ;;  %vm4877_vm0 = vmand %vm2729_vm14, %vm2730_vm2  ;;  %vm2738_vm3 = vcmp.ge.s32.totalorder %v2719_v48, 64 }
 0x375   : > { %v2477_v20 = vld [vmem:[#allocation5 + $0x40] sm:$0xff] }
 0x376   : > { %2649 = vmatmul.f32.gmra.mxu3 %v2477_v20 }
 0x377   : > { %3097 = vmatmul.msk.f32.gmra.mxu2 %vm5103_vm10, %v2478_v39  ;;  %vm2739_vm10 = vcmp.lt.s32.totalorder %v2719_v48, 96 }
 0x3d1   : > { %v2578_v45 = vpop.f32.mrf.mxu2 }
 0x3d2   : > { %v2579_v15 = vadd.f32 %v3116_v4, %v2578_v45 }
 0x3d9   : > { %v2601_v9 = vpop.f32.mrf.mxu3 }
 0x3da   : > { %v2581_v6 = vpop.f32.mrf.mxu2  ;;  %v2602_v8 = vadd.f32 %v2601_v9, %v2579_v15  ;;  %v2826_v15 = vld [vmem:[%s5065_s7 + $0x70] sm:$0xff] }
 0x3db   : > { %v2582_v56 = vadd.f32 %v3116_v4, %v2581_v6 }
 0x3e2   : > { %v2624_v31 = vpop.f32.mrf.mxu2 }
 0x3e3   : > { %v2625_v19 = vadd.f32 %v2624_v31, %v2602_v8  ;;  %v2842_v8 = vld [vmem:[%s5065_s7 + $0xf0] sm:$0xff] }
 0x3e9   : > { %v2604_v35 = vpop.f32.mrf.mxu3 }
 0x3ea   : > { %v2627_v7 = vpop.f32.mrf.mxu2  ;;  %v2605_v12 = vadd.f32 %v2604_v35, %v2582_v56  ;;  %v2827_v35 = vld [vmem:[%s5065_s7 + $0x78] sm:$0xff]  ;;  %v2824_v56 = vld [vmem:[%s5065_s7 + $0x60] sm:$0xff] }
 0x3eb   : > { %2886 = vmatpush.msra.mxu3 %v2827_v35  ;;  %v2863_v35 = vld [vmem:[%s5065_s7 + $0x198] sm:$0xff] }
 0x3ec   : > { %v2628_v23 = vadd.f32 %v2627_v7, %v2605_v12  ;;  %v2843_v7 = vld [vmem:[%s5065_s7 + $0xf8] sm:$0xff] }
 0x3ed   : > { %2906 = vmatpush.msrb.mxu2 %v2843_v7  ;;  %2887 = vmatpush.msra.mxu3 %v2826_v15  ;;  %v2839_v12 = vld [vmem:[%s5065_s7 + $0xd8] sm:$0xff]  ;;  %v2846_v15 = vld [vmem:[%s5065_s7 + $0x110] sm:$0xff] }
 0x3ef   : > { %2907 = vmatpush.msrb.mxu2 %v2842_v8  ;;  %v2862_v8 = vld [vmem:[%s5065_s7 + $0x190] sm:$0xff] }
 0x3f1   : > { %v2647_v5 = vpop.f32.mrf.mxu3 }
 0x3f2   : > { %v2648_v11 = vadd.f32 %v2647_v5, %v2625_v19  ;;  %v2670_v17 = vpop.f32.mrf.mxu2  ;;  %v2825_v19 = vld [vmem:[%s5065_s7 + $0x68] sm:$0xff] }
 0x3f3   : > { %v2841_v5 = vld [vmem:[%s5065_s7 + $0xe8] sm:$0xff]  ;;  %2888 = vmatpush.msra.mxu3 %v2825_v19 }
 0x3f4   : > { %v2671_v22 = vadd.f32 %v2670_v17, %v2648_v11  ;;  %2908 = vmatpush.msrb.mxu2 %v2841_v5  ;;  %v2840_v11 = vld [vmem:[%s5065_s7 + $0xe0] sm:$0xff]  ;;  %v2823_v17 = vld [vmem:[%s5065_s7 + $0x58] sm:$0xff] }
 0x3f5   : > { %2889 = vmatpush.msra.mxu3 %v2824_v56  ;;  %v2845_v56 = vld [vmem:[%s5065_s7 + $0x108] sm:$0xff] }
 0x3f6   : > { %v2676_v14 = vsub.f32 0.0, %v2671_v22  ;;  %2909 = vmatpush.msrb.mxu2 %v2840_v11  ;;  %v2861_v11 = vld [vmem:[%s5065_s7 + $0x188] sm:$0xff] }
 0x3f7   : > { %2890 = vmatpush.msra.mxu3 %v2823_v17 }
 0x3f8   : > { %v2678_v16 = vmul.f32 1.442695, %v2676_v14  ;;  %v2838_v14 = vld [vmem:[%s5065_s7 + $0xd0] sm:$0xff]  ;;  %2910 = vmatpush.msrb.mxu2 %v2839_v12  ;;  %v2844_v12 = vld [vmem:[%s5065_s7 + $0x100] sm:$0xff] }
 0x3f9   : > { %v2650_v10 = vpop.f32.mrf.mxu3 }
 0x3fa   : > { %3245 = vpow2.f32 %v2678_v16  ;;  %v2651_v2 = vadd.f32 %v2650_v10, %v2628_v23  ;;  %v2673_v25 = vpop.f32.mrf.mxu2  ;;  %2911 = vmatpush.msrb.mxu2 %v2838_v14  ;;  %v2821_v23 = vld [vmem:[%s5065_s7 + $0x48] sm:$0xff]  ;;  %v2820_v10 = vld [vmem:[%s5065_s7 + $0x40] sm:$0xff] }
 0x3fb   : > { %v2837_v16 = vld [vmem:[%s5065_s7 + $0xc8] sm:$0xff] }
 0x3fc   : > { %v2674_v26 = vadd.f32 %v2673_v25, %v2651_v2  ;;  %2912 = vmatpush.msrb.mxu2 %v2837_v16  ;;  %v2836_v2 = vld [vmem:[%s5065_s7 + $0xc0] sm:$0xff]  ;;  %v2819_v25 = vld [vmem:[%s5065_s7 + $0x38] sm:$0xff] }
 0x3fe   : > { %v2677_v36 = vsub.f32 0.0, %v2674_v26  ;;  %2913 = vmatpush.msrb.mxu2 %v2836_v2 }
 0x400   : > { %v3246_v28 = vpop.eup %3245  ;;  %v2680_v21 = vmul.f32 1.442695, %v2677_v36  ;;  %v2818_v36 = vld [vmem:[%s5065_s7 + $0x30] sm:$0xff] }
 0x401   : > { %v2682_v24 = vadd.f32 1.0, %v3246_v28  ;;  %v2834_v28 = vld [vmem:[%s5065_s7 + $0xb0] sm:$0xff] }
 0x402   : > { %3247 = vpow2.f32 %v2680_v21  ;;  %v2817_v21 = vld [vmem:[%s5065_s7 + $0x28] sm:$0xff] }
 0x403   : > { %3249 = vrcp.f32 %v2682_v24  ;;  %v2695_v60 = vand.u32 2147483648, %v2682_v24  ;;  %v2693_v42 = vand.u32 2147483647, %v2682_v24  ;;  %vm2689_vm5 = vweird.f32 %v2682_v24 }
 0x405   : > { %v2696_v18 = vor.u32 1.1754944e-38, %v2695_v60  ;;  %vm2694_vm7 = vcmp.eq.f32.partialorder %v2693_v42, 8.507059e+37  ;;  %v2814_v60 = vld [vmem:[%s5065_s7 + $0x10] sm:$0xff] }
 0x408   : > { %v3248_v44 = vpop.eup %3247 }
 0x409   : > { %v3250_v57 = vpop.eup %3249  ;;  %v2683_v46 = vadd.f32 1.0, %v3248_v44  ;;  %v2816_v44 = vld [vmem:[%s5065_s7 + $0x20] sm:$0xff] }
 0x40a   : > { %v2685_v29 = vmul.f32 %v3250_v57, %v2682_v24  ;;  %vm2690_vm11 = vweird.f32 %v3250_v57  ;;  %v2833_v24 = vld [vmem:[%s5065_s7 + $0xa8] sm:$0xff] }
 0x40b   : > { %3251 = vrcp.f32 %v2683_v46  ;;  %vm2691_vm15 = vmor %vm2689_vm5, %vm2690_vm11  ;;  %v2710_v38 = vand.u32 2147483648, %v2683_v46  ;;  %v2708_v58 = vand.u32 2147483647, %v2683_v46  ;;  %vm2704_vm9 = vweird.f32 %v2683_v46 }
 0x40c   : > { %v2686_v34 = vsub.f32 1.0, %v2685_v29  ;;  %v2831_v29 = vld [vmem:[%s5065_s7 + $0x98] sm:$0xff]  ;;  %vm4957_vm11 = vmand %vm2738_vm3, %vm2739_vm10  ;;  %vm2747_vm5 = vcmp.ge.s32.totalorder %v2719_v48, 96  ;;  %vm3012_vm10 = vcmask 188416  }
 0x40d   : > { %v2711_v37 = vor.u32 1.1754944e-38, %v2710_v38  ;;  %vm2709_vm6 = vcmp.eq.f32.partialorder %v2708_v58, 8.507059e+37  ;;  %v2857_v38 = vld [vmem:[%s5065_s7 + $0x168] sm:$0xff]  ;;  %v2856_v58 = vld [vmem:[%s5065_s7 + $0x160] sm:$0xff] }
 0x40e   : > { %v2687_v30 = vmul.f32 %v3250_v57, %v2686_v34 }
 0x410   : > { %v2688_v40 = vadd.f32 %v3250_v57, %v2687_v30  ;;  %v2830_v30 = vld [vmem:[%s5065_s7 + $0x90] sm:$0xff] }
 0x411   : > { %v3252_v55 = vpop.eup %3251 }
 0x412   : > { %v2692_v54 = vsel %vm2691_vm15, %v3250_v57, %v2688_v40  ;;  %v2700_v32 = vmul.f32 %v3252_v55, %v2683_v46  ;;  %vm2705_vm4 = vweird.f32 %v3252_v55  ;;  %v2832_v57 = vld [vmem:[%s5065_s7 + $0xa0] sm:$0xff]  ;;  %v2815_v46 = vld [vmem:[%s5065_s7 + $0x18] sm:$0xff]  ;;  %v2813_v40 = vld [vmem:[%s5065_s7 + $0x8] sm:$0xff]  ;;  %vm2748_vm15 = vcmp.lt.s32.totalorder %v2719_v48, 128 }
 0x413   : > { %v2697_v13 = vsel %vm2694_vm7, %v2696_v18, %v2692_v54  ;;  %vm2706_vm13 = vmor %vm2704_vm9, %vm2705_vm4  ;;  %v2812_v18 = vld [vmem:[%s5065_s7] sm:$0xff]  ;;  %vm2968_vm4 = vcmask 155776   ;;  %vm5114_vm9 = vcmask 523264  }
 0x414   : > { %v2714_v33 = vmul.f32 %v2697_v13, %v2671_v22  ;;  %v2701_v27 = vsub.f32 1.0, %v2700_v32  ;;  %v2822_v22 = vld [vmem:[%s5065_s7 + $0x50] sm:$0xff]  ;;  %v2828_v54 = vld [vmem:[%s5065_s7 + $0x80] sm:$0xff]  ;;  %v2859_v32 = vld [vmem:[%s5065_s7 + $0x178] sm:$0xff] }
 0x415   : > { %2891 = vmatpush.msra.mxu3 %v2822_v22  ;;  %v2875_v13 = vld [vmem:[%s5065_s7 + $0x1f8] sm:$0xff]  ;;  %vm4993_vm7 = vmand %vm2747_vm5, %vm2748_vm15  ;;  %v2860_v22 = vld [vmem:[%s5065_s7 + $0x180] sm:$0xff] }
 0x416   : > { %2716 = vst.msk [vmem:[#allocation6] sm:$0xff] %vm5104_vm8, %v2714_v33  ;;  %v2702_v43 = vmul.f32 %v3252_v55, %v2701_v27  ;;  %v2858_v33 = vld [vmem:[%s5065_s7 + $0x170] sm:$0xff]  ;;  %vm2990_vm8 = vcmask 188576  }
 0x417   : > { %2892 = vmatpush.msra.mxu3 %v2821_v23  ;;  %v2874_v27 = vld [vmem:[%s5065_s7 + $0x1f0] sm:$0xff] }
 0x418   : > { %v2703_v47 = vadd.f32 %v3252_v55, %v2702_v43  ;;  %v2873_v43 = vld [vmem:[%s5065_s7 + $0x1e8] sm:$0xff] }
 0x419   : > { %2893 = vmatpush.msra.mxu3 %v2820_v10 }
 0x41a   : > { %v2707_v49 = vsel %vm2706_vm13, %v3252_v55, %v2703_v47  ;;  %v2829_v55 = vld [vmem:[%s5065_s7 + $0x88] sm:$0xff]  ;;  %v2872_v47 = vld [vmem:[%s5065_s7 + $0x1e0] sm:$0xff]  ;;  %vm5115_vm13 = vmmov %vm5114_vm9 }
 0x41b   : > { %v2712_v50 = vsel %vm2709_vm6, %v2711_v37, %v2707_v49  ;;  %2894 = vmatpush.msra.mxu3 %v2819_v25  ;;  %v2855_v37 = vld [vmem:[%s5065_s7 + $0x158] sm:$0xff]  ;;  %vm2979_vm6 = vcmask 24576  }
 0x41c   : > { %v2715_v51 = vmul.f32 %v2712_v50, %v2674_v26  ;;  %v2835_v26 = vld [vmem:[%s5065_s7 + $0xb8] sm:$0xff]  ;;  %v2854_v50 = vld [vmem:[%s5065_s7 + $0x150] sm:$0xff] }
 0x41d   : > { %v2759_v59 = vld [vmem:[#allocation6 + $0x6] sm:$0x1]  ;;  %v2753_v52 = vld [vmem:[#allocation6 + $0x5] sm:$0x1]  ;;  %v2724_v3 = vld [vmem:[#allocation6 + $0x1] sm:$0x1]  ;;  %2914 = vmatpush.msrb.mxu2 %v2835_v26  ;;  %2895 = vmatpush.msra.mxu3 %v2818_v36 }
 0x41e   : > { %2717 = vst.msk [vmem:[#allocation6 + $0x8] sm:$0xff] %vm5107_vm1, %v2715_v51  ;;  %2761 = vrot.lane.b32.xlu0 %v2759_v59, %s3279_s28  ;;  %2755 = vrot.lane.b32.xlu2 %v2753_v52, %s3281_s11  ;;  %v2751_v61 = vld [vmem:[#allocation6 + $0x4] sm:$0x1]  ;;  %v2718_v41 = vld [vmem:[#allocation6] sm:$0x1]  ;;  %v2871_v49 = vld [vmem:[%s5065_s7 + $0x1d8] sm:$0xff] }
 0x41f   : > { %2726 = vrot.lane.b32.xlu1 %v2724_v3, %s3281_s11  ;;  %2752 = vst.msk [vmem:[#allocation7 + $0x1] sm:$0x1] %vm4772_vm12, %v2751_v61  ;;  %v2742_v62 = vld [vmem:[#allocation6 + $0x3] sm:$0x1]  ;;  %v2733_v63 = vld [vmem:[#allocation6 + $0x2] sm:$0x1]  ;;  %2915 = vmatpush.msrb.mxu2 %v2834_v28 }
 0x420   : > { %2723 = vst.msk [vmem:[#allocation7] sm:$0x1] %vm4772_vm12, %v2718_v41  ;;  %v2765_v4 = vld [vmem:[#allocation6 + $0x7] sm:$0x1]  ;;  %2896 = vmatpush.msra.mxu3 %v2817_v21  ;;  %v2870_v51 = vld [vmem:[%s5065_s7 + $0x1d0] sm:$0xff]  ;;  %v2869_v59 = vld [vmem:[%s5065_s7 + $0x1c8] sm:$0xff] }
 0x421   : > { %2916 = vmatpush.msrb.mxu2 %v2833_v24  ;;  %v2852_v52 = vld [vmem:[%s5065_s7 + $0x140] sm:$0xff]  ;;  %v2851_v61 = vld [vmem:[%s5065_s7 + $0x138] sm:$0xff] }
 0x422   : > { %2897 = vmatpush.msra.mxu3 %v2816_v44  ;;  %v2868_v3 = vld [vmem:[%s5065_s7 + $0x1c0] sm:$0xff]  ;;  %v2867_v41 = vld [vmem:[%s5065_s7 + $0x1b8] sm:$0xff] }
 0x423   : > { %2917 = vmatpush.msrb.mxu2 %v2832_v57  ;;  %v2876_v24 = vld [vmem:[%s5066_s8] sm:$0x1] }
 0x424   : > { %2898 = vmatpush.msra.mxu3 %v2815_v46 }
 0x425   : > { %v2793_v1 = vld [vmem:[#allocation6 + $0xd] sm:$0x1]  ;;  %v2791_v0 = vld [vmem:[#allocation6 + $0xc] sm:$0x1]  ;;  %v2771_v20 = vld [vmem:[#allocation6 + $0x8] sm:$0x1]  ;;  %2918 = vmatpush.msrb.mxu2 %v2831_v29 }
 0x426   : > { %2744 = vrot.lane.b32.xlu0 %v2742_v62, %s3280_s29  ;;  %2735 = vrot.lane.b32.xlu2 %v2733_v63, %s3279_s28  ;;  %2792 = vst.msk [vmem:[#allocation7 + $0x3] sm:$0x1] %vm4772_vm12, %v2791_v0  ;;  %v2773_v39 = vld [vmem:[#allocation6 + $0x9] sm:$0x1]  ;;  %v2799_v45 = vld [vmem:[#allocation6 + $0xe] sm:$0x1] }
 0x427   : > { %2795 = vrot.lane.b32.xlu1 %v2793_v1, %s3281_s11  ;;  %2772 = vst.msk [vmem:[#allocation7 + $0x2] sm:$0x1] %vm4772_vm12, %v2771_v20  ;;  %v2779_v6 = vld [vmem:[#allocation6 + $0xa] sm:$0x1]  ;;  %v2805_v9 = vld [vmem:[#allocation6 + $0xf] sm:$0x1]  ;;  %2899 = vmatpush.msra.mxu3 %v2814_v60 }
 0x428   : > { %v2785_v31 = vld [vmem:[#allocation6 + $0xb] sm:$0x1]  ;;  %2919 = vmatpush.msrb.mxu2 %v2830_v30  ;;  %v2850_v1 = vld [vmem:[%s5065_s7 + $0x130] sm:$0xff] }
 0x429   : > { %2900 = vmatpush.msra.mxu3 %v2813_v40  ;;  %v2866_v0 = vld [vmem:[%s5065_s7 + $0x1b0] sm:$0xff] }
 0x42a   : > { %2920 = vmatpush.msrb.mxu2 %v2829_v55 }
 0x42b   : > { %2901 = vmatpush.msra.mxu3 %v2812_v18  ;;  %v383_v18 = vld [vmem:[%s3396_s27 + $0x1b0] sm:$0xff] }
 0x42c   : > { %2921 = vmatpush.msrb.mxu2 %v2828_v54  ;;  %v384_v54 = vld [vmem:[%s3396_s27 + $0x1b8] sm:$0xff]  ;;  %600 = vmatmul.f32.gmra.mxu0 %v383_v18 }
 0x42d   : > { %2926 = vmatpush.msrb.mxu3 %v2859_v32  ;;  %3094 = vmatmul.msk.f32.gmra.mxu1 %vm5114_vm9, %v384_v54  ;;  %v385_v32 = vld [vmem:[%s3396_s27 + $0x1c0] sm:$0x1] }
 0x42e   : > { %2775 = vrot.lane.b32.xlu0 %v2773_v39, %s3281_s11  ;;  %2801 = vrot.lane.b32.xlu2 %v2799_v45, %s3279_s28  ;;  %v2849_v39 = vld [vmem:[%s5065_s7 + $0x128] sm:$0xff] }
 0x42f   : > { %2781 = vrot.lane.b32.xlu1 %v2779_v6, %s3279_s28  ;;  %2946 = vmatpush.msra.mxu2 %v2875_v13  ;;  %v2865_v45 = vld [vmem:[%s5065_s7 + $0x1a8] sm:$0xff] }
 0x430   : > { %2927 = vmatpush.msrb.mxu3 %v2858_v33  ;;  %v386_v13 = vld [vmem:[%s3396_s27 + $0x1c8] sm:$0x1] }
 0x431   : > { %2947 = vmatpush.msra.mxu2 %v2874_v27 }
 0x432   : > { %2928 = vmatpush.msrb.mxu3 %v2857_v38 }
 0x433   : > { %2948 = vmatpush.msra.mxu2 %v2873_v43 }
 0x434   : > { %2929 = vmatpush.msrb.mxu3 %v2856_v58  ;;  %603 = vmatmul.f32.gmra.mxu0 %v385_v32 }
 0x435   : > { %2949 = vmatpush.msra.mxu2 %v2872_v47  ;;  %3095 = vmatmul.msk.f32.gmra.mxu1 %vm5115_vm13, %v386_v13 }
 0x436   : > { %2807 = vrot.lane.b32.xlu0 %v2805_v9, %s3280_s29  ;;  %2787 = vrot.lane.b32.xlu2 %v2785_v31, %s3280_s29  ;;  %v2848_v9 = vld [vmem:[%s5065_s7 + $0x120] sm:$0xff] }
 0x437   : > { %2767 = vrot.lane.b32.xlu1 %v2765_v4, %s3280_s29  ;;  %2930 = vmatpush.msrb.mxu3 %v2855_v37  ;;  %v2864_v31 = vld [vmem:[%s5065_s7 + $0x1a0] sm:$0xff]  ;;  %v2847_v4 = vld [vmem:[%s5065_s7 + $0x118] sm:$0xff] }
 0x438   : > { %2950 = vmatpush.msra.mxu2 %v2871_v49 }
 0x439   : > { %2931 = vmatpush.msrb.mxu3 %v2854_v50 }
 0x43a   : > { %2951 = vmatpush.msra.mxu2 %v2870_v51 }
 0x43b   : > { %2932 = vmatpush.msrb.mxu3 %v2853_v53  ;;  %v3270_v53 = vld [vmem:[%s5060_s2] ss:$0 sm:$0xff] }
 0x43c   : > { %2952 = vmatpush.msra.mxu2 %v2869_v59 }
 0x43d   : > { %2933 = vmatpush.msrb.mxu3 %v2852_v52 }
 0x43e   : > { %2953 = vmatpush.msra.mxu2 %v2868_v3 }
 0x43f   : > { %2934 = vmatpush.msrb.mxu3 %v2851_v61 }
 0x440   : > { %2954 = vmatpush.msra.mxu2 %v2867_v41 }
 0x441   : > { %2935 = vmatpush.msrb.mxu3 %v2850_v1 }
 0x442   : > { %2955 = vmatpush.msra.mxu2 %v2866_v0 }
 0x443   : > { %2936 = vmatpush.msrb.mxu3 %v2849_v39 }
 0x444   : > { %2956 = vmatpush.msra.mxu2 %v2865_v45 }
 0x445   : > { %2937 = vmatpush.msrb.mxu3 %v2848_v9 }
 0x446   : > { %2957 = vmatpush.msra.mxu2 %v2864_v31 }
 0x447   : > { %2938 = vmatpush.msrb.mxu3 %v2847_v4 }
 0x448   : > { %2958 = vmatpush.msra.mxu2 %v2863_v35 }
 0x449   : > { %2939 = vmatpush.msrb.mxu3 %v2846_v15 }
 0x44a   : > { %2959 = vmatpush.msra.mxu2 %v2862_v8 }
 0x44b   : > { %2940 = vmatpush.msrb.mxu3 %v2845_v56 }
 0x44c   : > { %2960 = vmatpush.msra.mxu2 %v2861_v11  ;;  %v2967_v11 = vand.u32 127, %v2719_v48 }
 0x44d   : > { %2941 = vmatpush.msrb.mxu3 %v2844_v12 }
 0x44e   : > { %2961 = vmatpush.msra.mxu2 %v2860_v22  ;;  %vm2986_vm12 = vcmp.ge.s32.totalorder %v2967_v11, 16  ;;  %vm2987_vm1 = vcmp.lt.s32.totalorder %v2967_v11, 20  ;;  %vm3007_vm14 = vcmp.ge.s32.totalorder %v2967_v11, 20  ;;  %vm3008_vm2 = vcmp.lt.s32.totalorder %v2967_v11, 24 }
 0x44f   : > { %vm3009_vm3 = vmand %vm3007_vm14, %vm3008_vm2 }
 0x478   : > { %v2756_v42 = vpop.permute.xlu2 %2755 }
 0x479   : > { %2758 = vst.msk [vmem:[#allocation7 + $0x1] sm:$0x1] %vm4877_vm0, %v2756_v42 }
 0x480   : > { %v2736_v62 = vpop.permute.xlu2 %2735 }
 0x488   : > { %v2802_v19 = vpop.permute.xlu2 %2801 }
 0x490   : > { %v2762_v20 = vpop.permute.xlu0 %2761  ;;  %v2788_v16 = vpop.permute.xlu2 %2787 }
 0x491   : > { %2764 = vst.msk [vmem:[#allocation7 + $0x1] sm:$0x1] %vm4957_vm11, %v2762_v20  ;;  %v2727_v6 = vpop.permute.xlu1 %2726 }
 0x492   : > { %2732 = vst.msk [vmem:[#allocation7] sm:$0x1] %vm4877_vm0, %v2727_v6 }
 0x493   : > { %2741 = vst.msk [vmem:[#allocation7] sm:$0x1] %vm4957_vm11, %v2736_v62 }
 0x498   : > { %v2745_v5 = vpop.permute.xlu0 %2744 }
 0x499   : > { %2750 = vst.msk [vmem:[#allocation7] sm:$0x1] %vm4993_vm7, %v2745_v5  ;;  %v2796_v17 = vpop.permute.xlu1 %2795 }
 0x49a   : > { %2798 = vst.msk [vmem:[#allocation7 + $0x3] sm:$0x1] %vm4877_vm0, %v2796_v17 }
 0x49b   : > { %2804 = vst.msk [vmem:[#allocation7 + $0x3] sm:$0x1] %vm4957_vm11, %v2802_v19 }
 0x4a0   : > { %v2776_v14 = vpop.permute.xlu0 %2775 }
 0x4a1   : > { %2778 = vst.msk [vmem:[#allocation7 + $0x2] sm:$0x1] %vm4877_vm0, %v2776_v14  ;;  %v2782_v23 = vpop.permute.xlu1 %2781  ;;  %vm2988_vm0 = vmand %vm2986_vm12, %vm2987_vm1 }
 0x4a2   : > { %2784 = vst.msk [vmem:[#allocation7 + $0x2] sm:$0x1] %vm4957_vm11, %v2782_v23 }
 0x4a3   : > { %2790 = vst.msk [vmem:[#allocation7 + $0x2] sm:$0x1] %vm4993_vm7, %v2788_v16 }
 0x4a8   : > { %v2808_v10 = vpop.permute.xlu0 %2807 }
 0x4a9   : > { %2810 = vst.msk [vmem:[#allocation7 + $0x3] sm:$0x1] %vm4993_vm7, %v2808_v10  ;;  %v2768_v2 = vpop.permute.xlu1 %2767  ;;  %v601_v50 = vpop.f32.mrf.mxu0 }
 0x4aa   : > { %2770 = vst.msk [vmem:[#allocation7 + $0x1] sm:$0x1] %vm4993_vm7, %v2768_v2  ;;  %v705_v51 = vpop.f32.mrf.mxu1  ;;  %v602_v59 = vadd.f32 %v3270_v53, %v601_v50 }
 0x4ac   : > { %v706_v52 = vadd.f32 %v705_v51, %v602_v59 }
 0x4ae   : > { %v738_v3 = vsub.f32 0.0, %v706_v52 }
 0x4b0   : > { %v794_v61 = vmul.f32 1.442695, %v738_v3 }
 0x4b1   : > { %v2811_v25 = vld [vmem:[#allocation7] sm:$0xf]  ;;  %v604_v41 = vpop.f32.mrf.mxu0 }
 0x4b2   : > { %v2878_v26 = vperm.slane %v2811_v25, 0  ;;  %v2879_v36 = vperm.slane %v2811_v25, 1  ;;  %v2880_v28 = vperm.slane %v2811_v25, 2  ;;  %v2881_v21 = vperm.slane %v2811_v25, 3  ;;  %v708_v62 = vpop.f32.mrf.mxu1 }
 0x4b3   : > { %v605_v63 = vadd.f32 %v3270_v53, %v604_v41 }
 0x4b4   : > { %2902 = vmatmul.f32.vlgmr.msra.gmra.mxu3 %v2878_v26  ;;  %2922 = vmatmul.f32.vlgmr.msrb.gmra.mxu2 %v2879_v36 }
 0x4b5   : > { %v709_v1 = vadd.f32 %v708_v62, %v605_v63 }
 0x4b7   : > { %v739_v39 = vsub.f32 0.0, %v709_v1 }
 0x4b9   : > { %v796_v6 = vmul.f32 1.442695, %v739_v39 }
 0x4bc   : > { %2942 = vmatmul.f32.vlgmr.msrb.gmra.mxu3 %v2880_v28  ;;  %2962 = vmatmul.f32.vlgmr.msra.gmra.mxu2 %v2881_v21 }
 0x537   : > { %v2903_v44 = vpop.f32.mrf.mxu3  ;;  %v2923_v57 = vpop.f32.mrf.mxu2 }
 0x538   : > { %v2904_v46 = vadd.f32 %v2903_v44, %v2876_v24 }
 0x53a   : > { %v2924_v29 = vadd.f32 %v2923_v57, %v2904_v46 }
 0x53f   : > { %v2943_v34 = vpop.f32.mrf.mxu3  ;;  %v2963_v30 = vpop.f32.mrf.mxu2 }
 0x540   : > { %v2944_v60 = vadd.f32 %v2943_v34, %v2924_v29 }
 0x542   : > { %v5034_v42 = vadd.f32 %v2963_v30, %v2944_v60 }
 0x544   : > { %v2991_v40 = vsel %vm2990_vm8, %v5034_v42, -inf  ;;  %v2969_v55 = vsel %vm2968_vm4, %v5034_v42, -inf }
 0x545   : > { %2992 = vmax.xlane.f32.xlu2 %v2991_v40  ;;  %2970 = vmax.xlane.f32.xlu1 %v2969_v55 }
 0x5b8   : > { %v2971_v33 = vpop.xlane.xlu1 %2970  ;;  %v2993_v38 = vpop.xlane.xlu2 %2992 }
 0x5b9   : > { %v2972_v27 = vsub.f32 %v5034_v42, %v2971_v33  ;;  %v2994_v58 = vsub.f32 %v5034_v42, %v2993_v38 }
 0x5bb   : > { %v2973_v43 = vmul.f32 1.442695, %v2972_v27  ;;  %v2995_v47 = vmul.f32 1.442695, %v2994_v58 }
 0x5bd   : > { %3253 = vpow2.f32 %v2973_v43 }
 0x5be   : > { %3255 = vpow2.f32 %v2995_v47 }
 0x5bf   : > { %3257 = vpow2.f32 %v794_v61 }
 0x5c0   : > { %3259 = vpow2.f32 %v796_v6 }
 0x5c3   : > { %v3254_v37 = vpop.eup %3253 }
 0x5c4   : > { %2976 = vrot.lane.b32.xlu0 %v3254_v37, %s3282_s23  ;;  %v3256_v49 = vpop.eup %3255 }
 0x5c5   : > { %v3258_v45 = vpop.eup %3257 }
 0x5c6   : > { %v825_v9 = vadd.f32 1.0, %v3258_v45  ;;  %v3260_v35 = vpop.eup %3259 }
 0x5c7   : > { %v826_v15 = vadd.f32 1.0, %v3260_v35 }
 0x5c8   : > { %3261 = vrcp.f32 %v825_v9 }
 0x5c9   : > { %3263 = vrcp.f32 %v826_v15 }
 0x5cc   : > { %2998 = vrot.lane.b32.xlu0 %v3256_v49, %s3283_s24 }
 0x5ce   : > { %v3262_v7 = vpop.eup %3261 }
 0x5cf   : > { %v3264_v8 = vpop.eup %3263 }
 0x636   : > { %v2977_v0 = vpop.permute.xlu0 %2976 }
 0x637   : > { %v2980_v20 = vsel %vm2979_vm6, %v2977_v0, 0.0 }
 0x638   : > { %2981 = vadd.xlane.f32.xlu0 %v2980_v20 }
 0x63e   : > { %v2999_v31 = vpop.permute.xlu0 %2998 }
 0x63f   : > { %v3001_v4 = vsel %vm2979_vm6, %v2999_v31, 0.0 }
 0x640   : > { %3002 = vadd.xlane.f32.xlu2 %v3001_v4 }
 0x6ab   : > { %v2982_v19 = vpop.xlane.xlu0 %2981 }
 0x6ac   : > { %3265 = vlog2.f32 %v2982_v19 }
 0x6b2   : > { %v3266_v5 = vpop.eup %3265 }
 0x6b3   : > { %v3003_v56 = vpop.xlane.xlu2 %3002  ;;  %v2984_v17 = vmul.f32 0.6931472, %v3266_v5 }
 0x6b4   : > { %3267 = vlog2.f32 %v3003_v56 }
 0x6b5   : > { %v2985_v22 = vadd.f32 %v2984_v17, %v2971_v33 }
 0x6b7   : > { %v2989_v16 = vsel %vm2988_vm0, %v2985_v22, 0.0 }
 0x6ba   : > { %v3268_v12 = vpop.eup %3267 }
 0x6bb   : > { %v3005_v14 = vmul.f32 0.6931472, %v3268_v12 }
 0x6bd   : > { %v3006_v23 = vadd.f32 %v3005_v14, %v2993_v38 }
 0x6bf   : > { %v3010_v10 = vsel %vm3009_vm3, %v3006_v23, %v2989_v16 }
 0x6c0   : > { %v3011_v48 = vsub.f32 %v5034_v42, %v3010_v10 }
 0x6c2   : > { %3013 = vst.msk [vmem:[%s328_s26] sm:$0x1] %vm3012_vm10, %v3011_v48 }
 0x6c3 PF: > { %s19_s30 = sadd.s32 1, %s3277_s30  }
 0x6c4   : > { %p16_p4 = scmp.ge.s32.totalorder %s19_s30, 4  }
 0x6c6   :  { %18 = sbr.rel (!%p16_p4) target bundleno = 1 (0x1), region = 86 }

</bundles_post_ra>
